<compile_context>
chip_gen: v7x
topology: tpu7x:2x2x1
jax: 0.10.0
libtpu: 0.0.40
codegen_flags: <defaults>
</compile_context>

<pallas_src>
import numpy as np
import jax
import jax.numpy as jnp
from jax.experimental import pallas as pl
from jax.experimental.pallas import tpu as pltpu

# Layer schedule of the PyTorch Context module: seven 3x3 convs (dilations
# below, reflect padding == dilation) followed by one 1x1 conv; ReLU after each.
_DILATIONS_3X3 = (1, 1, 2, 4, 8, 16, 1)
_NUM_3X3 = len(_DILATIONS_3X3)
_NUM_LAYERS = _NUM_3X3 + 1
_ALL_DILATIONS = _DILATIONS_3X3 + (1,)
_KSIZES = ((3, 3),) * _NUM_3X3 + ((1, 1),)


def _context_kernel(x_ref, a_ref, d_ref, m1_ref, b_ref, o_ref):
    """Fused 8-layer context module on one lane-dense activation slab.

    x_ref  : (1, M, CW)     f32   input slab (channels stacked along lanes)
    a_ref  : (7, 2M, M)     bf16  stacked row-reflect operators [A_kh0 ; A_kh2]
    d_ref  : (7, 9CW, CW)   bf16  col-reflect x channel-mix, [D_hi ; D_hi ; D_lo]
    m1_ref : (3CW, CW)      bf16  1x1-conv operator, [M_hi ; M_hi ; M_lo]
    b_ref  : (8, 1, CW)     f32   per-layer biases (slab layout)
    o_ref  : (1, M, CW)     f32   output slab
    """
    m = x_ref.shape[1]
    cw = x_ref.shape[2]
    bf16 = jnp.bfloat16

    def split(v):  # f32 -> (hi, lo) bf16 pair, v ~= hi + lo to ~2^-16 rel.
        hi = v.astype(bf16)
        lo = (v - hi.astype(jnp.float32)).astype(bf16)
        return hi, lo

    x = x_ref[0]                                              # (M, CW) f32
    for l in range(_NUM_3X3):
        x_hi, x_lo = split(x)
        # kh=0 / kh=2 reflected row shifts of both halves in ONE bf16 matmul
        # (kh=1 is the identity row tap and is skipped).  A entries are exactly
        # 0/1, so the shifted values are bit-exact.
        r = jnp.dot(a_ref[l], jnp.concatenate([x_hi, x_lo], axis=1),
                    preferred_element_type=jnp.float32)       # (2M, 2CW)
        r = r.astype(bf16)                                    # exact cast
        xs_hi = jnp.concatenate([r[:m, :cw], x_hi, r[m:, :cw]], axis=1)  # (M,3CW)
        xs_lo = jnp.concatenate([r[:m, cw:], x_lo, r[m:, cw:]], axis=1)  # (M,3CW)
        # One wide bf16 matmul == 3-pass (Precision.HIGH-equivalent) f32 conv:
        #   xs_hi@D_hi + xs_lo@D_hi + xs_hi@D_lo   (xs_lo@D_lo dropped, ~2^-18)
        xs = jnp.concatenate([xs_hi, xs_lo, xs_hi], axis=1)   # (M, 9CW)
        y = jnp.dot(xs, d_ref[l], preferred_element_type=jnp.float32)  # (M, CW)
        # Bias added once per layer, after the full contraction.
        x = jnp.maximum(y + b_ref[l], 0.0)

    # Final 1x1 conv + ReLU, same hi/lo scheme.
    x_hi, x_lo = split(x)
    xs = jnp.concatenate([x_hi, x_lo, x_hi], axis=1)          # (M, 3CW)
    y = jnp.dot(xs, m1_ref[...], preferred_element_type=jnp.float32)
    o_ref[0] = jnp.maximum(y + b_ref[_NUM_3X3], 0.0)


def _reflect_index_map(n, pad):
    """torch ReflectionPad2d index map (edge excluded) along one axis."""
    r = np.arange(n + 2 * pad)
    return (n - 1) - np.abs((n - 1) - np.abs(r - pad))


def build_context_operators(params, B, C, H, W, fold_batch=True):
    """Precompute the structured operator matrices.

    Done ONCE per parameter set (hoisted out of the per-call forward path):
    8 conv layers become plain matmuls against these constants.
    """
    CW = C * W
    eye_h = np.eye(H, dtype=np.float32)
    eye_w = np.eye(W, dtype=np.float32)
    eye_b = np.eye(B, dtype=np.float32)

    def hi_lo(mat_np):
        m = jnp.asarray(mat_np, dtype=jnp.float32)
        hi = m.astype(jnp.bfloat16)
        lo = (m - hi.astype(jnp.float32)).astype(jnp.bfloat16)
        return hi, lo

    a_list, d_list, bias_list = [], [], []
    for l, dil in enumerate(_DILATIONS_3X3):
        w = np.asarray(params[l][0], dtype=np.float32)        # (C, C, 3, 3)
        b = np.asarray(params[l][1], dtype=np.float32)        # (C,)
        rmap = _reflect_index_map(H, dil)
        cmap = _reflect_index_map(W, dil)
        # Row reflect+shift selection operators for kh = 0 and kh = 2
        # (kh = 1 is exactly the identity -> skipped in the kernel).
        a0 = eye_h[rmap[0:H]]
        a2 = eye_h[rmap[2 * dil:2 * dil + H]]
        if fold_batch:                     # block-diagonal across the batch
            a0 = np.kron(eye_b, a0)
            a2 = np.kron(eye_b, a2)
        a_list.append(np.concatenate([a0, a2], axis=0))        # (2M, M), 0/1
        # Column reflect+shift x channel-mix operators, stacked over kh:
        # S[kw][j, q] = 1 iff j == reflect(q + kw*dil)
        s = np.stack([eye_w[cmap[kw * dil:kw * dil + W]].T for kw in range(3)])
        # D[kh][ci*W + j, co*W + q] = sum_kw w[co,ci,kh,kw] * S[kw][j, q]
        d = np.einsum('oihk,kjq->hijoq', w, s).reshape(3 * CW, CW)   # [D0;D1;D2]
        d_hi, d_lo = hi_lo(d)
        d_list.append(jnp.concatenate([d_hi, d_hi, d_lo], axis=0))   # (9CW, CW)
        bias_list.append(np.repeat(b, W))

    w1 = np.asarray(params[_NUM_3X3][0], dtype=np.float32)[:, :, 0, 0]
    b1 = np.asarray(params[_NUM_3X3][1], dtype=np.float32)
    m1 = np.einsum('oi,jq->ijoq', w1, eye_w).reshape(CW, CW)
    m1_hi, m1_lo = hi_lo(m1)
    m1_arr = jnp.concatenate([m1_hi, m1_hi, m1_lo], axis=0)           # (3CW, CW)
    bias_list.append(np.repeat(b1, W))

    a_arr = jnp.asarray(np.stack(a_list)).astype(jnp.bfloat16)   # exact 0/1
    d_arr = jnp.stack(d_list)                                    # (7, 9CW, CW)
    b_arr = jnp.asarray(np.stack(bias_list), dtype=jnp.float32)
    b_arr = b_arr.reshape(_NUM_LAYERS, 1, CW)
    return a_arr, d_arr, m1_arr, b_arr


def context_forward(x, a_arr, d_arr, m1_arr, b_arr):
    """x: (B, C, H, W) f32; operators from build_context_operators."""
    B, C, H, W = x.shape
    CW = C * W
    M = a_arr.shape[2]                 # rows per grid step (B*H folded, or H)
    steps = (B * H) // M

    # Lane-dense slab layout: rows x (C*W), channels stacked along lanes.
    x_slab = x.astype(jnp.float32).transpose(0, 2, 1, 3).reshape(steps, M, CW)

    out_slab = pl.pallas_call(
        _context_kernel,
        out_shape=jax.ShapeDtypeStruct((steps, M, CW), jnp.float32),
        grid=(steps,),
        in_specs=[
            pl.BlockSpec((1, M, CW), lambda i: (i, 0, 0)),
            pl.BlockSpec(a_arr.shape, lambda i: (0, 0, 0)),
            pl.BlockSpec(d_arr.shape, lambda i: (0, 0, 0)),
            pl.BlockSpec(m1_arr.shape, lambda i: (0, 0)),
            pl.BlockSpec(b_arr.shape, lambda i: (0, 0, 0)),
        ],
        out_specs=pl.BlockSpec((1, M, CW), lambda i: (i, 0, 0)),
        compiler_params=pltpu.CompilerParams(
            dimension_semantics=("parallel",)),
    )(x_slab, a_arr, d_arr, m1_arr, b_arr)

    return out_slab.reshape(B, H, C, W).transpose(0, 2, 1, 3)


def context_forward_ref(x, params):
    """Pure-JAX reference (reflect pad + lax.conv at HIGHEST precision)."""
    for (w, b), dil in zip(params, _ALL_DILATIONS):
        KH = w.shape[2]
        pad = dil * (KH - 1) // 2
        xp = (jnp.pad(x, ((0, 0), (0, 0), (pad, pad), (pad, pad)), mode="reflect")
              if pad > 0 else x)
        y = jax.lax.conv_general_dilated(
            xp, w, window_strides=(1, 1), padding="VALID",
            rhs_dilation=(dil, dil),
            dimension_numbers=("NCHW", "OIHW", "NCHW"),
            precision=jax.lax.Precision.HIGHEST)
        x = jnp.maximum(y + b[None, :, None, None], 0.0)
    return x


def init_params(key, num_classes):
    # Deterministic synthetic init (He-style scaling); shapes match nn.Conv2d
    # weights (out, in, kh, kw) and biases (out,) of the module.
    params = []
    for i, (kh, kw) in enumerate(_KSIZES):
        kw_key, kb_key = jax.random.split(jax.random.fold_in(key, i))
        fan_in = num_classes * kh * kw
        w = jax.random.normal(kw_key, (num_classes, num_classes, kh, kw),
                              jnp.float32) * (2.0 / fan_in) ** 0.5
        b = 0.05 * jax.random.normal(kb_key, (num_classes,), jnp.float32)
        params.append((w, b))
    return params


if __name__ == "__main__":
    # Spatial size must exceed 16 so the reflect padding of the dilation-16
    # conv is valid (torch requires pad < size).  W=32, C=4 -> C*W = 128 lanes.
    num_classes, B, H, W = 4, 2, 32, 32
    key = jax.random.PRNGKey(0)
    kx, kp = jax.random.split(key)
    x = jax.random.normal(kx, (B, num_classes, H, W), jnp.float32)
    params = init_params(kp, num_classes)

    # Operator construction hoisted out of the per-call path: built once per
    # parameter set, reused for every forward.  fold_batch=True folds the batch
    # into one grid step (best on single-TC v5e/v6e); set False to keep
    # grid=(B,) so v7x's two TensorCores each take one image.
    ops = build_context_operators(params, B, num_classes, H, W, fold_batch=True)

    fwd = jax.jit(context_forward)
    y = fwd(x, *ops)
    jax.block_until_ready(y)

    y_ref = context_forward_ref(x, params)
    assert y.shape == (B, num_classes, H, W)
    max_err = float(jnp.max(jnp.abs(y - y_ref)))
    assert jnp.allclose(y, y_ref, atol=1e-3, rtol=1e-3), (
        f"mismatch vs reference, max abs err = {max_err}")
    print("KERNEL_OK")
</pallas_src>

<mosaic_0001>
module attributes {stable_mosaic.version = 11 : i64} {
  func.func @_context_kernel(%arg0: i32, %arg1: memref<1x64x128xf32, #tpu.memory_space<vmem>>, %arg2: memref<7x128x64xbf16, #tpu.memory_space<vmem>>, %arg3: memref<7x1152x128xbf16, #tpu.memory_space<vmem>>, %arg4: memref<384x128xbf16, #tpu.memory_space<vmem>>, %arg5: memref<8x1x128xf32, #tpu.memory_space<vmem>>, %arg6: memref<1x64x128xf32, #tpu.memory_space<vmem>>) attributes {dimension_semantics = [#tpu.dimension_semantics<parallel>], iteration_bounds = array<i64: 1>, scalar_prefetch = 0 : i64, scratch_operands = 0 : i64, tpu.core_type = #tpu.core_type<tc>, window_params = [{transform_indices = @transform_0, window_bounds = array<i64: 1, 64, 128>}, {pipeline_mode = #tpu.pipeline_mode<synchronous>, transform_indices = @transform_1, window_bounds = array<i64: 7, 128, 64>}, {pipeline_mode = #tpu.pipeline_mode<synchronous>, transform_indices = @transform_2, window_bounds = array<i64: 7, 1152, 128>}, {pipeline_mode = #tpu.pipeline_mode<synchronous>, transform_indices = @transform_3, window_bounds = array<i64: 384, 128>}, {pipeline_mode = #tpu.pipeline_mode<synchronous>, transform_indices = @transform_4, window_bounds = array<i64: 8, 1, 128>}, {transform_indices = @transform_5, window_bounds = array<i64: 1, 64, 128>}]} {
    %c0 = arith.constant 0 : index
    %c0_0 = arith.constant 0 : index
    %c0_1 = arith.constant 0 : index
    %0 = vector.load %arg1[%c0, %c0_0, %c0_1] : memref<1x64x128xf32, #tpu.memory_space<vmem>>, vector<1x64x128xf32>
    %1 = vector.shape_cast %0 : vector<1x64x128xf32> to vector<64x128xf32>
    %2 = arith.truncf %1 : vector<64x128xf32> to vector<64x128xbf16>
    %3 = arith.extf %2 : vector<64x128xbf16> to vector<64x128xf32>
    %4 = arith.subf %1, %3 : vector<64x128xf32>
    %5 = arith.truncf %4 : vector<64x128xf32> to vector<64x128xbf16>
    %c0_2 = arith.constant 0 : index
    %c0_3 = arith.constant 0 : index
    %c0_4 = arith.constant 0 : index
    %6 = vector.load %arg2[%c0_2, %c0_3, %c0_4] : memref<7x128x64xbf16, #tpu.memory_space<vmem>>, vector<1x128x64xbf16>
    %7 = vector.shape_cast %6 : vector<1x128x64xbf16> to vector<128x64xbf16>
    %8 = tpu.concatenate %2, %5 in 1 : vector<64x128xbf16>, vector<64x128xbf16> -> vector<64x256xbf16>
    %cst = arith.constant dense<0.000000e+00> : vector<128x256xf32>
    %9 = tpu.matmul %7, %8, %cst {dimension_numbers = #tpu.dot_dimension_numbers<[1], [0], [0], [1], [0, 0, 1, 1], [], []>} : vector<128x64xbf16>, vector<64x256xbf16>, vector<128x256xf32> -> vector<128x256xf32>
    %10 = arith.truncf %9 : vector<128x256xf32> to vector<128x256xbf16>
    %11 = vector.extract_strided_slice %10 {offsets = [0, 0], sizes = [64, 128], strides = [1, 1]} : vector<128x256xbf16> to vector<64x128xbf16>
    %12 = vector.extract_strided_slice %10 {offsets = [64, 0], sizes = [64, 128], strides = [1, 1]} : vector<128x256xbf16> to vector<64x128xbf16>
    %13 = tpu.concatenate %11, %2, %12 in 1 : vector<64x128xbf16>, vector<64x128xbf16>, vector<64x128xbf16> -> vector<64x384xbf16>
    %14 = vector.extract_strided_slice %10 {offsets = [0, 128], sizes = [64, 128], strides = [1, 1]} : vector<128x256xbf16> to vector<64x128xbf16>
    %15 = vector.extract_strided_slice %10 {offsets = [64, 128], sizes = [64, 128], strides = [1, 1]} : vector<128x256xbf16> to vector<64x128xbf16>
    %16 = tpu.concatenate %14, %5, %15 in 1 : vector<64x128xbf16>, vector<64x128xbf16>, vector<64x128xbf16> -> vector<64x384xbf16>
    %17 = tpu.concatenate %13, %16, %13 in 1 : vector<64x384xbf16>, vector<64x384xbf16>, vector<64x384xbf16> -> vector<64x1152xbf16>
    %c0_5 = arith.constant 0 : index
    %c0_6 = arith.constant 0 : index
    %c0_7 = arith.constant 0 : index
    %18 = vector.load %arg3[%c0_5, %c0_6, %c0_7] : memref<7x1152x128xbf16, #tpu.memory_space<vmem>>, vector<1x1152x128xbf16>
    %19 = vector.shape_cast %18 : vector<1x1152x128xbf16> to vector<1152x128xbf16>
    %cst_8 = arith.constant dense<0.000000e+00> : vector<64x128xf32>
    %20 = tpu.matmul %17, %19, %cst_8 {dimension_numbers = #tpu.dot_dimension_numbers<[1], [0], [0], [1], [0, 0, 1, 1], [], []>} : vector<64x1152xbf16>, vector<1152x128xbf16>, vector<64x128xf32> -> vector<64x128xf32>
    %c0_9 = arith.constant 0 : index
    %c0_10 = arith.constant 0 : index
    %c0_11 = arith.constant 0 : index
    %21 = vector.load %arg5[%c0_9, %c0_10, %c0_11] : memref<8x1x128xf32, #tpu.memory_space<vmem>>, vector<1x1x128xf32>
    %22 = vector.shape_cast %21 : vector<1x1x128xf32> to vector<1x128xf32>
    %23 = vector.broadcast %22 : vector<1x128xf32> to vector<64x128xf32>
    %24 = arith.addf %20, %23 : vector<64x128xf32>
    %cst_12 = arith.constant 0.000000e+00 : f32
    %25 = vector.broadcast %cst_12 : f32 to vector<64x128xf32>
    %26 = arith.maximumf %24, %25 : vector<64x128xf32>
    %27 = arith.truncf %26 : vector<64x128xf32> to vector<64x128xbf16>
    %28 = arith.extf %27 : vector<64x128xbf16> to vector<64x128xf32>
    %29 = arith.subf %26, %28 : vector<64x128xf32>
    %30 = arith.truncf %29 : vector<64x128xf32> to vector<64x128xbf16>
    %c1 = arith.constant 1 : index
    %c0_13 = arith.constant 0 : index
    %c0_14 = arith.constant 0 : index
    %31 = vector.load %arg2[%c1, %c0_13, %c0_14] : memref<7x128x64xbf16, #tpu.memory_space<vmem>>, vector<1x128x64xbf16>
    %32 = vector.shape_cast %31 : vector<1x128x64xbf16> to vector<128x64xbf16>
    %33 = tpu.concatenate %27, %30 in 1 : vector<64x128xbf16>, vector<64x128xbf16> -> vector<64x256xbf16>
    %cst_15 = arith.constant dense<0.000000e+00> : vector<128x256xf32>
    %34 = tpu.matmul %32, %33, %cst_15 {dimension_numbers = #tpu.dot_dimension_numbers<[1], [0], [0], [1], [0, 0, 1, 1], [], []>} : vector<128x64xbf16>, vector<64x256xbf16>, vector<128x256xf32> -> vector<128x256xf32>
    %35 = arith.truncf %34 : vector<128x256xf32> to vector<128x256xbf16>
    %36 = vector.extract_strided_slice %35 {offsets = [0, 0], sizes = [64, 128], strides = [1, 1]} : vector<128x256xbf16> to vector<64x128xbf16>
    %37 = vector.extract_strided_slice %35 {offsets = [64, 0], sizes = [64, 128], strides = [1, 1]} : vector<128x256xbf16> to vector<64x128xbf16>
    %38 = tpu.concatenate %36, %27, %37 in 1 : vector<64x128xbf16>, vector<64x128xbf16>, vector<64x128xbf16> -> vector<64x384xbf16>
    %39 = vector.extract_strided_slice %35 {offsets = [0, 128], sizes = [64, 128], strides = [1, 1]} : vector<128x256xbf16> to vector<64x128xbf16>
    %40 = vector.extract_strided_slice %35 {offsets = [64, 128], sizes = [64, 128], strides = [1, 1]} : vector<128x256xbf16> to vector<64x128xbf16>
    %41 = tpu.concatenate %39, %30, %40 in 1 : vector<64x128xbf16>, vector<64x128xbf16>, vector<64x128xbf16> -> vector<64x384xbf16>
    %42 = tpu.concatenate %38, %41, %38 in 1 : vector<64x384xbf16>, vector<64x384xbf16>, vector<64x384xbf16> -> vector<64x1152xbf16>
    %c1_16 = arith.constant 1 : index
    %c0_17 = arith.constant 0 : index
    %c0_18 = arith.constant 0 : index
    %43 = vector.load %arg3[%c1_16, %c0_17, %c0_18] : memref<7x1152x128xbf16, #tpu.memory_space<vmem>>, vector<1x1152x128xbf16>
    %44 = vector.shape_cast %43 : vector<1x1152x128xbf16> to vector<1152x128xbf16>
    %cst_19 = arith.constant dense<0.000000e+00> : vector<64x128xf32>
    %45 = tpu.matmul %42, %44, %cst_19 {dimension_numbers = #tpu.dot_dimension_numbers<[1], [0], [0], [1], [0, 0, 1, 1], [], []>} : vector<64x1152xbf16>, vector<1152x128xbf16>, vector<64x128xf32> -> vector<64x128xf32>
    %c1_20 = arith.constant 1 : index
    %c0_21 = arith.constant 0 : index
    %c0_22 = arith.constant 0 : index
    %46 = vector.load %arg5[%c1_20, %c0_21, %c0_22] : memref<8x1x128xf32, #tpu.memory_space<vmem>>, vector<1x1x128xf32>
    %47 = vector.shape_cast %46 : vector<1x1x128xf32> to vector<1x128xf32>
    %48 = vector.broadcast %47 : vector<1x128xf32> to vector<64x128xf32>
    %49 = arith.addf %45, %48 : vector<64x128xf32>
    %cst_23 = arith.constant 0.000000e+00 : f32
    %50 = vector.broadcast %cst_23 : f32 to vector<64x128xf32>
    %51 = arith.maximumf %49, %50 : vector<64x128xf32>
    %52 = arith.truncf %51 : vector<64x128xf32> to vector<64x128xbf16>
    %53 = arith.extf %52 : vector<64x128xbf16> to vector<64x128xf32>
    %54 = arith.subf %51, %53 : vector<64x128xf32>
    %55 = arith.truncf %54 : vector<64x128xf32> to vector<64x128xbf16>
    %c2 = arith.constant 2 : index
    %c0_24 = arith.constant 0 : index
    %c0_25 = arith.constant 0 : index
    %56 = vector.load %arg2[%c2, %c0_24, %c0_25] : memref<7x128x64xbf16, #tpu.memory_space<vmem>>, vector<1x128x64xbf16>
    %57 = vector.shape_cast %56 : vector<1x128x64xbf16> to vector<128x64xbf16>
    %58 = tpu.concatenate %52, %55 in 1 : vector<64x128xbf16>, vector<64x128xbf16> -> vector<64x256xbf16>
    %cst_26 = arith.constant dense<0.000000e+00> : vector<128x256xf32>
    %59 = tpu.matmul %57, %58, %cst_26 {dimension_numbers = #tpu.dot_dimension_numbers<[1], [0], [0], [1], [0, 0, 1, 1], [], []>} : vector<128x64xbf16>, vector<64x256xbf16>, vector<128x256xf32> -> vector<128x256xf32>
    %60 = arith.truncf %59 : vector<128x256xf32> to vector<128x256xbf16>
    %61 = vector.extract_strided_slice %60 {offsets = [0, 0], sizes = [64, 128], strides = [1, 1]} : vector<128x256xbf16> to vector<64x128xbf16>
    %62 = vector.extract_strided_slice %60 {offsets = [64, 0], sizes = [64, 128], strides = [1, 1]} : vector<128x256xbf16> to vector<64x128xbf16>
    %63 = tpu.concatenate %61, %52, %62 in 1 : vector<64x128xbf16>, vector<64x128xbf16>, vector<64x128xbf16> -> vector<64x384xbf16>
    %64 = vector.extract_strided_slice %60 {offsets = [0, 128], sizes = [64, 128], strides = [1, 1]} : vector<128x256xbf16> to vector<64x128xbf16>
    %65 = vector.extract_strided_slice %60 {offsets = [64, 128], sizes = [64, 128], strides = [1, 1]} : vector<128x256xbf16> to vector<64x128xbf16>
    %66 = tpu.concatenate %64, %55, %65 in 1 : vector<64x128xbf16>, vector<64x128xbf16>, vector<64x128xbf16> -> vector<64x384xbf16>
    %67 = tpu.concatenate %63, %66, %63 in 1 : vector<64x384xbf16>, vector<64x384xbf16>, vector<64x384xbf16> -> vector<64x1152xbf16>
    %c2_27 = arith.constant 2 : index
    %c0_28 = arith.constant 0 : index
    %c0_29 = arith.constant 0 : index
    %68 = vector.load %arg3[%c2_27, %c0_28, %c0_29] : memref<7x1152x128xbf16, #tpu.memory_space<vmem>>, vector<1x1152x128xbf16>
    %69 = vector.shape_cast %68 : vector<1x1152x128xbf16> to vector<1152x128xbf16>
    %cst_30 = arith.constant dense<0.000000e+00> : vector<64x128xf32>
    %70 = tpu.matmul %67, %69, %cst_30 {dimension_numbers = #tpu.dot_dimension_numbers<[1], [0], [0], [1], [0, 0, 1, 1], [], []>} : vector<64x1152xbf16>, vector<1152x128xbf16>, vector<64x128xf32> -> vector<64x128xf32>
    %c2_31 = arith.constant 2 : index
    %c0_32 = arith.constant 0 : index
    %c0_33 = arith.constant 0 : index
    %71 = vector.load %arg5[%c2_31, %c0_32, %c0_33] : memref<8x1x128xf32, #tpu.memory_space<vmem>>, vector<1x1x128xf32>
    %72 = vector.shape_cast %71 : vector<1x1x128xf32> to vector<1x128xf32>
    %73 = vector.broadcast %72 : vector<1x128xf32> to vector<64x128xf32>
    %74 = arith.addf %70, %73 : vector<64x128xf32>
    %cst_34 = arith.constant 0.000000e+00 : f32
    %75 = vector.broadcast %cst_34 : f32 to vector<64x128xf32>
    %76 = arith.maximumf %74, %75 : vector<64x128xf32>
    %77 = arith.truncf %76 : vector<64x128xf32> to vector<64x128xbf16>
    %78 = arith.extf %77 : vector<64x128xbf16> to vector<64x128xf32>
    %79 = arith.subf %76, %78 : vector<64x128xf32>
    %80 = arith.truncf %79 : vector<64x128xf32> to vector<64x128xbf16>
    %c3 = arith.constant 3 : index
    %c0_35 = arith.constant 0 : index
    %c0_36 = arith.constant 0 : index
    %81 = vector.load %arg2[%c3, %c0_35, %c0_36] : memref<7x128x64xbf16, #tpu.memory_space<vmem>>, vector<1x128x64xbf16>
    %82 = vector.shape_cast %81 : vector<1x128x64xbf16> to vector<128x64xbf16>
    %83 = tpu.concatenate %77, %80 in 1 : vector<64x128xbf16>, vector<64x128xbf16> -> vector<64x256xbf16>
    %cst_37 = arith.constant dense<0.000000e+00> : vector<128x256xf32>
    %84 = tpu.matmul %82, %83, %cst_37 {dimension_numbers = #tpu.dot_dimension_numbers<[1], [0], [0], [1], [0, 0, 1, 1], [], []>} : vector<128x64xbf16>, vector<64x256xbf16>, vector<128x256xf32> -> vector<128x256xf32>
    %85 = arith.truncf %84 : vector<128x256xf32> to vector<128x256xbf16>
    %86 = vector.extract_strided_slice %85 {offsets = [0, 0], sizes = [64, 128], strides = [1, 1]} : vector<128x256xbf16> to vector<64x128xbf16>
    %87 = vector.extract_strided_slice %85 {offsets = [64, 0], sizes = [64, 128], strides = [1, 1]} : vector<128x256xbf16> to vector<64x128xbf16>
    %88 = tpu.concatenate %86, %77, %87 in 1 : vector<64x128xbf16>, vector<64x128xbf16>, vector<64x128xbf16> -> vector<64x384xbf16>
    %89 = vector.extract_strided_slice %85 {offsets = [0, 128], sizes = [64, 128], strides = [1, 1]} : vector<128x256xbf16> to vector<64x128xbf16>
    %90 = vector.extract_strided_slice %85 {offsets = [64, 128], sizes = [64, 128], strides = [1, 1]} : vector<128x256xbf16> to vector<64x128xbf16>
    %91 = tpu.concatenate %89, %80, %90 in 1 : vector<64x128xbf16>, vector<64x128xbf16>, vector<64x128xbf16> -> vector<64x384xbf16>
    %92 = tpu.concatenate %88, %91, %88 in 1 : vector<64x384xbf16>, vector<64x384xbf16>, vector<64x384xbf16> -> vector<64x1152xbf16>
    %c3_38 = arith.constant 3 : index
    %c0_39 = arith.constant 0 : index
    %c0_40 = arith.constant 0 : index
    %93 = vector.load %arg3[%c3_38, %c0_39, %c0_40] : memref<7x1152x128xbf16, #tpu.memory_space<vmem>>, vector<1x1152x128xbf16>
    %94 = vector.shape_cast %93 : vector<1x1152x128xbf16> to vector<1152x128xbf16>
    %cst_41 = arith.constant dense<0.000000e+00> : vector<64x128xf32>
    %95 = tpu.matmul %92, %94, %cst_41 {dimension_numbers = #tpu.dot_dimension_numbers<[1], [0], [0], [1], [0, 0, 1, 1], [], []>} : vector<64x1152xbf16>, vector<1152x128xbf16>, vector<64x128xf32> -> vector<64x128xf32>
    %c3_42 = arith.constant 3 : index
    %c0_43 = arith.constant 0 : index
    %c0_44 = arith.constant 0 : index
    %96 = vector.load %arg5[%c3_42, %c0_43, %c0_44] : memref<8x1x128xf32, #tpu.memory_space<vmem>>, vector<1x1x128xf32>
    %97 = vector.shape_cast %96 : vector<1x1x128xf32> to vector<1x128xf32>
    %98 = vector.broadcast %97 : vector<1x128xf32> to vector<64x128xf32>
    %99 = arith.addf %95, %98 : vector<64x128xf32>
    %cst_45 = arith.constant 0.000000e+00 : f32
    %100 = vector.broadcast %cst_45 : f32 to vector<64x128xf32>
    %101 = arith.maximumf %99, %100 : vector<64x128xf32>
    %102 = arith.truncf %101 : vector<64x128xf32> to vector<64x128xbf16>
    %103 = arith.extf %102 : vector<64x128xbf16> to vector<64x128xf32>
    %104 = arith.subf %101, %103 : vector<64x128xf32>
    %105 = arith.truncf %104 : vector<64x128xf32> to vector<64x128xbf16>
    %c4 = arith.constant 4 : index
    %c0_46 = arith.constant 0 : index
    %c0_47 = arith.constant 0 : index
    %106 = vector.load %arg2[%c4, %c0_46, %c0_47] : memref<7x128x64xbf16, #tpu.memory_space<vmem>>, vector<1x128x64xbf16>
    %107 = vector.shape_cast %106 : vector<1x128x64xbf16> to vector<128x64xbf16>
    %108 = tpu.concatenate %102, %105 in 1 : vector<64x128xbf16>, vector<64x128xbf16> -> vector<64x256xbf16>
    %cst_48 = arith.constant dense<0.000000e+00> : vector<128x256xf32>
    %109 = tpu.matmul %107, %108, %cst_48 {dimension_numbers = #tpu.dot_dimension_numbers<[1], [0], [0], [1], [0, 0, 1, 1], [], []>} : vector<128x64xbf16>, vector<64x256xbf16>, vector<128x256xf32> -> vector<128x256xf32>
    %110 = arith.truncf %109 : vector<128x256xf32> to vector<128x256xbf16>
    %111 = vector.extract_strided_slice %110 {offsets = [0, 0], sizes = [64, 128], strides = [1, 1]} : vector<128x256xbf16> to vector<64x128xbf16>
    %112 = vector.extract_strided_slice %110 {offsets = [64, 0], sizes = [64, 128], strides = [1, 1]} : vector<128x256xbf16> to vector<64x128xbf16>
    %113 = tpu.concatenate %111, %102, %112 in 1 : vector<64x128xbf16>, vector<64x128xbf16>, vector<64x128xbf16> -> vector<64x384xbf16>
    %114 = vector.extract_strided_slice %110 {offsets = [0, 128], sizes = [64, 128], strides = [1, 1]} : vector<128x256xbf16> to vector<64x128xbf16>
    %115 = vector.extract_strided_slice %110 {offsets = [64, 128], sizes = [64, 128], strides = [1, 1]} : vector<128x256xbf16> to vector<64x128xbf16>
    %116 = tpu.concatenate %114, %105, %115 in 1 : vector<64x128xbf16>, vector<64x128xbf16>, vector<64x128xbf16> -> vector<64x384xbf16>
    %117 = tpu.concatenate %113, %116, %113 in 1 : vector<64x384xbf16>, vector<64x384xbf16>, vector<64x384xbf16> -> vector<64x1152xbf16>
    %c4_49 = arith.constant 4 : index
    %c0_50 = arith.constant 0 : index
    %c0_51 = arith.constant 0 : index
    %118 = vector.load %arg3[%c4_49, %c0_50, %c0_51] : memref<7x1152x128xbf16, #tpu.memory_space<vmem>>, vector<1x1152x128xbf16>
    %119 = vector.shape_cast %118 : vector<1x1152x128xbf16> to vector<1152x128xbf16>
    %cst_52 = arith.constant dense<0.000000e+00> : vector<64x128xf32>
    %120 = tpu.matmul %117, %119, %cst_52 {dimension_numbers = #tpu.dot_dimension_numbers<[1], [0], [0], [1], [0, 0, 1, 1], [], []>} : vector<64x1152xbf16>, vector<1152x128xbf16>, vector<64x128xf32> -> vector<64x128xf32>
    %c4_53 = arith.constant 4 : index
    %c0_54 = arith.constant 0 : index
    %c0_55 = arith.constant 0 : index
    %121 = vector.load %arg5[%c4_53, %c0_54, %c0_55] : memref<8x1x128xf32, #tpu.memory_space<vmem>>, vector<1x1x128xf32>
    %122 = vector.shape_cast %121 : vector<1x1x128xf32> to vector<1x128xf32>
    %123 = vector.broadcast %122 : vector<1x128xf32> to vector<64x128xf32>
    %124 = arith.addf %120, %123 : vector<64x128xf32>
    %cst_56 = arith.constant 0.000000e+00 : f32
    %125 = vector.broadcast %cst_56 : f32 to vector<64x128xf32>
    %126 = arith.maximumf %124, %125 : vector<64x128xf32>
    %127 = arith.truncf %126 : vector<64x128xf32> to vector<64x128xbf16>
    %128 = arith.extf %127 : vector<64x128xbf16> to vector<64x128xf32>
    %129 = arith.subf %126, %128 : vector<64x128xf32>
    %130 = arith.truncf %129 : vector<64x128xf32> to vector<64x128xbf16>
    %c5 = arith.constant 5 : index
    %c0_57 = arith.constant 0 : index
    %c0_58 = arith.constant 0 : index
    %131 = vector.load %arg2[%c5, %c0_57, %c0_58] : memref<7x128x64xbf16, #tpu.memory_space<vmem>>, vector<1x128x64xbf16>
    %132 = vector.shape_cast %131 : vector<1x128x64xbf16> to vector<128x64xbf16>
    %133 = tpu.concatenate %127, %130 in 1 : vector<64x128xbf16>, vector<64x128xbf16> -> vector<64x256xbf16>
    %cst_59 = arith.constant dense<0.000000e+00> : vector<128x256xf32>
    %134 = tpu.matmul %132, %133, %cst_59 {dimension_numbers = #tpu.dot_dimension_numbers<[1], [0], [0], [1], [0, 0, 1, 1], [], []>} : vector<128x64xbf16>, vector<64x256xbf16>, vector<128x256xf32> -> vector<128x256xf32>
    %135 = arith.truncf %134 : vector<128x256xf32> to vector<128x256xbf16>
    %136 = vector.extract_strided_slice %135 {offsets = [0, 0], sizes = [64, 128], strides = [1, 1]} : vector<128x256xbf16> to vector<64x128xbf16>
    %137 = vector.extract_strided_slice %135 {offsets = [64, 0], sizes = [64, 128], strides = [1, 1]} : vector<128x256xbf16> to vector<64x128xbf16>
    %138 = tpu.concatenate %136, %127, %137 in 1 : vector<64x128xbf16>, vector<64x128xbf16>, vector<64x128xbf16> -> vector<64x384xbf16>
    %139 = vector.extract_strided_slice %135 {offsets = [0, 128], sizes = [64, 128], strides = [1, 1]} : vector<128x256xbf16> to vector<64x128xbf16>
    %140 = vector.extract_strided_slice %135 {offsets = [64, 128], sizes = [64, 128], strides = [1, 1]} : vector<128x256xbf16> to vector<64x128xbf16>
    %141 = tpu.concatenate %139, %130, %140 in 1 : vector<64x128xbf16>, vector<64x128xbf16>, vector<64x128xbf16> -> vector<64x384xbf16>
    %142 = tpu.concatenate %138, %141, %138 in 1 : vector<64x384xbf16>, vector<64x384xbf16>, vector<64x384xbf16> -> vector<64x1152xbf16>
    %c5_60 = arith.constant 5 : index
    %c0_61 = arith.constant 0 : index
    %c0_62 = arith.constant 0 : index
    %143 = vector.load %arg3[%c5_60, %c0_61, %c0_62] : memref<7x1152x128xbf16, #tpu.memory_space<vmem>>, vector<1x1152x128xbf16>
    %144 = vector.shape_cast %143 : vector<1x1152x128xbf16> to vector<1152x128xbf16>
    %cst_63 = arith.constant dense<0.000000e+00> : vector<64x128xf32>
    %145 = tpu.matmul %142, %144, %cst_63 {dimension_numbers = #tpu.dot_dimension_numbers<[1], [0], [0], [1], [0, 0, 1, 1], [], []>} : vector<64x1152xbf16>, vector<1152x128xbf16>, vector<64x128xf32> -> vector<64x128xf32>
    %c5_64 = arith.constant 5 : index
    %c0_65 = arith.constant 0 : index
    %c0_66 = arith.constant 0 : index
    %146 = vector.load %arg5[%c5_64, %c0_65, %c0_66] : memref<8x1x128xf32, #tpu.memory_space<vmem>>, vector<1x1x128xf32>
    %147 = vector.shape_cast %146 : vector<1x1x128xf32> to vector<1x128xf32>
    %148 = vector.broadcast %147 : vector<1x128xf32> to vector<64x128xf32>
    %149 = arith.addf %145, %148 : vector<64x128xf32>
    %cst_67 = arith.constant 0.000000e+00 : f32
    %150 = vector.broadcast %cst_67 : f32 to vector<64x128xf32>
    %151 = arith.maximumf %149, %150 : vector<64x128xf32>
    %152 = arith.truncf %151 : vector<64x128xf32> to vector<64x128xbf16>
    %153 = arith.extf %152 : vector<64x128xbf16> to vector<64x128xf32>
    %154 = arith.subf %151, %153 : vector<64x128xf32>
    %155 = arith.truncf %154 : vector<64x128xf32> to vector<64x128xbf16>
    %c6 = arith.constant 6 : index
    %c0_68 = arith.constant 0 : index
    %c0_69 = arith.constant 0 : index
    %156 = vector.load %arg2[%c6, %c0_68, %c0_69] : memref<7x128x64xbf16, #tpu.memory_space<vmem>>, vector<1x128x64xbf16>
    %157 = vector.shape_cast %156 : vector<1x128x64xbf16> to vector<128x64xbf16>
    %158 = tpu.concatenate %152, %155 in 1 : vector<64x128xbf16>, vector<64x128xbf16> -> vector<64x256xbf16>
    %cst_70 = arith.constant dense<0.000000e+00> : vector<128x256xf32>
    %159 = tpu.matmul %157, %158, %cst_70 {dimension_numbers = #tpu.dot_dimension_numbers<[1], [0], [0], [1], [0, 0, 1, 1], [], []>} : vector<128x64xbf16>, vector<64x256xbf16>, vector<128x256xf32> -> vector<128x256xf32>
    %160 = arith.truncf %159 : vector<128x256xf32> to vector<128x256xbf16>
    %161 = vector.extract_strided_slice %160 {offsets = [0, 0], sizes = [64, 128], strides = [1, 1]} : vector<128x256xbf16> to vector<64x128xbf16>
    %162 = vector.extract_strided_slice %160 {offsets = [64, 0], sizes = [64, 128], strides = [1, 1]} : vector<128x256xbf16> to vector<64x128xbf16>
    %163 = tpu.concatenate %161, %152, %162 in 1 : vector<64x128xbf16>, vector<64x128xbf16>, vector<64x128xbf16> -> vector<64x384xbf16>
    %164 = vector.extract_strided_slice %160 {offsets = [0, 128], sizes = [64, 128], strides = [1, 1]} : vector<128x256xbf16> to vector<64x128xbf16>
    %165 = vector.extract_strided_slice %160 {offsets = [64, 128], sizes = [64, 128], strides = [1, 1]} : vector<128x256xbf16> to vector<64x128xbf16>
    %166 = tpu.concatenate %164, %155, %165 in 1 : vector<64x128xbf16>, vector<64x128xbf16>, vector<64x128xbf16> -> vector<64x384xbf16>
    %167 = tpu.concatenate %163, %166, %163 in 1 : vector<64x384xbf16>, vector<64x384xbf16>, vector<64x384xbf16> -> vector<64x1152xbf16>
    %c6_71 = arith.constant 6 : index
    %c0_72 = arith.constant 0 : index
    %c0_73 = arith.constant 0 : index
    %168 = vector.load %arg3[%c6_71, %c0_72, %c0_73] : memref<7x1152x128xbf16, #tpu.memory_space<vmem>>, vector<1x1152x128xbf16>
    %169 = vector.shape_cast %168 : vector<1x1152x128xbf16> to vector<1152x128xbf16>
    %cst_74 = arith.constant dense<0.000000e+00> : vector<64x128xf32>
    %170 = tpu.matmul %167, %169, %cst_74 {dimension_numbers = #tpu.dot_dimension_numbers<[1], [0], [0], [1], [0, 0, 1, 1], [], []>} : vector<64x1152xbf16>, vector<1152x128xbf16>, vector<64x128xf32> -> vector<64x128xf32>
    %c6_75 = arith.constant 6 : index
    %c0_76 = arith.constant 0 : index
    %c0_77 = arith.constant 0 : index
    %171 = vector.load %arg5[%c6_75, %c0_76, %c0_77] : memref<8x1x128xf32, #tpu.memory_space<vmem>>, vector<1x1x128xf32>
    %172 = vector.shape_cast %171 : vector<1x1x128xf32> to vector<1x128xf32>
    %173 = vector.broadcast %172 : vector<1x128xf32> to vector<64x128xf32>
    %174 = arith.addf %170, %173 : vector<64x128xf32>
    %cst_78 = arith.constant 0.000000e+00 : f32
    %175 = vector.broadcast %cst_78 : f32 to vector<64x128xf32>
    %176 = arith.maximumf %174, %175 : vector<64x128xf32>
    %177 = arith.truncf %176 : vector<64x128xf32> to vector<64x128xbf16>
    %178 = arith.extf %177 : vector<64x128xbf16> to vector<64x128xf32>
    %179 = arith.subf %176, %178 : vector<64x128xf32>
    %180 = arith.truncf %179 : vector<64x128xf32> to vector<64x128xbf16>
    %181 = tpu.concatenate %177, %180, %177 in 1 : vector<64x128xbf16>, vector<64x128xbf16>, vector<64x128xbf16> -> vector<64x384xbf16>
    %c0_79 = arith.constant 0 : index
    %c0_80 = arith.constant 0 : index
    %182 = vector.load %arg4[%c0_79, %c0_80] : memref<384x128xbf16, #tpu.memory_space<vmem>>, vector<384x128xbf16>
    %cst_81 = arith.constant dense<0.000000e+00> : vector<64x128xf32>
    %183 = tpu.matmul %181, %182, %cst_81 {dimension_numbers = #tpu.dot_dimension_numbers<[1], [0], [0], [1], [0, 0, 1, 1], [], []>} : vector<64x384xbf16>, vector<384x128xbf16>, vector<64x128xf32> -> vector<64x128xf32>
    %c7 = arith.constant 7 : index
    %c0_82 = arith.constant 0 : index
    %c0_83 = arith.constant 0 : index
    %184 = vector.load %arg5[%c7, %c0_82, %c0_83] : memref<8x1x128xf32, #tpu.memory_space<vmem>>, vector<1x1x128xf32>
    %185 = vector.shape_cast %184 : vector<1x1x128xf32> to vector<1x128xf32>
    %186 = vector.broadcast %185 : vector<1x128xf32> to vector<64x128xf32>
    %187 = arith.addf %183, %186 : vector<64x128xf32>
    %cst_84 = arith.constant 0.000000e+00 : f32
    %188 = vector.broadcast %cst_84 : f32 to vector<64x128xf32>
    %189 = arith.maximumf %187, %188 : vector<64x128xf32>
    %c0_85 = arith.constant 0 : index
    %c0_86 = arith.constant 0 : index
    %c0_87 = arith.constant 0 : index
    %190 = vector.load %arg6[%c0_85, %c0_86, %c0_87] : memref<1x64x128xf32, #tpu.memory_space<vmem>>, vector<1x64x128xf32>
    %191 = vector.shape_cast %190 : vector<1x64x128xf32> to vector<64x128xf32>
    %192 = vector.shape_cast %189 : vector<64x128xf32> to vector<1x64x128xf32>
    tpu.vector_store %arg6[%c0_85, %c0_86, %c0_87], %192 {strides = array<i32>} : memref<1x64x128xf32, #tpu.memory_space<vmem>>, vector<1x64x128xf32>,
    return
  }
  func.func @transform_0(%arg0: i32) -> (i32, i32, i32) {
    %c0_i32 = arith.constant 0 : i32
    %c0_i32_0 = arith.constant 0 : i32
    %c0_i32_1 = arith.constant 0 : i32
    return %arg0, %c0_i32, %c0_i32_0 : i32, i32, i32
  }
  func.func @transform_1(%arg0: i32) -> (i32, i32, i32) {
    %c0_i32 = arith.constant 0 : i32
    %c0_i32_0 = arith.constant 0 : i32
    %c0_i32_1 = arith.constant 0 : i32
    %c0_i32_2 = arith.constant 0 : i32
    return %c0_i32, %c0_i32_0, %c0_i32_1 : i32, i32, i32
  }
  func.func @transform_2(%arg0: i32) -> (i32, i32, i32) {
    %c0_i32 = arith.constant 0 : i32
    %c0_i32_0 = arith.constant 0 : i32
    %c0_i32_1 = arith.constant 0 : i32
    %c0_i32_2 = arith.constant 0 : i32
    return %c0_i32, %c0_i32_0, %c0_i32_1 : i32, i32, i32
  }
  func.func @transform_3(%arg0: i32) -> (i32, i32) {
    %c0_i32 = arith.constant 0 : i32
    %c0_i32_0 = arith.constant 0 : i32
    %c0_i32_1 = arith.constant 0 : i32
    return %c0_i32, %c0_i32_0 : i32, i32
  }
  func.func @transform_4(%arg0: i32) -> (i32, i32, i32) {
    %c0_i32 = arith.constant 0 : i32
    %c0_i32_0 = arith.constant 0 : i32
    %c0_i32_1 = arith.constant 0 : i32
    %c0_i32_2 = arith.constant 0 : i32
    return %c0_i32, %c0_i32_0, %c0_i32_1 : i32, i32, i32
  }
  func.func @transform_5(%arg0: i32) -> (i32, i32, i32) {
    %c0_i32 = arith.constant 0 : i32
    %c0_i32_0 = arith.constant 0 : i32
    %c0_i32_1 = arith.constant 0 : i32
    return %arg0, %c0_i32, %c0_i32_0 : i32, i32, i32
  }
}

</mosaic_0001>

<bundles_post_ra>
// kernel: context_forward.1
= control target key start
LH: loop header
LB: loop body
LE: loop exit
PB: predicated region body
PF: predicated region fallthrough
CT: control target
= control target key end

     0   :  { %10 = vsyncpa [#allocation3], 0  ;;  %s12657_s0 = inlined_call_operand.vmem [shape: f32[1,64,128], index: 0, kind: input, shape index: {}]   ;;  %s12658_s1 = inlined_call_operand.vmem [shape: bf16[7,128,64], index: 1, kind: input, shape index: {}]   ;;  %s12659_s2 = inlined_call_operand.hbm [shape: bf16[7,1152,128], index: 2, kind: input, shape index: {}]   ;;  %s12660_s3 = inlined_call_operand.hbm [shape: bf16[384,128], index: 3, kind: input, shape index: {}]   ;;  %s12661_s4 = inlined_call_operand.hbm [shape: f32[8,1,128], index: 4, kind: input, shape index: {}]   ;;  %s12662_s5 = inlined_call_operand.vmem [shape: f32[1,64,128], index: 5, kind: output, shape index: {}]  }
   0x1   :  { %11 = vsyncpa [#allocation5], 0  ;;  %s11362_s18 = smov [#allocation4]   ;;  %s11363_s20 = smov [#allocation2]  }
   0x2   :  { %s33_s19 = sshll.u32 %s11362_s18, 4  ;;  %s21_s21 = sshll.u32 %s11363_s20, 4  ;;  %s34_s19 = int_to_ptr.vmem [resolvable:$true] %s33_s19  ;;  %s11400_s21 = int_to_ptr.vmem [resolvable:$true] %s21_s21 }
   0x3   :  { %s11292_s24 = scalar_lea.hbm %s12660_s3, 3072 }
   0x4   :  { %p11293_p0 = scmp.ne.s32.totalorder %s12660_s3, %s11292_s24  ;;  %p11296_p1 = scmp.lt.u32.totalorder %s11292_s24, %s12660_s3 }
   0x6   :  { %p11298_p2 = pnand %p11296_p1, %p11293_p0 }
   0x8   :  { %11301 = shalt.err (!%p11298_p2)
}
   0x9   :  { %s11302_s29 = scalar_lea.vmem %s34_s19, 3072  ;;  %p11307_p4 = scmp.lt.s32.totalorder %s34_s19, %s34_s19 }
   0xa   :  { %p11303_p3 = scmp.ne.s32.totalorder %s34_s19, %s11302_s29  ;;  %p11308_p5 = scmp.lt.s32.totalorder %s11302_s29, %s11302_s29 }
   0xc   :  { %p11309_p6 = por %p11308_p5, %p11307_p4 }
   0xe   :  { %p11310_p7 = pnand %p11309_p6, %p11303_p3 }
  0x10   :  { %11313 = shalt.err (!%p11310_p7)
}
  0x11   :  { %s11364_s30 = smov 64   ;;  %s11365_s6 = smov 4  }
  0x12   :  { %39 = dma.hbm_to_vmem [thread:$0]  %s12660_s3, 3072, %s34_s19, [#allocation5], %s11364_s30, %s11364_s30, %s11365_s6  }
  0x13   :  { %s11314_s11 = scalar_lea.hbm %s12659_s2, 64512 }
  0x14   :  { %p11315_p8 = scmp.ne.s32.totalorder %s12659_s2, %s11314_s11  ;;  %p11318_p9 = scmp.lt.u32.totalorder %s11314_s11, %s12659_s2 }
  0x16   :  { %p11320_p10 = pnand %p11318_p9, %p11315_p8 }
  0x18   :  { %11323 = shalt.err (!%p11320_p10)
}
  0x19   :  { %s11324_s16 = scalar_lea.vmem %s11400_s21, 64512  ;;  %p11329_p12 = scmp.lt.s32.totalorder %s11400_s21, %s11400_s21 }
  0x1a   :  { %p11325_p11 = scmp.ne.s32.totalorder %s11400_s21, %s11324_s16  ;;  %p11330_p13 = scmp.lt.s32.totalorder %s11324_s16, %s11324_s16 }
  0x1c   :  { %p11331_p0 = por %p11330_p13, %p11329_p12 }
  0x1e   :  { %p11332_p1 = pnand %p11331_p0, %p11325_p11 }
  0x20   :  { %11335 = shalt.err (!%p11332_p1)
}
  0x21   :  { %27 = dma.hbm_to_vmem [thread:$0]  %s12659_s2, 64512, %s11400_s21, [#allocation3], %s11364_s30, %s11364_s30, %s11365_s6  }
  0x22   :  { %s11366_s18 = smov [#allocation6]   ;;  %s11336_s23 = scalar_lea.hbm %s12661_s4, 128 }
  0x23   :  { %s45_s19 = sshll.u32 %s11366_s18, 4  ;;  %p11337_p2 = scmp.ne.s32.totalorder %s12661_s4, %s11336_s23  ;;  %s46_s19 = int_to_ptr.vmem [resolvable:$true] %s45_s19 }
  0x24   :  { %p11340_p3 = scmp.lt.u32.totalorder %s11336_s23, %s12661_s4 }
  0x26   :  { %p11342_p4 = pnand %p11340_p3, %p11337_p2 }
  0x28   :  { %11345 = shalt.err (!%p11342_p4)
}
  0x29   :  { %s11346_s28 = scalar_lea.vmem %s46_s19, 128  ;;  %p11351_p6 = scmp.lt.s32.totalorder %s46_s19, %s46_s19 }
  0x2a   :  { %p11347_p5 = scmp.ne.s32.totalorder %s46_s19, %s11346_s28  ;;  %p11352_p7 = scmp.lt.s32.totalorder %s11346_s28, %s11346_s28 }
  0x2c   :  { %p11353_p8 = por %p11352_p7, %p11351_p6 }
  0x2e   :  { %p11354_p9 = pnand %p11353_p8, %p11347_p5 }
  0x30   :  { %11357 = shalt.err (!%p11354_p9)
}
  0x31   :  { %s11367_s2 = smov 16   ;;  %s11368_s21 = smov 1  }
  0x32   :  { %51 = dma.hbm_to_vmem [thread:$0]  %s12661_s4, 128, %s46_s19, [#allocation5], %s11367_s2, %s11367_s2, %s11368_s21  }
  0x33   :  { %11358 = dma.done.wait [#allocation3], 64512  }
  0x34   :  { %11359 = vsyncadd [#allocation3], 4294902784 }
  0x35   :  { %11360 = dma.done.wait [#allocation5], 3200  }
  0x36   :  { %11361 = vsyncadd [#allocation5], 4294964096  ;;  %v11369_v0 = vmov 0   ;;  %v62_v1 = vld [vmem:[%s12657_s0] sm:$0xff]  ;;  %v63_v2 = vld [vmem:[%s12657_s0 + $0x8] sm:$0xff]  ;;  %vm150_vm0 = vcmask 523264  }
  0x37   :  { %207 = vmatprep.mubr.bf16.mxu0 %v11369_v0  ;;  %v64_v3 = vld [vmem:[%s12657_s0 + $0x10] sm:$0xff]  ;;  %v11453_v4 = vpack.c.bf16 %v63_v2, %v62_v1  ;;  %v65_v5 = vld [vmem:[%s12657_s0 + $0x18] sm:$0xff]  ;;  %v66_v6 = vld [vmem:[%s12657_s0 + $0x20] sm:$0xff] }
  0x38   :  { %v67_v7 = vld [vmem:[%s12657_s0 + $0x28] sm:$0xff]  ;;  %v11464_v8 = vpack.c.bf16 %v65_v5, %v64_v3  ;;  %v68_v10 = vld [vmem:[%s12657_s0 + $0x30] sm:$0xff]  ;;  %v69_v11 = vld [vmem:[%s12657_s0 + $0x38] sm:$0xff] }
  0x39   :  { %v11466_v9 = vpack.c.bf16 %v67_v7, %v66_v6  ;;  %v74_v12 = vunpack.c.l.bf16 %v11453_v4  ;;  %v75_v13 = vunpack.c.h.bf16 %v11453_v4  ;;  %v11476_v14 = vpack.c.bf16 %v69_v11, %v68_v10  ;;  %919 = vmatprep.mubr.bf16.mxu1 %v11453_v4  ;;  %v10716_v32 = vld [vmem:[#allocation2 + $0x40] sm:$0xff]   ;;  %v10718_v34 = vld [vmem:[#allocation2 + $0x48] sm:$0xff]   ;;  %v10720_v37 = vld [vmem:[#allocation2 + $0x50] sm:$0xff]  }
  0x3a   :  { %v76_v15 = vunpack.c.l.bf16 %v11464_v8  ;;  %v77_v16 = vunpack.c.h.bf16 %v11464_v8  ;;  %v10717_v33 = vld [vmem:[#allocation2] sm:$0xff]   ;;  %9252 = vmatprep.subr.bf16.mxu1 %v10716_v32  ;;  %v10719_v35 = vld [vmem:[#allocation2 + $0x8] sm:$0xff]   ;;  %v10721_v38 = vld [vmem:[#allocation2 + $0x10] sm:$0xff]  }
  0x3b   :  { %v78_v17 = vunpack.c.l.bf16 %v11466_v9  ;;  %v79_v18 = vunpack.c.h.bf16 %v11466_v9  ;;  %v82_v19 = vsub.f32 %v62_v1, %v74_v12  ;;  %v83_v20 = vsub.f32 %v63_v2, %v75_v13  ;;  %9253 = vmatpush3.bf16.msra.mxu1 %v10717_v33  ;;  %v10722_v39 = vld [vmem:[#allocation2 + $0x58] sm:$0xff]   ;;  %v10708_v40 = vld [vmem:[%s12658_s1] sm:$0xff]   ;;  %v10726_v46 = vld [vmem:[#allocation2 + $0x68] sm:$0xff]  }
  0x3c   :  { %v84_v21 = vsub.f32 %v64_v3, %v76_v15  ;;  %v85_v22 = vsub.f32 %v65_v5, %v77_v16  ;;  %v80_v23 = vunpack.c.l.bf16 %v11476_v14  ;;  %v81_v27 = vunpack.c.h.bf16 %v11476_v14  ;;  %9254 = vmatprep.subr.bf16.mxu1 %v10718_v34  ;;  %v10723_v41 = vld [vmem:[#allocation2 + $0x18] sm:$0xff]   ;;  %v10727_v42 = vld [vmem:[#allocation2 + $0x140] sm:$0xff]   ;;  %v10709_v47 = vld [vmem:[%s12658_s1 + $0x8] sm:$0xff]  }
  0x3d   :  { %v11484_v24 = vpack.c.bf16 %v83_v20, %v82_v19  ;;  %v86_v25 = vsub.f32 %v66_v6, %v78_v17  ;;  %v87_v26 = vsub.f32 %v67_v7, %v79_v18  ;;  %v10724_v43 = vld [vmem:[#allocation2 + $0x60] sm:$0xff]   ;;  %v10728_v48 = vld [vmem:[#allocation2 + $0x28] sm:$0xff]   ;;  %v10730_v49 = vld [vmem:[#allocation2 + $0x70] sm:$0xff]  }
  0x3e   :  { %v11487_v28 = vpack.c.bf16 %v85_v22, %v84_v21  ;;  %v88_v30 = vsub.f32 %v68_v10, %v80_v23  ;;  %v89_v31 = vsub.f32 %v69_v11, %v81_v27  ;;  %v10729_v44 = vld [vmem:[#allocation2 + $0x100] sm:$0xff]   ;;  %v10731_v50 = vld [vmem:[#allocation2 + $0x30] sm:$0xff]   ;;  %v10711_v52 = vld [vmem:[%s12658_s1 + $0x18] sm:$0xff]  }
  0x3f   :  { %175 = vmatprep.subr.bf16.mxu0 %v11484_v24  ;;  %v11492_v29 = vpack.c.bf16 %v87_v26, %v86_v25  ;;  %9255 = vmatpush3.bf16.msra.mxu1 %v10719_v35  ;;  %v10725_v45 = vld [vmem:[#allocation2 + $0x20] sm:$0xff]   ;;  %v10710_v51 = vld [vmem:[%s12658_s1 + $0x10] sm:$0xff]   ;;  %v10713_v54 = vld [vmem:[%s12658_s1 + $0x28] sm:$0xff]  }
  0x40   :  { %176 = vmatpush1.bf16.msra.mxu0 %v11453_v4  ;;  %v11496_v36 = vpack.c.bf16 %v89_v31, %v88_v30  ;;  %9256 = vmatprep.subr.bf16.mxu1 %v10720_v37  ;;  %v10712_v53 = vld [vmem:[%s12658_s1 + $0x20] sm:$0xff]   ;;  %v10714_v55 = vld [vmem:[%s12658_s1 + $0x30] sm:$0xff]   ;;  %v10715_v56 = vld [vmem:[%s12658_s1 + $0x38] sm:$0xff]  }
  0x41   :  { %177 = vmatprep.subr.bf16.mxu0 %v11487_v28  ;;  %v10732_v57 = vld [vmem:[#allocation2 + $0x78] sm:$0xff]   ;;  %v10733_v59 = vld [vmem:[#allocation2 + $0x148] sm:$0xff]   ;;  %v10736_v61 = vld [vmem:[#allocation2 + $0xc0] sm:$0xff]  }
  0x42   :  { %v10734_v58 = vld [vmem:[#allocation2 + $0x38] sm:$0xff]   ;;  %v10735_v60 = vld [vmem:[#allocation2 + $0x108] sm:$0xff]   ;;  %v10739_v62 = vld [vmem:[#allocation2 + $0x150] sm:$0xff]  }
  0x43   :  { %9257 = vmatpush3.bf16.msra.mxu1 %v10721_v38  ;;  %v10741_v63 = vld [vmem:[#allocation2 + $0x110] sm:$0xff]   ;;  %v10745_v1 = vld [vmem:[#allocation2 + $0x158] sm:$0xff]   ;;  %v10750_v3 = vld [vmem:[#allocation2 + $0x160] sm:$0xff]  }
  0x44   :  { %178 = vmatpush1.bf16.msra.mxu0 %v11464_v8  ;;  %9258 = vmatprep.subr.bf16.mxu1 %v10722_v39  ;;  %v10747_v2 = vld [vmem:[#allocation2 + $0x118] sm:$0xff]   ;;  %v10751_v5 = vld [vmem:[#allocation2 + $0x120] sm:$0xff]   ;;  %v10754_v6 = vld [vmem:[#allocation2 + $0x168] sm:$0xff]  }
  0x45   :  { %179 = vmatprep.subr.bf16.mxu0 %v11492_v29  ;;  %v10755_v7 = vld [vmem:[#allocation2 + $0x128] sm:$0xff]   ;;  %v10758_v10 = vld [vmem:[#allocation2 + $0x170] sm:$0xff]   ;;  %v10762_v12 = vld [vmem:[#allocation2 + $0x178] sm:$0xff]  }
  0x46   :  { %v10759_v11 = vld [vmem:[#allocation2 + $0x130] sm:$0xff]   ;;  %v10763_v13 = vld [vmem:[#allocation2 + $0x138] sm:$0xff]   ;;  %v11540_v15 = vld [vmem:[#allocation2 + $0x200] sm:$0xff]  }
  0x47   :  { %9259 = vmatpush3.bf16.msra.mxu1 %v10723_v41  ;;  %v10737_v19 = vld [vmem:[#allocation2 + $0x80] sm:$0xff]   ;;  %v10738_v22 = vld [vmem:[#allocation2 + $0xc8] sm:$0xff]   ;;  %v10742_v26 = vld [vmem:[#allocation2 + $0xd0] sm:$0xff]  }
  0x48   :  { %180 = vmatpush1.bf16.msra.mxu0 %v11466_v9  ;;  %9260 = vmatprep.subr.bf16.mxu1 %v10724_v43  ;;  %v10740_v25 = vld [vmem:[#allocation2 + $0x88] sm:$0xff]   ;;  %v10743_v32 = vld [vmem:[#allocation2 + $0x90] sm:$0xff]   ;;  %v10744_v35 = vld [vmem:[#allocation2 + $0xd8] sm:$0xff]  }
  0x49   :  { %181 = vmatprep.subr.bf16.mxu0 %v11496_v36  ;;  %v10746_v38 = vld [vmem:[#allocation2 + $0x98] sm:$0xff]   ;;  %v10748_v39 = vld [vmem:[#allocation2 + $0xe0] sm:$0xff]  }
  0x4a   :  { %v10749_v43 = vld [vmem:[#allocation2 + $0xa0] sm:$0xff]  }
  0x4b   :  { %9261 = vmatpush3.bf16.msra.mxu1 %v10725_v45 }
  0x4c   :  { %182 = vmatpush1.bf16.msra.mxu0 %v11476_v14  ;;  %9262 = vmatprep.subr.bf16.mxu1 %v10726_v46  ;;  %v10752_v46 = vld [vmem:[#allocation2 + $0xe8] sm:$0xff]  }
  0x4d   :  { %9332 = vmatprep.subr.bf16.mxu0 %v10727_v42 }
  0x4f   :  { %8516 = vmatmul.mubr.msk.bf16.vlgmr.msra.gmra.mrb[0].mxu0 %vm150_vm0, %v10708_v40  ;;  %9263 = vmatpush3.bf16.msra.mxu1 %v10728_v48  ;;  %v10753_v48 = vld [vmem:[#allocation2 + $0xa8] sm:$0xff]  }
  0x50   :  { %217 = vmatprep.mubr.bf16.mxu0 %v11369_v0  ;;  %9333 = vmatpush3.bf16.msra.mxu0 %v10729_v44 }
  0x51   :  { %9264 = vmatprep.subr.bf16.mxu1 %v10730_v49  ;;  %9334 = vmatprep.subr.bf16.mxu0 %v10733_v59  ;;  %v10756_v49 = vld [vmem:[#allocation2 + $0xf0] sm:$0xff]   ;;  %v10764_v59 = vld [vmem:[#allocation2 + $0x1c0] sm:$0xff]  }
  0x53   :  { %9265 = vmatpush3.bf16.msra.mxu1 %v10731_v50 }
  0x54   :  { %9266 = vmatprep.subr.bf16.mxu1 %v10732_v57  ;;  %9335 = vmatpush3.bf16.msra.mxu0 %v10735_v60 }
  0x55   :  { %9336 = vmatprep.subr.bf16.mxu0 %v10739_v62  ;;  %v10765_v62 = vld [vmem:[#allocation2 + $0x180] sm:$0xff]  }
  0x57   :  { %8517 = vmatmul.mubr.msk.bf16.gmra.mrb[4].mxu0 %vm150_vm0, %v10709_v47  ;;  %9267 = vmatpush3.bf16.msra.mxu1 %v10734_v58  ;;  %v10761_v58 = vld [vmem:[#allocation2 + $0xb8] sm:$0xff]  }
  0x58   :  { %227 = vmatprep.mubr.bf16.mxu0 %v11369_v0  ;;  %9292 = vmatprep.subr.bf16.mxu1 %v10736_v61 }
  0x59   :  { %9337 = vmatpush3.bf16.msra.mxu0 %v10741_v63 }
  0x5a   :  { %9338 = vmatprep.subr.bf16.mxu0 %v10745_v1  ;;  %v10767_v1 = vld [vmem:[#allocation2 + $0x1c8] sm:$0xff]  }
  0x5d   :  { %9339 = vmatpush3.bf16.msra.mxu0 %v10747_v2 }
  0x5e   :  { %9340 = vmatprep.subr.bf16.mxu0 %v10750_v3 }
  0x5f   :  { %8518 = vmatmul.mubr.msk.bf16.gmra.mrb[8].mxu0 %vm150_vm0, %v10710_v51 }
  0x60   :  { %237 = vmatprep.mubr.bf16.mxu0 %v11369_v0 }
  0x61   :  { %9341 = vmatpush3.bf16.msra.mxu0 %v10751_v5  ;;  %v10769_v5 = vld [vmem:[#allocation2 + $0x208] sm:$0xff]  }
  0x62   :  { %9342 = vmatprep.subr.bf16.mxu0 %v10754_v6 }
  0x65   :  { %9343 = vmatpush3.bf16.msra.mxu0 %v10755_v7  ;;  %v10768_v7 = vld [vmem:[#allocation2 + $0x188] sm:$0xff]  }
  0x66   :  { %9344 = vmatprep.subr.bf16.mxu0 %v10758_v10 }
  0x67   :  { %8519 = vmatmul.mubr.msk.bf16.gmra.mrb[12].mxu0 %vm150_vm0, %v10711_v52 }
  0x68   :  { %247 = vmatprep.mubr.bf16.mxu0 %v11369_v0 }
  0x69   :  { %9345 = vmatpush3.bf16.msra.mxu0 %v10759_v11  ;;  %v10770_v11 = vld [vmem:[#allocation2 + $0x1d0] sm:$0xff]  }
  0x6a   :  { %9346 = vmatprep.subr.bf16.mxu0 %v10762_v12 }
  0x6d   :  { %9347 = vmatpush3.bf16.msra.mxu0 %v10763_v13  ;;  %v10771_v13 = vld [vmem:[#allocation2 + $0x190] sm:$0xff]  }
  0x6e   :  { %10508 = vmatprep.subr.bf16.mxu0 %v11540_v15 }
  0x6f   :  { %8520 = vmatmul.mubr.msk.bf16.gmra.mrb[16].mxu0 %vm150_vm0, %v10712_v53  ;;  %v10757_v53 = vld [vmem:[#allocation2 + $0xb0] sm:$0xff]  }
  0x70   :  { %257 = vmatprep.mubr.bf16.mxu0 %v11369_v0 }
  0x77   :  { %8521 = vmatmul.mubr.msk.bf16.gmra.mrb[20].mxu0 %vm150_vm0, %v10713_v54 }
  0x78   :  { %267 = vmatprep.mubr.bf16.mxu0 %v11369_v0 }
  0x7f   :  { %8522 = vmatmul.mubr.msk.bf16.gmra.mrb[24].mxu0 %vm150_vm0, %v10714_v55 }
  0x80   :  { %277 = vmatprep.mubr.bf16.mxu0 %v11369_v0 }
  0x87   :  { %8523 = vmatmul.mubr.msk.bf16.gmra.mrb[28].mxu0 %vm150_vm0, %v10715_v56  ;;  %v10760_v56 = vld [vmem:[#allocation2 + $0xf8] sm:$0xff]  }
 0x122   :  { %v209_v16 = vpop.f32.mrb[0].mxu0 }
 0x123   :  { %v211_v17 = vpop.f32.mrb[1].mxu0 }
 0x124   :  { %v213_v18 = vpop.f32.mrb[2].mxu0 }
 0x125   :  { %v11543_v20 = vpack.c.bf16 %v213_v18, %v209_v16  ;;  %v215_v21 = vpop.f32.mrb[3].mxu0  ;;  %v10772_v16 = vld [vmem:[#allocation2 + $0x210] sm:$0xff]   ;;  %v10773_v18 = vld [vmem:[#allocation2 + $0x1d8] sm:$0xff]  }
 0x126   :  { %v289_v23 = vpack.c.bf16 %v215_v21, %v211_v17 }
 0x127   :  { %920 = vmatmul.mubr.bf16.vlgmr.msra.gmra.mrb[0].mxu1 %v11543_v20 }
 0x128   :  { %9293 = vmatpush3.bf16.msra.mxu1 %v10737_v19  ;;  %927 = vmatprep.mubr.bf16.mxu1 %v11464_v8 }
 0x129   :  { %9294 = vmatprep.subr.bf16.mxu1 %v10738_v22  ;;  %v10775_v22 = vld [vmem:[#allocation2 + $0x218] sm:$0xff]  }
 0x12a   :  { %v219_v27 = vpop.f32.mrb[4].mxu0 }
 0x12b   :  { %v221_v30 = vpop.f32.mrb[5].mxu0 }
 0x12c   :  { %v223_v31 = vpop.f32.mrb[6].mxu0  ;;  %9295 = vmatpush3.bf16.msra.mxu1 %v10740_v25  ;;  %v10776_v25 = vld [vmem:[#allocation2 + $0x1e0] sm:$0xff]  }
 0x12d   :  { %v11547_v33 = vpack.c.bf16 %v223_v31, %v219_v27  ;;  %v225_v34 = vpop.f32.mrb[7].mxu0  ;;  %9296 = vmatprep.subr.bf16.mxu1 %v10742_v26  ;;  %v10777_v27 = vld [vmem:[#allocation2 + $0x1a0] sm:$0xff]  }
 0x12e   :  { %v291_v37 = vpack.c.bf16 %v225_v34, %v221_v30  ;;  %v10778_v30 = vld [vmem:[#allocation2 + $0x220] sm:$0xff]  }
 0x12f   :  { %928 = vmatmul.mubr.bf16.gmra.mrb[4].mxu1 %v11547_v33 }
 0x130   :  { %9297 = vmatpush3.bf16.msra.mxu1 %v10743_v32  ;;  %935 = vmatprep.mubr.bf16.mxu1 %v11466_v9  ;;  %v10779_v32 = vld [vmem:[#allocation2 + $0x1e8] sm:$0xff]  }
 0x131   :  { %9298 = vmatprep.subr.bf16.mxu1 %v10744_v35 }
 0x132   :  { %v229_v40 = vpop.f32.mrb[8].mxu0 }
 0x133   :  { %v11551_v41 = vpop.f32.mrb[9].mxu0 }
 0x134   :  { %v233_v42 = vpop.f32.mrb[10].mxu0  ;;  %9299 = vmatpush3.bf16.msra.mxu1 %v10746_v38 }
 0x135   :  { %v11553_v44 = vpack.c.bf16 %v233_v42, %v229_v40  ;;  %v11555_v45 = vpop.f32.mrb[11].mxu0  ;;  %9300 = vmatprep.subr.bf16.mxu1 %v10748_v39  ;;  %v10782_v40 = vld [vmem:[#allocation2 + $0x1f0] sm:$0xff]  }
 0x136   :  { %v293_v47 = vpack.c.bf16 %v11555_v45, %v11551_v41  ;;  %v10784_v42 = vld [vmem:[#allocation2 + $0x230] sm:$0xff]  }
 0x137   :  { %936 = vmatmul.mubr.bf16.gmra.mrb[8].mxu1 %v11553_v44  ;;  %v10783_v45 = vld [vmem:[#allocation2 + $0x1b0] sm:$0xff]  }
 0x138   :  { %9301 = vmatpush3.bf16.msra.mxu1 %v10749_v43  ;;  %943 = vmatprep.mubr.bf16.mxu1 %v11476_v14 }
 0x139   :  { %9302 = vmatprep.subr.bf16.mxu1 %v10752_v46 }
 0x13a   :  { %v239_v50 = vpop.f32.mrb[12].mxu0 }
 0x13b   :  { %v11561_v51 = vpop.f32.mrb[13].mxu0 }
 0x13c   :  { %v243_v52 = vpop.f32.mrb[14].mxu0  ;;  %9303 = vmatpush3.bf16.msra.mxu1 %v10753_v48  ;;  %v10785_v48 = vld [vmem:[#allocation2 + $0x1f8] sm:$0xff]  }
 0x13d   :  { %v11563_v54 = vpack.c.bf16 %v243_v52, %v239_v50  ;;  %v11565_v55 = vpop.f32.mrb[15].mxu0  ;;  %9304 = vmatprep.subr.bf16.mxu1 %v10756_v49  ;;  %v10787_v49 = vld [vmem:[#allocation2 + $0x238] sm:$0xff]  }
 0x13e   :  { %v295_v57 = vpack.c.bf16 %v11565_v55, %v11561_v51 }
 0x13f   :  { %944 = vmatmul.mubr.bf16.gmra.mrb[12].mxu1 %v11563_v54 }
 0x140   :  { %9305 = vmatpush3.bf16.msra.mxu1 %v10757_v53  ;;  %984 = vmatprep.mubr.bf16.mxu1 %v289_v23 }
 0x141   :  { %9306 = vmatprep.subr.bf16.mxu1 %v10760_v56 }
 0x142   :  { %v249_v60 = vpop.f32.mrb[16].mxu0 }
 0x143   :  { %v251_v61 = vpop.f32.mrb[17].mxu0 }
 0x144   :  { %v253_v63 = vpop.f32.mrb[18].mxu0  ;;  %9307 = vmatpush3.bf16.msra.mxu1 %v10761_v58 }
 0x145   :  { %v11570_v2 = vpack.c.bf16 %v253_v63, %v249_v60  ;;  %v255_v3 = vpop.f32.mrb[19].mxu0  ;;  %9372 = vmatprep.subr.bf16.mxu1 %v10764_v59 }
 0x146   :  { %v297_v6 = vpack.c.bf16 %v255_v3, %v251_v61 }
 0x147   :  { %985 = vmatmul.mubr.bf16.vlgmr.msra.gmra.mrb[16].mxu1 %v11570_v2 }
 0x148   :  { %992 = vmatprep.mubr.bf16.mxu1 %v291_v37  ;;  %1049 = vmatprep.mubr.bf16.mxu0 %v297_v6  ;;  %v10781_v37 = vld [vmem:[#allocation2 + $0x228] sm:$0xff]  }
 0x149   :  { %9373 = vmatpush3.bf16.msra.mxu1 %v10765_v62  ;;  %1050 = vmatmul.mubr.bf16.vlgmr.msra.gmra.mrb[32].mxu0 %v11484_v24  ;;  %v10774_v24 = vld [vmem:[#allocation2 + $0x198] sm:$0xff]  }
 0x14a   :  { %v259_v10 = vpop.f32.mrb[20].mxu0  ;;  %10509 = vmatpush3.bf16.msra.mxu0 %v11540_v15  ;;  %9374 = vmatprep.subr.bf16.mxu1 %v10767_v1 }
 0x14b   :  { %v261_v12 = vpop.f32.mrb[21].mxu0  ;;  %10510 = vmatprep.subr.bf16.mxu0 %v10769_v5 }
 0x14c   :  { %v263_v17 = vpop.f32.mrb[22].mxu0 }
 0x14d   :  { %v11575_v19 = vpack.c.bf16 %v263_v17, %v259_v10  ;;  %9375 = vmatpush3.bf16.msra.mxu1 %v10768_v7  ;;  %v265_v21 = vpop.f32.mrb[23].mxu0 }
 0x14e   :  { %v299_v23 = vpack.c.bf16 %v265_v21, %v261_v12  ;;  %10511 = vmatpush3.bf16.msra.mxu0 %v10769_v5  ;;  %9376 = vmatprep.subr.bf16.mxu1 %v10770_v11  ;;  %v11601_v5 = vld [vmem:[#allocation6] ss:$0 sm:$0xff] }
 0x14f   :  { %993 = vmatmul.mubr.bf16.gmra.mrb[20].mxu1 %v11575_v19  ;;  %10512 = vmatprep.subr.bf16.mxu0 %v10772_v16 }
 0x150   :  { %1000 = vmatprep.mubr.bf16.mxu1 %v293_v47  ;;  %1057 = vmatprep.mubr.bf16.mxu0 %v299_v23 }
 0x151   :  { %9377 = vmatpush3.bf16.msra.mxu1 %v10771_v13  ;;  %1058 = vmatmul.mubr.bf16.gmra.mrb[36].mxu0 %v11487_v28  ;;  %v10780_v28 = vld [vmem:[#allocation2 + $0x1a8] sm:$0xff]  }
 0x152   :  { %v269_v15 = vpop.f32.mrb[24].mxu0  ;;  %10513 = vmatpush3.bf16.msra.mxu0 %v10772_v16  ;;  %9378 = vmatprep.subr.bf16.mxu1 %v10773_v18 }
 0x153   :  { %v271_v26 = vpop.f32.mrb[25].mxu0  ;;  %10514 = vmatprep.subr.bf16.mxu0 %v10775_v22 }
 0x154   :  { %v273_v31 = vpop.f32.mrb[26].mxu0 }
 0x155   :  { %v300_v34 = vpack.c.bf16 %v273_v31, %v269_v15  ;;  %9379 = vmatpush3.bf16.msra.mxu1 %v10774_v24  ;;  %v275_v35 = vpop.f32.mrb[27].mxu0 }
 0x156   :  { %v301_v38 = vpack.c.bf16 %v275_v35, %v271_v26  ;;  %10515 = vmatpush3.bf16.msra.mxu0 %v10775_v22  ;;  %9380 = vmatprep.subr.bf16.mxu1 %v10776_v25  ;;  %v10798_v35 = vld [vmem:[#allocation2 + $0x288] sm:$0xff]  }
 0x157   :  { %1001 = vmatmul.mubr.bf16.gmra.mrb[24].mxu1 %v300_v34  ;;  %10516 = vmatprep.subr.bf16.mxu0 %v10778_v30 }
 0x158   :  { %1008 = vmatprep.mubr.bf16.mxu1 %v295_v57  ;;  %1065 = vmatprep.mubr.bf16.mxu0 %v301_v38 }
 0x159   :  { %9381 = vmatpush3.bf16.msra.mxu1 %v10777_v27  ;;  %1066 = vmatmul.mubr.bf16.gmra.mrb[40].mxu0 %v11492_v29  ;;  %v10786_v29 = vld [vmem:[#allocation2 + $0x1b8] sm:$0xff]  }
 0x15a   :  { %v279_v39 = vpop.f32.mrb[28].mxu0  ;;  %10517 = vmatpush3.bf16.msra.mxu0 %v10778_v30  ;;  %9382 = vmatprep.subr.bf16.mxu1 %v10779_v32  ;;  %v10796_v32 = vld [vmem:[#allocation2 + $0x280] sm:$0xff]  }
 0x15b   :  { %v281_v41 = vpop.f32.mrb[29].mxu0  ;;  %10518 = vmatprep.subr.bf16.mxu0 %v10781_v37 }
 0x15c   :  { %v283_v43 = vpop.f32.mrb[30].mxu0 }
 0x15d   :  { %v302_v46 = vpack.c.bf16 %v283_v43, %v279_v39  ;;  %9383 = vmatpush3.bf16.msra.mxu1 %v10780_v28  ;;  %v285_v47 = vpop.f32.mrb[31].mxu0 }
 0x15e   :  { %v303_v50 = vpack.c.bf16 %v285_v47, %v281_v41  ;;  %10519 = vmatpush3.bf16.msra.mxu0 %v10781_v37  ;;  %9384 = vmatprep.subr.bf16.mxu1 %v10782_v40 }
 0x15f   :  { %1009 = vmatmul.mubr.bf16.gmra.mrb[28].mxu1 %v302_v46  ;;  %10520 = vmatprep.subr.bf16.mxu0 %v10784_v42 }
 0x160   :  { %1073 = vmatprep.mubr.bf16.mxu0 %v303_v50  ;;  %1114 = vmatprep.mubr.bf16.mxu1 %v11453_v4  ;;  %v10800_v50 = vld [vmem:[#allocation2 + $0x290] sm:$0xff]  }
 0x161   :  { %9385 = vmatpush3.bf16.msra.mxu1 %v10783_v45  ;;  %1074 = vmatmul.mubr.bf16.gmra.mrb[44].mxu0 %v11496_v36 }
 0x162   :  { %10521 = vmatpush3.bf16.msra.mxu0 %v10784_v42  ;;  %10524 = vmatprep.mubr.bf16.mxu0 %v11570_v2 }
 0x163   :  { %9386 = vmatprep.subr.bf16.mxu1 %v10785_v48  ;;  %10522 = vmatprep.subr.bf16.mxu0 %v10787_v49  ;;  %v10799_v48 = vld [vmem:[#allocation2 + $0x248] sm:$0xff]  }
 0x165   :  { %9387 = vmatpush3.bf16.msra.mxu1 %v10786_v29 }
 0x166   :  { %10523 = vmatpush3.bf16.msra.mxu0 %v10787_v49  ;;  %9424 = vmatprep.subr.bf16.mxu1 %v10796_v32  ;;  %v10808_v32 = vld [vmem:[#allocation2 + $0x268] sm:$0xff]  }
 0x168   :  { %1115 = vmatmul.mubr.bf16.vlgmr.msra.gmra.mrb[32].mxu1 %v11543_v20 }
 0x169   :  { %10525 = vmatmul.mubr.bf16.vlgmr.msra.gmra.mrb[48].mxu0 %v11575_v19  ;;  %1122 = vmatprep.mubr.bf16.mxu1 %v11464_v8 }
 0x16a   :  { %10528 = vmatprep.mubr.bf16.mxu0 %v300_v34  ;;  %v10797_v34 = vld [vmem:[#allocation2 + $0x240] sm:$0xff]  }
 0x16b   :  { %9425 = vmatpush3.bf16.msra.mxu1 %v10797_v34 }
 0x16c   :  { %9426 = vmatprep.subr.bf16.mxu1 %v10798_v35  ;;  %v10810_v35 = vld [vmem:[#allocation2 + $0x2b0] sm:$0xff]  }
 0x16f   :  { %9427 = vmatpush3.bf16.msra.mxu1 %v10799_v48 }
 0x170   :  { %1123 = vmatmul.mubr.bf16.gmra.mrb[36].mxu1 %v11547_v33  ;;  %9428 = vmatprep.subr.bf16.mxu1 %v10800_v50 }
 0x171   :  { %10529 = vmatmul.mubr.bf16.gmra.mrb[52].mxu0 %v302_v46  ;;  %1130 = vmatprep.mubr.bf16.mxu1 %v11466_v9 }
 0x172   :  { %1357 = vmatprep.mubr.bf16.mxu0 %v11369_v0 }
 0x178   :  { %1131 = vmatmul.mubr.bf16.gmra.mrb[40].mxu1 %v11553_v44 }
 0x179   :  { %1138 = vmatprep.mubr.bf16.mxu1 %v11476_v14 }
 0x180   :  { %1139 = vmatmul.mubr.bf16.gmra.mrb[44].mxu1 %v11563_v54 }
 0x1fa   :  { %v9268_v4 = vpop.f32.mrb[0].mxu1 }
 0x1fb   :  { %v9269_v36 = vpop.f32.mrb[1].mxu1 }
 0x1fc   :  { %v9270_v20 = vadd.f32 %v9269_v36, %v9268_v4  ;;  %v9271_v51 = vpop.f32.mrb[2].mxu1 }
 0x1fd   :  { %v9272_v52 = vpop.f32.mrb[3].mxu1 }
 0x1fe   :  { %v9273_v8 = vadd.f32 %v9272_v52, %v9271_v51  ;;  %v922_v10 = vadd.f32 %v9270_v20, %v11601_v5  ;;  %v10801_v52 = vld [vmem:[#allocation2 + $0x250] sm:$0xff]  }
 0x1ff   :  { %9429 = vmatpush3.bf16.msra.mxu1 %v10801_v52 }
 0x200   :  { %v925_v18 = vadd.f32 %v9273_v8, %v11601_v5 }
 0x202   :  { %v9274_v53 = vpop.f32.mrb[4].mxu1 }
 0x203   :  { %v9275_v55 = vpop.f32.mrb[5].mxu1 }
 0x204   :  { %v9276_v33 = vadd.f32 %v9275_v55, %v9274_v53  ;;  %v9277_v56 = vpop.f32.mrb[6].mxu1  ;;  %v10802_v53 = vld [vmem:[#allocation2 + $0x298] sm:$0xff]  }
 0x205   :  { %v9278_v57 = vpop.f32.mrb[7].mxu1  ;;  %9430 = vmatprep.subr.bf16.mxu1 %v10802_v53 }
 0x206   :  { %v9279_v9 = vadd.f32 %v9278_v57, %v9277_v56  ;;  %v930_v37 = vadd.f32 %v9276_v33, %v11601_v5 }
 0x208   :  { %v933_v42 = vadd.f32 %v9279_v9, %v11601_v5 }
 0x20a   :  { %v9280_v58 = vpop.f32.mrb[8].mxu1 }
 0x20b   :  { %v9281_v59 = vpop.f32.mrb[9].mxu1 }
 0x20c   :  { %v9282_v60 = vadd.f32 %v9281_v59, %v9280_v58  ;;  %v9283_v44 = vpop.f32.mrb[10].mxu1 }
 0x20d   :  { %v9284_v61 = vpop.f32.mrb[11].mxu1 }
 0x20e   :  { %v11595_v14 = vadd.f32 %v9284_v61, %v9283_v44  ;;  %v938_v55 = vadd.f32 %v9282_v60, %v11601_v5 }
 0x210   :  { %v941_v59 = vadd.f32 %v11595_v14, %v11601_v5  ;;  %v10806_v14 = vld [vmem:[#allocation2 + $0x2a8] sm:$0xff]  }
 0x212   :  { %v9286_v54 = vpop.f32.mrb[12].mxu1 }
 0x213   :  { %v9287_v62 = vpop.f32.mrb[13].mxu1 }
 0x214   :  { %v11597_v63 = vadd.f32 %v9287_v62, %v9286_v54  ;;  %v9289_v1 = vpop.f32.mrb[14].mxu1 }
 0x215   :  { %v9290_v2 = vpop.f32.mrb[15].mxu1 }
 0x216   :  { %v11599_v3 = vadd.f32 %v9290_v2, %v9289_v1  ;;  %v10803_v1 = vld [vmem:[#allocation2 + $0x258] sm:$0xff]  }
 0x217   :  { %9431 = vmatpush3.bf16.msra.mxu1 %v10803_v1 }
 0x21a   :  { %v9308_v6 = vpop.f32.mrb[16].mxu1 }
 0x21b   :  { %v9309_v7 = vpop.f32.mrb[17].mxu1 }
 0x21c   :  { %v9310_v11 = vadd.f32 %v9309_v7, %v9308_v6  ;;  %v9311_v12 = vpop.f32.mrb[18].mxu1  ;;  %v9348_v13 = vpop.f32.mrb[32].mxu0  ;;  %v10804_v6 = vld [vmem:[#allocation2 + $0x2a0] sm:$0xff]  }
 0x21d   :  { %v9312_v16 = vpop.f32.mrb[19].mxu1  ;;  %v9349_v17 = vpop.f32.mrb[33].mxu0  ;;  %9432 = vmatprep.subr.bf16.mxu1 %v10804_v6 }
 0x21e   :  { %v987_v19 = vadd.f32 %v9310_v11, %v922_v10  ;;  %v9313_v21 = vadd.f32 %v9312_v16, %v9311_v12  ;;  %v9350_v22 = vadd.f32 %v9349_v17, %v9348_v13  ;;  %v9351_v23 = vpop.f32.mrb[34].mxu0  ;;  %v10805_v13 = vld [vmem:[#allocation2 + $0x260] sm:$0xff]   ;;  %v946_v17 = vadd.f32 %v11597_v63, %v11601_v5 }
 0x21f   :  { %v9352_v24 = vpop.f32.mrb[35].mxu0  ;;  %9433 = vmatpush3.bf16.msra.mxu1 %v10805_v13 }
 0x220   :  { %v990_v15 = vadd.f32 %v9313_v21, %v925_v18  ;;  %v11605_v25 = vadd.f32 %v9350_v22, %v987_v19  ;;  %v9353_v26 = vadd.f32 %v9352_v24, %v9351_v23  ;;  %v949_v24 = vadd.f32 %v11599_v3, %v11601_v5  ;;  %9434 = vmatprep.subr.bf16.mxu1 %v10806_v14 }
 0x222   :  { %v11607_v27 = vadd.f32 %v9353_v26, %v990_v15  ;;  %v9314_v30 = vpop.f32.mrb[20].mxu1 }
 0x223   :  { %v9315_v31 = vpop.f32.mrb[21].mxu1  ;;  %9435 = vmatpush3.bf16.msra.mxu1 %v10808_v32 }
 0x224   :  { %v9316_v38 = vadd.f32 %v9315_v31, %v9314_v30  ;;  %v9317_v28 = vpop.f32.mrb[22].mxu1  ;;  %v9354_v39 = vpop.f32.mrb[36].mxu0  ;;  %9436 = vmatprep.subr.bf16.mxu1 %v10810_v35 }
 0x225   :  { %v9318_v40 = vpop.f32.mrb[23].mxu1  ;;  %v9355_v41 = vpop.f32.mrb[37].mxu0 }
 0x226   :  { %v995_v43 = vadd.f32 %v9316_v38, %v930_v37  ;;  %v9319_v45 = vadd.f32 %v9318_v40, %v9317_v28  ;;  %v9356_v46 = vadd.f32 %v9355_v41, %v9354_v39  ;;  %v9357_v47 = vpop.f32.mrb[38].mxu0  ;;  %v10811_v39 = vld [vmem:[#allocation2 + $0x270] sm:$0xff]  }
 0x227   :  { %v9358_v49 = vpop.f32.mrb[39].mxu0  ;;  %9437 = vmatpush3.bf16.msra.mxu1 %v10811_v39 }
 0x228   :  { %v998_v29 = vadd.f32 %v9319_v45, %v933_v42  ;;  %v11611_v4 = vadd.f32 %v9356_v46, %v995_v43  ;;  %v9359_v36 = vadd.f32 %v9358_v49, %v9357_v47 }
 0x22a   :  { %v11613_v20 = vadd.f32 %v9359_v36, %v998_v29  ;;  %v9320_v51 = vpop.f32.mrb[24].mxu1 }
 0x22b   :  { %v9321_v8 = vpop.f32.mrb[25].mxu1 }
 0x22c   :  { %v9322_v33 = vadd.f32 %v9321_v8, %v9320_v51  ;;  %v9323_v56 = vpop.f32.mrb[26].mxu1  ;;  %v9360_v57 = vpop.f32.mrb[40].mxu0 }
 0x22d   :  { %v9324_v9 = vpop.f32.mrb[27].mxu1  ;;  %v9361_v58 = vpop.f32.mrb[41].mxu0 }
 0x22e   :  { %v1003_v44 = vadd.f32 %v9322_v33, %v938_v55  ;;  %v9325_v61 = vadd.f32 %v9324_v9, %v9323_v56  ;;  %v9362_v54 = vadd.f32 %v9361_v58, %v9360_v57  ;;  %v9363_v62 = vpop.f32.mrb[42].mxu0 }
 0x22f   :  { %v9364_v2 = vpop.f32.mrb[43].mxu0 }
 0x230   :  { %v1006_v7 = vadd.f32 %v9325_v61, %v941_v59  ;;  %v11618_v10 = vadd.f32 %v9362_v54, %v1003_v44  ;;  %v9365_v60 = vadd.f32 %v9364_v2, %v9363_v62 }
 0x232   :  { %v11620_v11 = vadd.f32 %v9365_v60, %v1006_v7  ;;  %v9326_v12 = vpop.f32.mrb[28].mxu1 }
 0x233   :  { %v9327_v16 = vpop.f32.mrb[29].mxu1 }
 0x234   :  { %v9328_v18 = vadd.f32 %v9327_v16, %v9326_v12  ;;  %v9329_v19 = vpop.f32.mrb[30].mxu1  ;;  %v9366_v21 = vpop.f32.mrb[44].mxu0 }
 0x235   :  { %v9330_v22 = vpop.f32.mrb[31].mxu1  ;;  %v9367_v23 = vpop.f32.mrb[45].mxu0 }
 0x236   :  { %v1011_v15 = vadd.f32 %v9328_v18, %v946_v17  ;;  %v9331_v26 = vadd.f32 %v9330_v22, %v9329_v19  ;;  %v9368_v30 = vadd.f32 %v9367_v23, %v9366_v21  ;;  %v9369_v31 = vpop.f32.mrb[46].mxu0 }
 0x237   :  { %v9370_v34 = vpop.f32.mrb[47].mxu0 }
 0x238   :  { %v1014_v37 = vadd.f32 %v9331_v26, %v949_v24  ;;  %v11626_v38 = vadd.f32 %v9368_v30, %v1011_v15  ;;  %v9371_v63 = vadd.f32 %v9370_v34, %v9369_v31 }
 0x23a   :  { %v11628_v28 = vadd.f32 %v9371_v63, %v1014_v37 }
 0x23b   :  { %v9388_v40 = vpop.f32.mrb[32].mxu1 }
 0x23c   :  { %v9389_v3 = vpop.f32.mrb[33].mxu1  ;;  %v10526_v5 = vpop.f32.mrb[48].mxu0 }
 0x23d   :  { %v9390_v41 = vadd.f32 %v9389_v3, %v9388_v40  ;;  %v9391_v42 = vpop.f32.mrb[34].mxu1  ;;  %v1181_v43 = vpop.f32.mrb[49].mxu0 }
 0x23e   :  { %v9392_v45 = vpop.f32.mrb[35].mxu1  ;;  %v10527_v46 = vpop.f32.mrb[50].mxu0 }
 0x23f   :  { %v9393_v47 = vadd.f32 %v9392_v45, %v9391_v42  ;;  %v1117_v48 = vadd.f32 %v9390_v41, %v11605_v25  ;;  %v1184_v49 = vpop.f32.mrb[51].mxu0 }
 0x241   :  { %v1182_v50 = vadd.f32 %v1181_v43, %v1117_v48  ;;  %v1120_v29 = vadd.f32 %v9393_v47, %v11607_v27 }
 0x243   :  { %v1185_v36 = vadd.f32 %v1184_v49, %v1120_v29  ;;  %v9394_v51 = vpop.f32.mrb[36].mxu1  ;;  %v1212_v53 = vmax.f32 %v1182_v50, 0.0 }
 0x244   :  { %v9395_v52 = vpop.f32.mrb[37].mxu1  ;;  %v10530_v8 = vpop.f32.mrb[52].mxu0 }
 0x245   :  { %v1213_v55 = vmax.f32 %v1185_v36, 0.0  ;;  %v9396_v33 = vadd.f32 %v9395_v52, %v9394_v51  ;;  %v9397_v56 = vpop.f32.mrb[38].mxu1  ;;  %v1197_v57 = vpop.f32.mrb[53].mxu0 }
 0x246   :  { %v9398_v9 = vpop.f32.mrb[39].mxu1  ;;  %v10531_v58 = vpop.f32.mrb[54].mxu0 }
 0x247   :  { %v11632_v59 = vpack.c.bf16 %v1213_v55, %v1212_v53  ;;  %v1125_v44 = vadd.f32 %v9396_v33, %v11611_v4  ;;  %v9399_v25 = vadd.f32 %v9398_v9, %v9397_v56  ;;  %v1200_v61 = vpop.f32.mrb[55].mxu0  ;;  %v10809_v33 = vld [vmem:[#allocation2 + $0x340] sm:$0xff]   ;;  %v10789_v56 = vld [vmem:[%s12658_s1 + $0x48] sm:$0xff]   ;;  %v10791_v9 = vld [vmem:[%s12658_s1 + $0x58] sm:$0xff]  }
 0x249   :  { %v1190_v54 = vadd.f32 %v10526_v5, %v1125_v44  ;;  %v1128_v27 = vadd.f32 %v9399_v25, %v11613_v20  ;;  %2071 = vmatprep.mubr.bf16.mxu1 %v11632_v59  ;;  %v1224_v62 = vunpack.c.l.bf16 %v11632_v59  ;;  %v1225_v1 = vunpack.c.h.bf16 %v11632_v59  ;;  %v10793_v44 = vld [vmem:[%s12658_s1 + $0x68] sm:$0xff]   ;;  %v10794_v25 = vld [vmem:[%s12658_s1 + $0x70] sm:$0xff]  }
 0x24b   :  { %v1193_v2 = vadd.f32 %v10527_v46, %v1128_v27  ;;  %v9400_v6 = vpop.f32.mrb[40].mxu1  ;;  %v1232_v7 = vsub.f32 %v1212_v53, %v1224_v62  ;;  %v1233_v60 = vsub.f32 %v1213_v55, %v1225_v1  ;;  %v1214_v4 = vmax.f32 %v1190_v54, 0.0  ;;  %v10807_v53 = vld [vmem:[#allocation2 + $0x380] sm:$0xff]   ;;  %v10812_v54 = vld [vmem:[#allocation2 + $0x2b8] sm:$0xff]   ;;  %v10813_v62 = vld [vmem:[#allocation2 + $0x388] sm:$0xff]  }
 0x24c   :  { %v9401_v12 = vpop.f32.mrb[41].mxu1  ;;  %v10788_v55 = vld [vmem:[%s12658_s1 + $0x40] sm:$0xff]   ;;  %v10814_v27 = vld [vmem:[#allocation2 + $0x278] sm:$0xff]   ;;  %9438 = vmatprep.subr.bf16.mxu1 %v10812_v54  ;;  %v10815_v1 = vld [vmem:[#allocation2 + $0x348] sm:$0xff]  }
 0x24d   :  { %v9402_v13 = vadd.f32 %v9401_v12, %v9400_v6  ;;  %v9403_v16 = vpop.f32.mrb[42].mxu1  ;;  %v11639_v14 = vpack.c.bf16 %v1233_v60, %v1232_v7  ;;  %v1215_v17 = vmax.f32 %v1193_v2, 0.0  ;;  %9439 = vmatpush3.bf16.msra.mxu1 %v10814_v27  ;;  %v10816_v2 = vld [vmem:[#allocation2 + $0x300] sm:$0xff]   ;;  %v10819_v6 = vld [vmem:[#allocation2 + $0x390] sm:$0xff]   ;;  %v10825_v60 = vld [vmem:[#allocation2 + $0x398] sm:$0xff]  }
 0x24e   :  { %v9404_v18 = vpop.f32.mrb[43].mxu1  ;;  %9464 = vmatprep.subr.bf16.mxu1 %v10816_v2  ;;  %v10821_v7 = vld [vmem:[#allocation2 + $0x350] sm:$0xff]   ;;  %v10827_v12 = vld [vmem:[#allocation2 + $0x358] sm:$0xff]  }
 0x24f   :  { %v1133_v20 = vadd.f32 %v9402_v13, %v11618_v10  ;;  %v9405_v19 = vadd.f32 %v9404_v18, %v9403_v16  ;;  %1325 = vmatprep.subr.bf16.mxu0 %v11639_v14  ;;  %v11643_v21 = vpack.c.bf16 %v1215_v17, %v1214_v4  ;;  %v10830_v13 = vld [vmem:[#allocation2 + $0x3a0] sm:$0xff]   ;;  %v10838_v18 = vld [vmem:[#allocation2 + $0x3b0] sm:$0xff]   ;;  %v10841_v27 = vld [vmem:[#allocation2 + $0x2f8] sm:$0xff]  }
 0x250   :  { %1326 = vmatpush1.bf16.msra.mxu0 %v11632_v59  ;;  %v10831_v16 = vld [vmem:[#allocation2 + $0x360] sm:$0xff]  }
 0x251   :  { %v1198_v22 = vadd.f32 %v1197_v57, %v1133_v20  ;;  %v1136_v23 = vadd.f32 %v9405_v19, %v11620_v11  ;;  %v1226_v24 = vunpack.c.l.bf16 %v11643_v21  ;;  %v1227_v15 = vunpack.c.h.bf16 %v11643_v21  ;;  %v10790_v57 = vld [vmem:[%s12658_s1 + $0x50] sm:$0xff]   ;;  %v10842_v19 = vld [vmem:[#allocation2 + $0x3b8] sm:$0xff]  }
 0x252   :  { %v10839_v20 = vld [vmem:[#allocation2 + $0x370] sm:$0xff]  }
 0x253   :  { %v1201_v26 = vadd.f32 %v1200_v61, %v1136_v23  ;;  %v9406_v30 = vpop.f32.mrb[44].mxu1  ;;  %v1234_v31 = vsub.f32 %v1214_v4, %v1226_v24  ;;  %v1235_v32 = vsub.f32 %v1215_v17, %v1227_v15  ;;  %v1216_v63 = vmax.f32 %v1198_v22, 0.0  ;;  %v10795_v61 = vld [vmem:[%s12658_s1 + $0x78] sm:$0xff]   ;;  %v10834_v4 = vld [vmem:[#allocation2 + $0x3a8] sm:$0xff]   ;;  %v11710_v23 = vld [vmem:[#allocation2 + $0x440] sm:$0xff]  }
 0x254   :  { %v9407_v34 = vpop.f32.mrb[45].mxu1  ;;  %v10835_v17 = vld [vmem:[#allocation2 + $0x368] sm:$0xff]   ;;  %v10843_v22 = vld [vmem:[#allocation2 + $0x378] sm:$0xff]  }
 0x255   :  { %v9408_v10 = vadd.f32 %v9407_v34, %v9406_v30  ;;  %v9409_v35 = vpop.f32.mrb[46].mxu1  ;;  %v11649_v37 = vpack.c.bf16 %v1235_v32, %v1234_v31  ;;  %v1217_v39 = vmax.f32 %v1201_v26, 0.0  ;;  %v10817_v30 = vld [vmem:[#allocation2 + $0x2c0] sm:$0xff]   ;;  %v10818_v34 = vld [vmem:[#allocation2 + $0x308] sm:$0xff]  }
 0x256   :  { %v9410_v40 = vpop.f32.mrb[47].mxu1 }
 0x257   :  { %v1141_v3 = vadd.f32 %v9408_v10, %v11626_v38  ;;  %v9411_v5 = vadd.f32 %v9410_v40, %v9409_v35  ;;  %1327 = vmatprep.subr.bf16.mxu0 %v11649_v37  ;;  %v11653_v11 = vpack.c.bf16 %v1217_v39, %v1216_v63  ;;  %v10820_v35 = vld [vmem:[#allocation2 + $0x2c8] sm:$0xff]  }
 0x258   :  { %1328 = vmatpush1.bf16.msra.mxu0 %v11643_v21 }
 0x259   :  { %v1206_v41 = vadd.f32 %v10530_v8, %v1141_v3  ;;  %v1144_v42 = vadd.f32 %v9411_v5, %v11628_v28  ;;  %v1228_v43 = vunpack.c.l.bf16 %v11653_v11  ;;  %v1229_v45 = vunpack.c.h.bf16 %v11653_v11  ;;  %v10823_v5 = vld [vmem:[#allocation2 + $0x2d0] sm:$0xff]  }
 0x25b   :  { %v1209_v46 = vadd.f32 %v10531_v58, %v1144_v42  ;;  %v1236_v47 = vsub.f32 %v1216_v63, %v1228_v43  ;;  %v1237_v48 = vsub.f32 %v1217_v39, %v1229_v45  ;;  %v1218_v38 = vmax.f32 %v1206_v41, 0.0  ;;  %v10792_v58 = vld [vmem:[%s12658_s1 + $0x60] sm:$0xff]   ;;  %v10822_v63 = vld [vmem:[#allocation2 + $0x310] sm:$0xff]   ;;  %v10824_v43 = vld [vmem:[#allocation2 + $0x318] sm:$0xff]  }
 0x25d   :  { %v11659_v49 = vpack.c.bf16 %v1237_v48, %v1236_v47  ;;  %v1219_v50 = vmax.f32 %v1209_v46, 0.0  ;;  %v10826_v46 = vld [vmem:[#allocation2 + $0x2d8] sm:$0xff]   ;;  %v10828_v47 = vld [vmem:[#allocation2 + $0x320] sm:$0xff]  }
 0x25f   :  { %1329 = vmatprep.subr.bf16.mxu0 %v11659_v49  ;;  %v11662_v29 = vpack.c.bf16 %v1219_v50, %v1218_v38 }
 0x260   :  { %1330 = vmatpush1.bf16.msra.mxu0 %v11653_v11 }
 0x261   :  { %v1230_v36 = vunpack.c.l.bf16 %v11662_v29  ;;  %v1231_v28 = vunpack.c.h.bf16 %v11662_v29 }
 0x263   :  { %v1238_v51 = vsub.f32 %v1218_v38, %v1230_v36  ;;  %v1239_v52 = vsub.f32 %v1219_v50, %v1231_v28  ;;  %v10829_v36 = vld [vmem:[#allocation2 + $0x2e0] sm:$0xff]  }
 0x265   :  { %v11667_v8 = vpack.c.bf16 %v1239_v52, %v1238_v51  ;;  %v10832_v52 = vld [vmem:[#allocation2 + $0x328] sm:$0xff]  }
 0x267   :  { %1331 = vmatprep.subr.bf16.mxu0 %v11667_v8 }
 0x268   :  { %1332 = vmatpush1.bf16.msra.mxu0 %v11662_v29 }
 0x269   :  { %9504 = vmatprep.subr.bf16.mxu0 %v10807_v53 }
 0x26b   :  { %8621 = vmatmul.mubr.msk.bf16.vlgmr.msra.gmra.mrb[56].mxu0 %vm150_vm0, %v10788_v55  ;;  %v10833_v55 = vld [vmem:[#allocation2 + $0x2e8] sm:$0xff]  }
 0x26c   :  { %1367 = vmatprep.mubr.bf16.mxu0 %v11369_v0  ;;  %9505 = vmatpush3.bf16.msra.mxu0 %v10809_v33  ;;  %v10836_v33 = vld [vmem:[#allocation2 + $0x330] sm:$0xff]  }
 0x26d   :  { %9506 = vmatprep.subr.bf16.mxu0 %v10813_v62  ;;  %v10844_v62 = vld [vmem:[#allocation2 + $0x400] sm:$0xff]  }
 0x270   :  { %9507 = vmatpush3.bf16.msra.mxu0 %v10815_v1 }
 0x271   :  { %9508 = vmatprep.subr.bf16.mxu0 %v10819_v6 }
 0x273   :  { %8622 = vmatmul.mubr.msk.bf16.gmra.mrb[60].mxu0 %vm150_vm0, %v10789_v56 }
 0x274   :  { %1377 = vmatprep.mubr.bf16.mxu0 %v11369_v0  ;;  %9509 = vmatpush3.bf16.msra.mxu0 %v10821_v7 }
 0x275   :  { %9510 = vmatprep.subr.bf16.mxu0 %v10825_v60 }
 0x278   :  { %9511 = vmatpush3.bf16.msra.mxu0 %v10827_v12  ;;  %v10845_v12 = vld [vmem:[#allocation2 + $0x3c0] sm:$0xff]  }
 0x279   :  { %9512 = vmatprep.subr.bf16.mxu0 %v10830_v13 }
 0x27b   :  { %8623 = vmatmul.mubr.msk.bf16.gmra.mrb[64].mxu0 %vm150_vm0, %v10790_v57 }
 0x27c   :  { %1387 = vmatprep.mubr.bf16.mxu0 %v11369_v0  ;;  %9513 = vmatpush3.bf16.msra.mxu0 %v10831_v16  ;;  %v10847_v16 = vld [vmem:[#allocation2 + $0x408] sm:$0xff]  }
 0x27d   :  { %9514 = vmatprep.subr.bf16.mxu0 %v10834_v4  ;;  %v10849_v4 = vld [vmem:[#allocation2 + $0x448] sm:$0xff]  }
 0x280   :  { %9515 = vmatpush3.bf16.msra.mxu0 %v10835_v17  ;;  %v10848_v17 = vld [vmem:[#allocation2 + $0x3c8] sm:$0xff]  }
 0x281   :  { %9516 = vmatprep.subr.bf16.mxu0 %v10838_v18 }
 0x283   :  { %8624 = vmatmul.mubr.msk.bf16.gmra.mrb[68].mxu0 %vm150_vm0, %v10791_v9 }
 0x284   :  { %1397 = vmatprep.mubr.bf16.mxu0 %v11369_v0  ;;  %9517 = vmatpush3.bf16.msra.mxu0 %v10839_v20  ;;  %v10850_v20 = vld [vmem:[#allocation2 + $0x410] sm:$0xff]  }
 0x285   :  { %9518 = vmatprep.subr.bf16.mxu0 %v10842_v19 }
 0x288   :  { %9519 = vmatpush3.bf16.msra.mxu0 %v10843_v22  ;;  %v10852_v22 = vld [vmem:[#allocation2 + $0x450] sm:$0xff]  }
 0x289   :  { %10532 = vmatprep.subr.bf16.mxu0 %v11710_v23 }
 0x28b   :  { %8625 = vmatmul.mubr.msk.bf16.gmra.mrb[72].mxu0 %vm150_vm0, %v10792_v58  ;;  %v10837_v58 = vld [vmem:[#allocation2 + $0x2f0] sm:$0xff]  }
 0x28c   :  { %1407 = vmatprep.mubr.bf16.mxu0 %v11369_v0 }
 0x293   :  { %8626 = vmatmul.mubr.msk.bf16.gmra.mrb[76].mxu0 %vm150_vm0, %v10793_v44 }
 0x294   :  { %1417 = vmatprep.mubr.bf16.mxu0 %v11369_v0 }
 0x29b   :  { %8627 = vmatmul.mubr.msk.bf16.gmra.mrb[80].mxu0 %vm150_vm0, %v10794_v25 }
 0x29c   :  { %1427 = vmatprep.mubr.bf16.mxu0 %v11369_v0 }
 0x2a3   :  { %8628 = vmatmul.mubr.msk.bf16.gmra.mrb[84].mxu0 %vm150_vm0, %v10795_v61  ;;  %v10840_v61 = vld [vmem:[#allocation2 + $0x338] sm:$0xff]  }
 0x33e   :  { %v1359_v24 = vpop.f32.mrb[56].mxu0 }
 0x33f   :  { %v1361_v15 = vpop.f32.mrb[57].mxu0 }
 0x340   :  { %v1363_v26 = vpop.f32.mrb[58].mxu0 }
 0x341   :  { %v11713_v31 = vpack.c.bf16 %v1363_v26, %v1359_v24  ;;  %v1365_v32 = vpop.f32.mrb[59].mxu0 }
 0x342   :  { %v1439_v10 = vpack.c.bf16 %v1365_v32, %v1361_v15 }
 0x343   :  { %2072 = vmatmul.mubr.bf16.vlgmr.msra.gmra.mrb[48].mxu1 %v11713_v31 }
 0x344   :  { %2079 = vmatprep.mubr.bf16.mxu1 %v11643_v21  ;;  %9465 = vmatpush3.bf16.msra.mxu1 %v10817_v30  ;;  %v10851_v30 = vld [vmem:[#allocation2 + $0x3d0] sm:$0xff]  }
 0x345   :  { %9466 = vmatprep.subr.bf16.mxu1 %v10818_v34  ;;  %v10853_v34 = vld [vmem:[#allocation2 + $0x418] sm:$0xff]  }
 0x346   :  { %v1369_v39 = vpop.f32.mrb[60].mxu0 }
 0x347   :  { %v1371_v40 = vpop.f32.mrb[61].mxu0 }
 0x348   :  { %v1373_v3 = vpop.f32.mrb[62].mxu0  ;;  %9467 = vmatpush3.bf16.msra.mxu1 %v10820_v35  ;;  %v10856_v35 = vld [vmem:[#allocation2 + $0x420] sm:$0xff]  }
 0x349   :  { %v11717_v41 = vpack.c.bf16 %v1373_v3, %v1369_v39  ;;  %v1375_v42 = vpop.f32.mrb[63].mxu0  ;;  %9468 = vmatprep.subr.bf16.mxu1 %v10822_v63  ;;  %v10858_v39 = vld [vmem:[#allocation2 + $0x460] sm:$0xff]  }
 0x34a   :  { %v1441_v45 = vpack.c.bf16 %v1375_v42, %v1371_v40  ;;  %v10857_v42 = vld [vmem:[#allocation2 + $0x3e0] sm:$0xff]  }
 0x34b   :  { %2080 = vmatmul.mubr.bf16.gmra.mrb[52].mxu1 %v11717_v41 }
 0x34c   :  { %2087 = vmatprep.mubr.bf16.mxu1 %v11653_v11  ;;  %9469 = vmatpush3.bf16.msra.mxu1 %v10823_v5 }
 0x34d   :  { %9470 = vmatprep.subr.bf16.mxu1 %v10824_v43 }
 0x34e   :  { %v1379_v48 = vpop.f32.mrb[64].mxu0 }
 0x34f   :  { %v11721_v38 = vpop.f32.mrb[65].mxu0 }
 0x350   :  { %v1383_v50 = vpop.f32.mrb[66].mxu0  ;;  %9471 = vmatpush3.bf16.msra.mxu1 %v10826_v46  ;;  %v10860_v46 = vld [vmem:[#allocation2 + $0x3e8] sm:$0xff]  }
 0x351   :  { %v11723_v28 = vpack.c.bf16 %v1383_v50, %v1379_v48  ;;  %v1385_v51 = vpop.f32.mrb[67].mxu0  ;;  %9472 = vmatprep.subr.bf16.mxu1 %v10828_v47  ;;  %v10862_v48 = vld [vmem:[#allocation2 + $0x430] sm:$0xff]  }
 0x352   :  { %v1443_v53 = vpack.c.bf16 %v1385_v51, %v11721_v38  ;;  %v10864_v50 = vld [vmem:[#allocation2 + $0x470] sm:$0xff]  }
 0x353   :  { %2088 = vmatmul.mubr.bf16.gmra.mrb[56].mxu1 %v11723_v28 }
 0x354   :  { %2095 = vmatprep.mubr.bf16.mxu1 %v11662_v29  ;;  %9473 = vmatpush3.bf16.msra.mxu1 %v10829_v36 }
 0x355   :  { %9474 = vmatprep.subr.bf16.mxu1 %v10832_v52 }
 0x356   :  { %v1389_v56 = vpop.f32.mrb[68].mxu0 }
 0x357   :  { %v11728_v57 = vpop.f32.mrb[69].mxu0 }
 0x358   :  { %v1393_v9 = vpop.f32.mrb[70].mxu0  ;;  %9475 = vmatpush3.bf16.msra.mxu1 %v10833_v55 }
 0x359   :  { %v11730_v44 = vpack.c.bf16 %v1393_v9, %v1389_v56  ;;  %v11732_v25 = vpop.f32.mrb[71].mxu0  ;;  %9476 = vmatprep.subr.bf16.mxu1 %v10836_v33  ;;  %v10865_v33 = vld [vmem:[#allocation2 + $0x438] sm:$0xff]  }
 0x35a   :  { %v1445_v54 = vpack.c.bf16 %v11732_v25, %v11728_v57  ;;  %v10866_v56 = vld [vmem:[#allocation2 + $0x3f8] sm:$0xff]  }
 0x35b   :  { %2096 = vmatmul.mubr.bf16.gmra.mrb[60].mxu1 %v11730_v44 }
 0x35c   :  { %9477 = vmatpush3.bf16.msra.mxu1 %v10837_v58  ;;  %2136 = vmatprep.mubr.bf16.mxu1 %v1439_v10 }
 0x35d   :  { %9478 = vmatprep.subr.bf16.mxu1 %v10840_v61 }
 0x35e   :  { %v1399_v1 = vpop.f32.mrb[72].mxu0 }
 0x35f   :  { %v1401_v2 = vpop.f32.mrb[73].mxu0 }
 0x360   :  { %v1403_v6 = vpop.f32.mrb[74].mxu0  ;;  %9479 = vmatpush3.bf16.msra.mxu1 %v10841_v27 }
 0x361   :  { %v11737_v7 = vpack.c.bf16 %v1403_v6, %v1399_v1  ;;  %v1405_v60 = vpop.f32.mrb[75].mxu0  ;;  %9544 = vmatprep.subr.bf16.mxu1 %v10844_v62 }
 0x362   :  { %v1447_v13 = vpack.c.bf16 %v1405_v60, %v1401_v2 }
 0x363   :  { %2137 = vmatmul.mubr.bf16.vlgmr.msra.gmra.mrb[64].mxu1 %v11737_v7 }
 0x364   :  { %2144 = vmatprep.mubr.bf16.mxu1 %v1441_v45  ;;  %2201 = vmatprep.mubr.bf16.mxu0 %v1447_v13  ;;  %v10859_v45 = vld [vmem:[#allocation2 + $0x428] sm:$0xff]  }
 0x365   :  { %9545 = vmatpush3.bf16.msra.mxu1 %v10845_v12  ;;  %2202 = vmatmul.mubr.bf16.vlgmr.msra.gmra.mrb[88].mxu0 %v11639_v14  ;;  %v10855_v14 = vld [vmem:[#allocation2 + $0x458] sm:$0xff]  }
 0x366   :  { %v1409_v18 = vpop.f32.mrb[76].mxu0  ;;  %10533 = vmatpush3.bf16.msra.mxu0 %v11710_v23  ;;  %9546 = vmatprep.subr.bf16.mxu1 %v10847_v16  ;;  %v10854_v23 = vld [vmem:[#allocation2 + $0x3d8] sm:$0xff]   ;;  %v11768_v16 = vld [vmem:[#allocation6 + $0x1] ss:$0 sm:$0xff] }
 0x367   :  { %v1411_v19 = vpop.f32.mrb[77].mxu0  ;;  %10534 = vmatprep.subr.bf16.mxu0 %v10849_v4 }
 0x368   :  { %v1413_v24 = vpop.f32.mrb[78].mxu0 }
 0x369   :  { %v11742_v15 = vpack.c.bf16 %v1413_v24, %v1409_v18  ;;  %9547 = vmatpush3.bf16.msra.mxu1 %v10848_v17  ;;  %v1415_v26 = vpop.f32.mrb[79].mxu0 }
 0x36a   :  { %v1449_v32 = vpack.c.bf16 %v1415_v26, %v1411_v19  ;;  %10535 = vmatpush3.bf16.msra.mxu0 %v10849_v4  ;;  %9548 = vmatprep.subr.bf16.mxu1 %v10850_v20 }
 0x36b   :  { %2145 = vmatmul.mubr.bf16.gmra.mrb[68].mxu1 %v11742_v15  ;;  %10536 = vmatprep.subr.bf16.mxu0 %v10852_v22 }
 0x36c   :  { %2152 = vmatprep.mubr.bf16.mxu1 %v1443_v53  ;;  %2209 = vmatprep.mubr.bf16.mxu0 %v1449_v32  ;;  %v10863_v53 = vld [vmem:[#allocation2 + $0x3f0] sm:$0xff]  }
 0x36d   :  { %9549 = vmatpush3.bf16.msra.mxu1 %v10851_v30  ;;  %2210 = vmatmul.mubr.bf16.gmra.mrb[92].mxu0 %v11649_v37  ;;  %v10861_v37 = vld [vmem:[#allocation2 + $0x468] sm:$0xff]  }
 0x36e   :  { %v1419_v10 = vpop.f32.mrb[80].mxu0  ;;  %10537 = vmatpush3.bf16.msra.mxu0 %v10852_v22  ;;  %9550 = vmatprep.subr.bf16.mxu1 %v10853_v34 }
 0x36f   :  { %v1421_v63 = vpop.f32.mrb[81].mxu0  ;;  %10538 = vmatprep.subr.bf16.mxu0 %v10855_v14 }
 0x370   :  { %v1423_v40 = vpop.f32.mrb[82].mxu0 }
 0x371   :  { %v1450_v3 = vpack.c.bf16 %v1423_v40, %v1419_v10  ;;  %9551 = vmatpush3.bf16.msra.mxu1 %v10854_v23  ;;  %v1425_v5 = vpop.f32.mrb[83].mxu0 }
 0x372   :  { %v1451_v43 = vpack.c.bf16 %v1425_v5, %v1421_v63  ;;  %10539 = vmatpush3.bf16.msra.mxu0 %v10855_v14  ;;  %9552 = vmatprep.subr.bf16.mxu1 %v10856_v35  ;;  %v10876_v5 = vld [vmem:[#allocation2 + $0x4c0] sm:$0xff]  }
 0x373   :  { %2153 = vmatmul.mubr.bf16.gmra.mrb[72].mxu1 %v1450_v3  ;;  %10540 = vmatprep.subr.bf16.mxu0 %v10858_v39 }
 0x374   :  { %2160 = vmatprep.mubr.bf16.mxu1 %v1445_v54  ;;  %2217 = vmatprep.mubr.bf16.mxu0 %v1451_v43  ;;  %v10878_v43 = vld [vmem:[#allocation2 + $0x4c8] sm:$0xff]  }
 0x375   :  { %9553 = vmatpush3.bf16.msra.mxu1 %v10857_v42  ;;  %2218 = vmatmul.mubr.bf16.gmra.mrb[96].mxu0 %v11659_v49  ;;  %v10867_v49 = vld [vmem:[#allocation2 + $0x478] sm:$0xff]   ;;  %v10877_v42 = vld [vmem:[#allocation2 + $0x480] sm:$0xff]  }
 0x376   :  { %v1429_v47 = vpop.f32.mrb[84].mxu0  ;;  %10541 = vmatpush3.bf16.msra.mxu0 %v10858_v39  ;;  %9554 = vmatprep.subr.bf16.mxu1 %v10859_v45 }
 0x377   :  { %v1431_v38 = vpop.f32.mrb[85].mxu0  ;;  %10542 = vmatprep.subr.bf16.mxu0 %v10861_v37 }
 0x378   :  { %v1433_v36 = vpop.f32.mrb[86].mxu0 }
 0x379   :  { %v1452_v51 = vpack.c.bf16 %v1433_v36, %v1429_v47  ;;  %9555 = vmatpush3.bf16.msra.mxu1 %v10860_v46  ;;  %v1435_v52 = vpop.f32.mrb[87].mxu0 }
 0x37a   :  { %v1453_v55 = vpack.c.bf16 %v1435_v52, %v1431_v38  ;;  %10543 = vmatpush3.bf16.msra.mxu0 %v10861_v37  ;;  %9556 = vmatprep.subr.bf16.mxu1 %v10862_v48 }
 0x37b   :  { %2161 = vmatmul.mubr.bf16.gmra.mrb[76].mxu1 %v1452_v51  ;;  %10544 = vmatprep.subr.bf16.mxu0 %v10864_v50 }
 0x37c   :  { %2225 = vmatprep.mubr.bf16.mxu0 %v1453_v55  ;;  %2266 = vmatprep.mubr.bf16.mxu1 %v11632_v59  ;;  %v10879_v55 = vld [vmem:[#allocation2 + $0x488] sm:$0xff]  }
 0x37d   :  { %9557 = vmatpush3.bf16.msra.mxu1 %v10863_v53  ;;  %2226 = vmatmul.mubr.bf16.gmra.mrb[100].mxu0 %v11667_v8 }
 0x37e   :  { %10545 = vmatpush3.bf16.msra.mxu0 %v10864_v50  ;;  %10548 = vmatprep.mubr.bf16.mxu0 %v11737_v7 }
 0x37f   :  { %9558 = vmatprep.subr.bf16.mxu1 %v10865_v33  ;;  %10546 = vmatprep.subr.bf16.mxu0 %v10867_v49 }
 0x381   :  { %9559 = vmatpush3.bf16.msra.mxu1 %v10866_v56 }
 0x382   :  { %10547 = vmatpush3.bf16.msra.mxu0 %v10867_v49  ;;  %v10880_v49 = vld [vmem:[#allocation2 + $0x4d0] sm:$0xff]  }
 0x383   :  { %9596 = vmatprep.subr.bf16.mxu0 %v10876_v5  ;;  %v10888_v5 = vld [vmem:[#allocation2 + $0x4a8] sm:$0xff]  }
 0x384   :  { %2267 = vmatmul.mubr.bf16.vlgmr.msra.gmra.mrb[80].mxu1 %v11713_v31 }
 0x385   :  { %2274 = vmatprep.mubr.bf16.mxu1 %v11643_v21  ;;  %10549 = vmatmul.mubr.bf16.vlgmr.msra.gmra.mrb[104].mxu0 %v11742_v15 }
 0x386   :  { %10552 = vmatprep.mubr.bf16.mxu0 %v1450_v3  ;;  %9597 = vmatpush3.bf16.msra.mxu0 %v10877_v42 }
 0x387   :  { %9598 = vmatprep.subr.bf16.mxu0 %v10878_v43  ;;  %v10890_v43 = vld [vmem:[#allocation2 + $0x4f0] sm:$0xff]  }
 0x38a   :  { %9599 = vmatpush3.bf16.msra.mxu0 %v10879_v55 }
 0x38b   :  { %9600 = vmatprep.subr.bf16.mxu0 %v10880_v49 }
 0x38c   :  { %2275 = vmatmul.mubr.bf16.gmra.mrb[84].mxu1 %v11717_v41 }
 0x38d   :  { %2282 = vmatprep.mubr.bf16.mxu1 %v11653_v11  ;;  %10553 = vmatmul.mubr.bf16.gmra.mrb[108].mxu0 %v1452_v51 }
 0x394   :  { %2283 = vmatmul.mubr.bf16.gmra.mrb[88].mxu1 %v11723_v28 }
 0x395   :  { %2290 = vmatprep.mubr.bf16.mxu1 %v11662_v29 }
 0x39c   :  { %2291 = vmatmul.mubr.bf16.gmra.mrb[92].mxu1 %v11730_v44 }
 0x39d   :  { %2509 = vmatprep.mubr.bf16.mxu1 %v11369_v0 }
 0x416   :  { %v9440_v59 = vpop.f32.mrb[48].mxu1 }
 0x417   :  { %v9441_v8 = vpop.f32.mrb[49].mxu1 }
 0x418   :  { %v9442_v31 = vadd.f32 %v9441_v8, %v9440_v59  ;;  %v9443_v21 = vpop.f32.mrb[50].mxu1 }
 0x419   :  { %v9444_v57 = vpop.f32.mrb[51].mxu1 }
 0x41a   :  { %v9445_v9 = vadd.f32 %v9444_v57, %v9443_v21  ;;  %v2074_v18 = vadd.f32 %v9442_v31, %v11768_v16  ;;  %v10881_v57 = vld [vmem:[#allocation2 + $0x490] sm:$0xff]  }
 0x41b   :  { %9601 = vmatpush3.bf16.msra.mxu0 %v10881_v57 }
 0x41c   :  { %v2077_v26 = vadd.f32 %v9445_v9, %v11768_v16 }
 0x41e   :  { %v9446_v58 = vpop.f32.mrb[52].mxu1 }
 0x41f   :  { %v9447_v25 = vpop.f32.mrb[53].mxu1 }
 0x420   :  { %v9448_v41 = vadd.f32 %v9447_v25, %v9446_v58  ;;  %v9449_v61 = vpop.f32.mrb[54].mxu1  ;;  %v10882_v58 = vld [vmem:[#allocation2 + $0x4d8] sm:$0xff]  }
 0x421   :  { %v9450_v11 = vpop.f32.mrb[55].mxu1  ;;  %9602 = vmatprep.subr.bf16.mxu0 %v10882_v58 }
 0x422   :  { %v9451_v54 = vadd.f32 %v9450_v11, %v9449_v61  ;;  %v2082_v45 = vadd.f32 %v9448_v41, %v11768_v16 }
 0x424   :  { %v2085_v50 = vadd.f32 %v9451_v54, %v11768_v16 }
 0x426   :  { %v9452_v27 = vpop.f32.mrb[56].mxu1 }
 0x427   :  { %v9453_v28 = vpop.f32.mrb[57].mxu1 }
 0x428   :  { %v9454_v62 = vadd.f32 %v9453_v28, %v9452_v27  ;;  %v9455_v29 = vpop.f32.mrb[58].mxu1 }
 0x429   :  { %v9456_v1 = vpop.f32.mrb[59].mxu1 }
 0x42a   :  { %v11762_v44 = vadd.f32 %v9456_v1, %v9455_v29  ;;  %v2090_v25 = vadd.f32 %v9454_v62, %v11768_v16 }
 0x42c   :  { %v2093_v28 = vadd.f32 %v11762_v44, %v11768_v16  ;;  %v10886_v44 = vld [vmem:[#allocation2 + $0x4e8] sm:$0xff]  }
 0x42e   :  { %v9458_v2 = vpop.f32.mrb[60].mxu1 }
 0x42f   :  { %v9459_v6 = vpop.f32.mrb[61].mxu1 }
 0x430   :  { %v11764_v7 = vadd.f32 %v9459_v6, %v9458_v2  ;;  %v9461_v60 = vpop.f32.mrb[62].mxu1 }
 0x431   :  { %v9462_v12 = vpop.f32.mrb[63].mxu1 }
 0x432   :  { %v11766_v13 = vadd.f32 %v9462_v12, %v9461_v60  ;;  %v10883_v60 = vld [vmem:[#allocation2 + $0x498] sm:$0xff]  }
 0x433   :  { %9603 = vmatpush3.bf16.msra.mxu0 %v10883_v60 }
 0x436   :  { %v9480_v4 = vpop.f32.mrb[64].mxu1 }
 0x437   :  { %v9481_v17 = vpop.f32.mrb[65].mxu1 }
 0x438   :  { %v9482_v20 = vadd.f32 %v9481_v17, %v9480_v4  ;;  %v9483_v19 = vpop.f32.mrb[66].mxu1  ;;  %v9520_v22 = vpop.f32.mrb[88].mxu0  ;;  %v10884_v4 = vld [vmem:[#allocation2 + $0x4e0] sm:$0xff]  }
 0x439   :  { %v9484_v24 = vpop.f32.mrb[67].mxu1  ;;  %v9521_v15 = vpop.f32.mrb[89].mxu0  ;;  %9604 = vmatprep.subr.bf16.mxu0 %v10884_v4 }
 0x43a   :  { %v2139_v30 = vadd.f32 %v9482_v20, %v2074_v18  ;;  %v9485_v32 = vadd.f32 %v9484_v24, %v9483_v19  ;;  %v9522_v34 = vadd.f32 %v9521_v15, %v9520_v22  ;;  %v9523_v14 = vpop.f32.mrb[90].mxu0  ;;  %v10885_v22 = vld [vmem:[#allocation2 + $0x4a0] sm:$0xff]   ;;  %v2098_v15 = vadd.f32 %v11764_v7, %v11768_v16 }
 0x43b   :  { %v9524_v23 = vpop.f32.mrb[91].mxu0  ;;  %9605 = vmatpush3.bf16.msra.mxu0 %v10885_v22 }
 0x43c   :  { %v2142_v10 = vadd.f32 %v9485_v32, %v2077_v26  ;;  %v11772_v35 = vadd.f32 %v9522_v34, %v2139_v30  ;;  %v9525_v63 = vadd.f32 %v9524_v23, %v9523_v14  ;;  %v2101_v23 = vadd.f32 %v11766_v13, %v11768_v16  ;;  %9606 = vmatprep.subr.bf16.mxu0 %v10886_v44 }
 0x43e   :  { %v11774_v39 = vadd.f32 %v9525_v63, %v2142_v10  ;;  %v9486_v40 = vpop.f32.mrb[68].mxu1 }
 0x43f   :  { %v9487_v3 = vpop.f32.mrb[69].mxu1  ;;  %9607 = vmatpush3.bf16.msra.mxu0 %v10888_v5 }
 0x440   :  { %v9488_v37 = vadd.f32 %v9487_v3, %v9486_v40  ;;  %v9489_v46 = vpop.f32.mrb[70].mxu1  ;;  %v9526_v47 = vpop.f32.mrb[92].mxu0  ;;  %9608 = vmatprep.subr.bf16.mxu0 %v10890_v43 }
 0x441   :  { %v9490_v48 = vpop.f32.mrb[71].mxu1  ;;  %v9527_v38 = vpop.f32.mrb[93].mxu0 }
 0x442   :  { %v2147_v36 = vadd.f32 %v9488_v37, %v2082_v45  ;;  %v9491_v51 = vadd.f32 %v9490_v48, %v9489_v46  ;;  %v9528_v52 = vadd.f32 %v9527_v38, %v9526_v47  ;;  %v9529_v53 = vpop.f32.mrb[94].mxu0  ;;  %v10891_v47 = vld [vmem:[#allocation2 + $0x4b0] sm:$0xff]  }
 0x443   :  { %v9530_v33 = vpop.f32.mrb[95].mxu0  ;;  %9609 = vmatpush3.bf16.msra.mxu0 %v10891_v47 }
 0x444   :  { %v2150_v56 = vadd.f32 %v9491_v51, %v2085_v50  ;;  %v11778_v59 = vadd.f32 %v9528_v52, %v2147_v36  ;;  %v9531_v8 = vadd.f32 %v9530_v33, %v9529_v53 }
 0x446   :  { %v11780_v31 = vadd.f32 %v9531_v8, %v2150_v56  ;;  %v9492_v21 = vpop.f32.mrb[72].mxu1 }
 0x447   :  { %v9493_v9 = vpop.f32.mrb[73].mxu1 }
 0x448   :  { %v9494_v41 = vadd.f32 %v9493_v9, %v9492_v21  ;;  %v9495_v61 = vpop.f32.mrb[74].mxu1  ;;  %v9532_v11 = vpop.f32.mrb[96].mxu0 }
 0x449   :  { %v9496_v54 = vpop.f32.mrb[75].mxu1  ;;  %v9533_v27 = vpop.f32.mrb[97].mxu0 }
 0x44a   :  { %v2155_v29 = vadd.f32 %v9494_v41, %v2090_v25  ;;  %v9497_v1 = vadd.f32 %v9496_v54, %v9495_v61  ;;  %v9534_v2 = vadd.f32 %v9533_v27, %v9532_v11  ;;  %v9535_v6 = vpop.f32.mrb[98].mxu0 }
 0x44b   :  { %v9536_v12 = vpop.f32.mrb[99].mxu0 }
 0x44c   :  { %v2158_v17 = vadd.f32 %v9497_v1, %v2093_v28  ;;  %v11785_v18 = vadd.f32 %v9534_v2, %v2155_v29  ;;  %v9537_v62 = vadd.f32 %v9536_v12, %v9535_v6 }
 0x44e   :  { %v11787_v20 = vadd.f32 %v9537_v62, %v2158_v17  ;;  %v9498_v19 = vpop.f32.mrb[76].mxu1 }
 0x44f   :  { %v9499_v24 = vpop.f32.mrb[77].mxu1 }
 0x450   :  { %v9500_v26 = vadd.f32 %v9499_v24, %v9498_v19  ;;  %v9501_v30 = vpop.f32.mrb[78].mxu1  ;;  %v9538_v32 = vpop.f32.mrb[100].mxu0 }
 0x451   :  { %v9502_v34 = vpop.f32.mrb[79].mxu1  ;;  %v9539_v14 = vpop.f32.mrb[101].mxu0 }
 0x452   :  { %v2163_v10 = vadd.f32 %v9500_v26, %v2098_v15  ;;  %v9503_v63 = vadd.f32 %v9502_v34, %v9501_v30  ;;  %v9540_v40 = vadd.f32 %v9539_v14, %v9538_v32  ;;  %v9541_v3 = vpop.f32.mrb[102].mxu0 }
 0x453   :  { %v9542_v42 = vpop.f32.mrb[103].mxu0 }
 0x454   :  { %v2166_v45 = vadd.f32 %v9503_v63, %v2101_v23  ;;  %v11793_v37 = vadd.f32 %v9540_v40, %v2163_v10  ;;  %v9543_v7 = vadd.f32 %v9542_v42, %v9541_v3 }
 0x456   :  { %v11795_v46 = vadd.f32 %v9543_v7, %v2166_v45 }
 0x457   :  { %v9560_v48 = vpop.f32.mrb[80].mxu1 }
 0x458   :  { %v9561_v13 = vpop.f32.mrb[81].mxu1  ;;  %v10550_v16 = vpop.f32.mrb[104].mxu0 }
 0x459   :  { %v9562_v38 = vadd.f32 %v9561_v13, %v9560_v48  ;;  %v9563_v50 = vpop.f32.mrb[82].mxu1  ;;  %v2333_v36 = vpop.f32.mrb[105].mxu0 }
 0x45a   :  { %v9564_v51 = vpop.f32.mrb[83].mxu1  ;;  %v10551_v52 = vpop.f32.mrb[106].mxu0 }
 0x45b   :  { %v9565_v53 = vadd.f32 %v9564_v51, %v9563_v50  ;;  %v2269_v55 = vadd.f32 %v9562_v38, %v11772_v35  ;;  %v2336_v33 = vpop.f32.mrb[107].mxu0 }
 0x45d   :  { %v2334_v49 = vadd.f32 %v2333_v36, %v2269_v55  ;;  %v2272_v56 = vadd.f32 %v9565_v53, %v11774_v39 }
 0x45f   :  { %v2337_v8 = vadd.f32 %v2336_v33, %v2272_v56  ;;  %v9566_v21 = vpop.f32.mrb[84].mxu1  ;;  %v2364_v58 = vmax.f32 %v2334_v49, 0.0 }
 0x460   :  { %v9567_v57 = vpop.f32.mrb[85].mxu1  ;;  %v10554_v9 = vpop.f32.mrb[108].mxu0 }
 0x461   :  { %v2365_v25 = vmax.f32 %v2337_v8, 0.0  ;;  %v9568_v41 = vadd.f32 %v9567_v57, %v9566_v21  ;;  %v9569_v61 = vpop.f32.mrb[86].mxu1  ;;  %v2349_v11 = vpop.f32.mrb[109].mxu0 }
 0x462   :  { %v9570_v54 = vpop.f32.mrb[87].mxu1  ;;  %v10555_v27 = vpop.f32.mrb[110].mxu0 }
 0x463   :  { %v11799_v28 = vpack.c.bf16 %v2365_v25, %v2364_v58  ;;  %v2277_v29 = vadd.f32 %v9568_v41, %v11778_v59  ;;  %v9571_v35 = vadd.f32 %v9570_v54, %v9569_v61  ;;  %v2352_v1 = vpop.f32.mrb[111].mxu0  ;;  %v10889_v41 = vld [vmem:[#allocation2 + $0x580] sm:$0xff]   ;;  %v10869_v61 = vld [vmem:[%s12658_s1 + $0x88] sm:$0xff]   ;;  %v10871_v54 = vld [vmem:[%s12658_s1 + $0x98] sm:$0xff]  }
 0x465   :  { %v2342_v2 = vadd.f32 %v10550_v16, %v2277_v29  ;;  %v2280_v39 = vadd.f32 %v9571_v35, %v11780_v31  ;;  %3223 = vmatprep.mubr.bf16.mxu0 %v11799_v28  ;;  %v2376_v6 = vunpack.c.l.bf16 %v11799_v28  ;;  %v2377_v60 = vunpack.c.h.bf16 %v11799_v28  ;;  %v10873_v29 = vld [vmem:[%s12658_s1 + $0xa8] sm:$0xff]   ;;  %v10874_v35 = vld [vmem:[%s12658_s1 + $0xb0] sm:$0xff]  }
 0x467   :  { %v2345_v12 = vadd.f32 %v10551_v52, %v2280_v39  ;;  %v9572_v4 = vpop.f32.mrb[88].mxu1  ;;  %v2384_v17 = vsub.f32 %v2364_v58, %v2376_v6  ;;  %v2385_v62 = vsub.f32 %v2365_v25, %v2377_v60  ;;  %v2366_v59 = vmax.f32 %v2342_v2, 0.0  ;;  %v10887_v58 = vld [vmem:[#allocation2 + $0x5c0] sm:$0xff]   ;;  %v10892_v2 = vld [vmem:[#allocation2 + $0x4f8] sm:$0xff]   ;;  %v10893_v6 = vld [vmem:[#allocation2 + $0x5c8] sm:$0xff]  }
 0x468   :  { %v9573_v19 = vpop.f32.mrb[89].mxu1  ;;  %v10868_v25 = vld [vmem:[%s12658_s1 + $0x80] sm:$0xff]   ;;  %v10894_v39 = vld [vmem:[#allocation2 + $0x4b8] sm:$0xff]   ;;  %9610 = vmatprep.subr.bf16.mxu0 %v10892_v2  ;;  %v10895_v60 = vld [vmem:[#allocation2 + $0x588] sm:$0xff]  }
 0x469   :  { %v9574_v22 = vadd.f32 %v9573_v19, %v9572_v4  ;;  %v9575_v24 = vpop.f32.mrb[90].mxu1  ;;  %v11806_v44 = vpack.c.bf16 %v2385_v62, %v2384_v17  ;;  %v2367_v15 = vmax.f32 %v2345_v12, 0.0  ;;  %9611 = vmatpush3.bf16.msra.mxu0 %v10894_v39  ;;  %v10896_v12 = vld [vmem:[#allocation2 + $0x540] sm:$0xff]   ;;  %v10899_v4 = vld [vmem:[#allocation2 + $0x5d0] sm:$0xff]   ;;  %v10905_v62 = vld [vmem:[#allocation2 + $0x5d8] sm:$0xff]  }
 0x46a   :  { %v9576_v26 = vpop.f32.mrb[91].mxu1  ;;  %9636 = vmatprep.subr.bf16.mxu0 %v10896_v12  ;;  %v10901_v17 = vld [vmem:[#allocation2 + $0x590] sm:$0xff]   ;;  %v10907_v19 = vld [vmem:[#allocation2 + $0x598] sm:$0xff]  }
 0x46b   :  { %v2285_v31 = vadd.f32 %v9574_v22, %v11785_v18  ;;  %v9577_v30 = vadd.f32 %v9576_v26, %v9575_v24  ;;  %2477 = vmatprep.subr.bf16.mxu1 %v11806_v44  ;;  %v11810_v32 = vpack.c.bf16 %v2367_v15, %v2366_v59  ;;  %v10910_v22 = vld [vmem:[#allocation2 + $0x5e0] sm:$0xff]   ;;  %v10918_v26 = vld [vmem:[#allocation2 + $0x5f0] sm:$0xff]   ;;  %v10921_v39 = vld [vmem:[#allocation2 + $0x538] sm:$0xff]  }
 0x46c   :  { %2478 = vmatpush1.bf16.msra.mxu1 %v11799_v28  ;;  %v10911_v24 = vld [vmem:[#allocation2 + $0x5a0] sm:$0xff]  }
 0x46d   :  { %v2350_v34 = vadd.f32 %v2349_v11, %v2285_v31  ;;  %v2288_v14 = vadd.f32 %v9577_v30, %v11787_v20  ;;  %v2378_v23 = vunpack.c.l.bf16 %v11810_v32  ;;  %v2379_v10 = vunpack.c.h.bf16 %v11810_v32  ;;  %v10870_v11 = vld [vmem:[%s12658_s1 + $0x90] sm:$0xff]   ;;  %v10922_v30 = vld [vmem:[#allocation2 + $0x5f8] sm:$0xff]  }
 0x46e   :  { %v10919_v31 = vld [vmem:[#allocation2 + $0x5b0] sm:$0xff]  }
 0x46f   :  { %v2353_v63 = vadd.f32 %v2352_v1, %v2288_v14  ;;  %v9578_v40 = vpop.f32.mrb[92].mxu1  ;;  %v2386_v3 = vsub.f32 %v2366_v59, %v2378_v23  ;;  %v2387_v5 = vsub.f32 %v2367_v15, %v2379_v10  ;;  %v2368_v7 = vmax.f32 %v2350_v34, 0.0  ;;  %v10875_v1 = vld [vmem:[%s12658_s1 + $0xb8] sm:$0xff]   ;;  %v10914_v59 = vld [vmem:[#allocation2 + $0x5e8] sm:$0xff]   ;;  %v11877_v14 = vld [vmem:[#allocation2 + $0x680] sm:$0xff]  }
 0x470   :  { %v9579_v42 = vpop.f32.mrb[93].mxu1  ;;  %v10915_v15 = vld [vmem:[#allocation2 + $0x5a8] sm:$0xff]   ;;  %v10923_v34 = vld [vmem:[#allocation2 + $0x5b8] sm:$0xff]  }
 0x471   :  { %v9580_v18 = vadd.f32 %v9579_v42, %v9578_v40  ;;  %v9581_v43 = vpop.f32.mrb[94].mxu1  ;;  %v11816_v45 = vpack.c.bf16 %v2387_v5, %v2386_v3  ;;  %v2369_v47 = vmax.f32 %v2353_v63, 0.0  ;;  %v10897_v40 = vld [vmem:[#allocation2 + $0x500] sm:$0xff]   ;;  %v10898_v42 = vld [vmem:[#allocation2 + $0x548] sm:$0xff]  }
 0x472   :  { %v9582_v48 = vpop.f32.mrb[95].mxu1 }
 0x473   :  { %v2293_v13 = vadd.f32 %v9580_v18, %v11793_v37  ;;  %v9583_v16 = vadd.f32 %v9582_v48, %v9581_v43  ;;  %2479 = vmatprep.subr.bf16.mxu1 %v11816_v45  ;;  %v11820_v20 = vpack.c.bf16 %v2369_v47, %v2368_v7  ;;  %v10900_v43 = vld [vmem:[#allocation2 + $0x508] sm:$0xff]  }
 0x474   :  { %2480 = vmatpush1.bf16.msra.mxu1 %v11810_v32 }
 0x475   :  { %v2358_v38 = vadd.f32 %v10554_v9, %v2293_v13  ;;  %v2296_v50 = vadd.f32 %v9583_v16, %v11795_v46  ;;  %v2380_v36 = vunpack.c.l.bf16 %v11820_v20  ;;  %v2381_v51 = vunpack.c.h.bf16 %v11820_v20  ;;  %v10903_v16 = vld [vmem:[#allocation2 + $0x510] sm:$0xff]  }
 0x477   :  { %v2361_v52 = vadd.f32 %v10555_v27, %v2296_v50  ;;  %v2388_v53 = vsub.f32 %v2368_v7, %v2380_v36  ;;  %v2389_v55 = vsub.f32 %v2369_v47, %v2381_v51  ;;  %v2370_v37 = vmax.f32 %v2358_v38, 0.0  ;;  %v10872_v27 = vld [vmem:[%s12658_s1 + $0xa0] sm:$0xff]   ;;  %v10902_v7 = vld [vmem:[#allocation2 + $0x550] sm:$0xff]   ;;  %v10904_v36 = vld [vmem:[#allocation2 + $0x558] sm:$0xff]  }
 0x479   :  { %v11826_v33 = vpack.c.bf16 %v2389_v55, %v2388_v53  ;;  %v2371_v49 = vmax.f32 %v2361_v52, 0.0  ;;  %v10906_v52 = vld [vmem:[#allocation2 + $0x518] sm:$0xff]   ;;  %v10908_v53 = vld [vmem:[#allocation2 + $0x560] sm:$0xff]  }
 0x47b   :  { %2481 = vmatprep.subr.bf16.mxu1 %v11826_v33  ;;  %v11829_v56 = vpack.c.bf16 %v2371_v49, %v2370_v37 }
 0x47c   :  { %2482 = vmatpush1.bf16.msra.mxu1 %v11820_v20 }
 0x47d   :  { %v2382_v8 = vunpack.c.l.bf16 %v11829_v56  ;;  %v2383_v46 = vunpack.c.h.bf16 %v11829_v56 }
 0x47f   :  { %v2390_v21 = vsub.f32 %v2370_v37, %v2382_v8  ;;  %v2391_v57 = vsub.f32 %v2371_v49, %v2383_v46  ;;  %v10909_v8 = vld [vmem:[#allocation2 + $0x520] sm:$0xff]  }
 0x481   :  { %v11834_v9 = vpack.c.bf16 %v2391_v57, %v2390_v21  ;;  %v10912_v57 = vld [vmem:[#allocation2 + $0x568] sm:$0xff]  }
 0x483   :  { %2483 = vmatprep.subr.bf16.mxu1 %v11834_v9 }
 0x484   :  { %2484 = vmatpush1.bf16.msra.mxu1 %v11829_v56 }
 0x485   :  { %9676 = vmatprep.subr.bf16.mxu1 %v10887_v58 }
 0x487   :  { %8726 = vmatmul.mubr.msk.bf16.vlgmr.msra.gmra.mrb[96].mxu1 %vm150_vm0, %v10868_v25  ;;  %v10913_v25 = vld [vmem:[#allocation2 + $0x528] sm:$0xff]  }
 0x488   :  { %2519 = vmatprep.mubr.bf16.mxu1 %v11369_v0  ;;  %9677 = vmatpush3.bf16.msra.mxu1 %v10889_v41  ;;  %v10916_v41 = vld [vmem:[#allocation2 + $0x570] sm:$0xff]  }
 0x489   :  { %9678 = vmatprep.subr.bf16.mxu1 %v10893_v6  ;;  %v10924_v6 = vld [vmem:[#allocation2 + $0x640] sm:$0xff]  }
 0x48c   :  { %9679 = vmatpush3.bf16.msra.mxu1 %v10895_v60 }
 0x48d   :  { %9680 = vmatprep.subr.bf16.mxu1 %v10899_v4 }
 0x48f   :  { %8727 = vmatmul.mubr.msk.bf16.gmra.mrb[100].mxu1 %vm150_vm0, %v10869_v61 }
 0x490   :  { %2529 = vmatprep.mubr.bf16.mxu1 %v11369_v0  ;;  %9681 = vmatpush3.bf16.msra.mxu1 %v10901_v17 }
 0x491   :  { %9682 = vmatprep.subr.bf16.mxu1 %v10905_v62 }
 0x494   :  { %9683 = vmatpush3.bf16.msra.mxu1 %v10907_v19  ;;  %v10925_v19 = vld [vmem:[#allocation2 + $0x600] sm:$0xff]  }
 0x495   :  { %9684 = vmatprep.subr.bf16.mxu1 %v10910_v22 }
 0x497   :  { %8728 = vmatmul.mubr.msk.bf16.gmra.mrb[104].mxu1 %vm150_vm0, %v10870_v11 }
 0x498   :  { %2539 = vmatprep.mubr.bf16.mxu1 %v11369_v0  ;;  %9685 = vmatpush3.bf16.msra.mxu1 %v10911_v24  ;;  %v10927_v24 = vld [vmem:[#allocation2 + $0x648] sm:$0xff]  }
 0x499   :  { %9686 = vmatprep.subr.bf16.mxu1 %v10914_v59  ;;  %v10929_v59 = vld [vmem:[#allocation2 + $0x688] sm:$0xff]  }
 0x49c   :  { %9687 = vmatpush3.bf16.msra.mxu1 %v10915_v15  ;;  %v10928_v15 = vld [vmem:[#allocation2 + $0x608] sm:$0xff]  }
 0x49d   :  { %9688 = vmatprep.subr.bf16.mxu1 %v10918_v26 }
 0x49f   :  { %8729 = vmatmul.mubr.msk.bf16.gmra.mrb[108].mxu1 %vm150_vm0, %v10871_v54 }
 0x4a0   :  { %2549 = vmatprep.mubr.bf16.mxu1 %v11369_v0  ;;  %9689 = vmatpush3.bf16.msra.mxu1 %v10919_v31  ;;  %v10930_v31 = vld [vmem:[#allocation2 + $0x650] sm:$0xff]  }
 0x4a1   :  { %9690 = vmatprep.subr.bf16.mxu1 %v10922_v30 }
 0x4a4   :  { %9691 = vmatpush3.bf16.msra.mxu1 %v10923_v34  ;;  %v10932_v34 = vld [vmem:[#allocation2 + $0x690] sm:$0xff]  }
 0x4a5   :  { %10556 = vmatprep.subr.bf16.mxu1 %v11877_v14 }
 0x4a7   :  { %8730 = vmatmul.mubr.msk.bf16.gmra.mrb[112].mxu1 %vm150_vm0, %v10872_v27  ;;  %v10917_v27 = vld [vmem:[#allocation2 + $0x530] sm:$0xff]  }
 0x4a8   :  { %2559 = vmatprep.mubr.bf16.mxu1 %v11369_v0 }
 0x4af   :  { %8731 = vmatmul.mubr.msk.bf16.gmra.mrb[116].mxu1 %vm150_vm0, %v10873_v29 }
 0x4b0   :  { %2569 = vmatprep.mubr.bf16.mxu1 %v11369_v0 }
 0x4b7   :  { %8732 = vmatmul.mubr.msk.bf16.gmra.mrb[120].mxu1 %vm150_vm0, %v10874_v35 }
 0x4b8   :  { %2579 = vmatprep.mubr.bf16.mxu1 %v11369_v0 }
 0x4bf   :  { %8733 = vmatmul.mubr.msk.bf16.gmra.mrb[124].mxu1 %vm150_vm0, %v10875_v1  ;;  %v10920_v1 = vld [vmem:[#allocation2 + $0x578] sm:$0xff]  }
 0x55a   :  { %v2511_v23 = vpop.f32.mrb[96].mxu1 }
 0x55b   :  { %v2513_v10 = vpop.f32.mrb[97].mxu1 }
 0x55c   :  { %v2515_v63 = vpop.f32.mrb[98].mxu1 }
 0x55d   :  { %v11880_v3 = vpack.c.bf16 %v2515_v63, %v2511_v23  ;;  %v2517_v5 = vpop.f32.mrb[99].mxu1 }
 0x55e   :  { %v2591_v18 = vpack.c.bf16 %v2517_v5, %v2513_v10 }
 0x55f   :  { %3224 = vmatmul.mubr.bf16.vlgmr.msra.gmra.mrb[112].mxu0 %v11880_v3 }
 0x560   :  { %3231 = vmatprep.mubr.bf16.mxu0 %v11810_v32  ;;  %9637 = vmatpush3.bf16.msra.mxu0 %v10897_v40  ;;  %v10931_v40 = vld [vmem:[#allocation2 + $0x610] sm:$0xff]  }
 0x561   :  { %9638 = vmatprep.subr.bf16.mxu0 %v10898_v42  ;;  %v10933_v42 = vld [vmem:[#allocation2 + $0x658] sm:$0xff]  }
 0x562   :  { %v2521_v47 = vpop.f32.mrb[100].mxu1 }
 0x563   :  { %v2523_v48 = vpop.f32.mrb[101].mxu1 }
 0x564   :  { %v2525_v13 = vpop.f32.mrb[102].mxu1  ;;  %9639 = vmatpush3.bf16.msra.mxu0 %v10900_v43  ;;  %v10936_v43 = vld [vmem:[#allocation2 + $0x660] sm:$0xff]  }
 0x565   :  { %v11884_v38 = vpack.c.bf16 %v2525_v13, %v2521_v47  ;;  %v2527_v50 = vpop.f32.mrb[103].mxu1  ;;  %9640 = vmatprep.subr.bf16.mxu0 %v10902_v7  ;;  %v10938_v47 = vld [vmem:[#allocation2 + $0x6a0] sm:$0xff]  }
 0x566   :  { %v2593_v51 = vpack.c.bf16 %v2527_v50, %v2523_v48  ;;  %v10937_v50 = vld [vmem:[#allocation2 + $0x620] sm:$0xff]  }
 0x567   :  { %3232 = vmatmul.mubr.bf16.gmra.mrb[116].mxu0 %v11884_v38 }
 0x568   :  { %3239 = vmatprep.mubr.bf16.mxu0 %v11820_v20  ;;  %9641 = vmatpush3.bf16.msra.mxu0 %v10903_v16 }
 0x569   :  { %9642 = vmatprep.subr.bf16.mxu0 %v10904_v36 }
 0x56a   :  { %v2531_v55 = vpop.f32.mrb[104].mxu1 }
 0x56b   :  { %v11888_v37 = vpop.f32.mrb[105].mxu1 }
 0x56c   :  { %v2535_v49 = vpop.f32.mrb[106].mxu1  ;;  %9643 = vmatpush3.bf16.msra.mxu0 %v10906_v52  ;;  %v10940_v52 = vld [vmem:[#allocation2 + $0x628] sm:$0xff]  }
 0x56d   :  { %v11890_v46 = vpack.c.bf16 %v2535_v49, %v2531_v55  ;;  %v2537_v21 = vpop.f32.mrb[107].mxu1  ;;  %9644 = vmatprep.subr.bf16.mxu0 %v10908_v53  ;;  %v10942_v55 = vld [vmem:[#allocation2 + $0x670] sm:$0xff]  }
 0x56e   :  { %v2595_v58 = vpack.c.bf16 %v2537_v21, %v11888_v37  ;;  %v10944_v49 = vld [vmem:[#allocation2 + $0x6b0] sm:$0xff]  }
 0x56f   :  { %3240 = vmatmul.mubr.bf16.gmra.mrb[120].mxu0 %v11890_v46 }
 0x570   :  { %3247 = vmatprep.mubr.bf16.mxu0 %v11829_v56  ;;  %9645 = vmatpush3.bf16.msra.mxu0 %v10909_v8 }
 0x571   :  { %9646 = vmatprep.subr.bf16.mxu0 %v10912_v57 }
 0x572   :  { %v2541_v61 = vpop.f32.mrb[108].mxu1 }
 0x573   :  { %v11895_v11 = vpop.f32.mrb[109].mxu1 }
 0x574   :  { %v2545_v54 = vpop.f32.mrb[110].mxu1  ;;  %9647 = vmatpush3.bf16.msra.mxu0 %v10913_v25 }
 0x575   :  { %v11897_v29 = vpack.c.bf16 %v2545_v54, %v2541_v61  ;;  %v11899_v35 = vpop.f32.mrb[111].mxu1  ;;  %9648 = vmatprep.subr.bf16.mxu0 %v10916_v41  ;;  %v10945_v41 = vld [vmem:[#allocation2 + $0x678] sm:$0xff]  }
 0x576   :  { %v2597_v2 = vpack.c.bf16 %v11899_v35, %v11895_v11  ;;  %v10946_v61 = vld [vmem:[#allocation2 + $0x638] sm:$0xff]  }
 0x577   :  { %3248 = vmatmul.mubr.bf16.gmra.mrb[124].mxu0 %v11897_v29 }
 0x578   :  { %9649 = vmatpush3.bf16.msra.mxu0 %v10917_v27  ;;  %3288 = vmatprep.mubr.bf16.mxu0 %v2591_v18 }
 0x579   :  { %9650 = vmatprep.subr.bf16.mxu0 %v10920_v1 }
 0x57a   :  { %v2551_v60 = vpop.f32.mrb[112].mxu1 }
 0x57b   :  { %v2553_v12 = vpop.f32.mrb[113].mxu1 }
 0x57c   :  { %v2555_v4 = vpop.f32.mrb[114].mxu1  ;;  %9651 = vmatpush3.bf16.msra.mxu0 %v10921_v39 }
 0x57d   :  { %v11904_v17 = vpack.c.bf16 %v2555_v4, %v2551_v60  ;;  %v2557_v62 = vpop.f32.mrb[115].mxu1  ;;  %9716 = vmatprep.subr.bf16.mxu0 %v10924_v6 }
 0x57e   :  { %v2599_v22 = vpack.c.bf16 %v2557_v62, %v2553_v12 }
 0x57f   :  { %3289 = vmatmul.mubr.bf16.vlgmr.msra.gmra.mrb[128].mxu0 %v11904_v17 }
 0x580   :  { %3296 = vmatprep.mubr.bf16.mxu0 %v2593_v51  ;;  %3353 = vmatprep.mubr.bf16.mxu1 %v2599_v22  ;;  %v10939_v51 = vld [vmem:[#allocation2 + $0x668] sm:$0xff]  }
 0x581   :  { %9717 = vmatpush3.bf16.msra.mxu0 %v10925_v19  ;;  %3354 = vmatmul.mubr.bf16.vlgmr.msra.gmra.mrb[128].mxu1 %v11806_v44  ;;  %v10935_v44 = vld [vmem:[#allocation2 + $0x698] sm:$0xff]  }
 0x582   :  { %v2561_v26 = vpop.f32.mrb[116].mxu1  ;;  %10557 = vmatpush3.bf16.msra.mxu1 %v11877_v14  ;;  %9718 = vmatprep.subr.bf16.mxu0 %v10927_v24  ;;  %v10934_v14 = vld [vmem:[#allocation2 + $0x618] sm:$0xff]   ;;  %v11935_v24 = vld [vmem:[#allocation6 + $0x2] ss:$0 sm:$0xff] }
 0x583   :  { %v2563_v30 = vpop.f32.mrb[117].mxu1  ;;  %10558 = vmatprep.subr.bf16.mxu1 %v10929_v59 }
 0x584   :  { %v2565_v23 = vpop.f32.mrb[118].mxu1 }
 0x585   :  { %v11909_v10 = vpack.c.bf16 %v2565_v23, %v2561_v26  ;;  %9719 = vmatpush3.bf16.msra.mxu0 %v10928_v15  ;;  %v2567_v63 = vpop.f32.mrb[119].mxu1 }
 0x586   :  { %v2601_v5 = vpack.c.bf16 %v2567_v63, %v2563_v30  ;;  %10559 = vmatpush3.bf16.msra.mxu1 %v10929_v59  ;;  %9720 = vmatprep.subr.bf16.mxu0 %v10930_v31 }
 0x587   :  { %3297 = vmatmul.mubr.bf16.gmra.mrb[132].mxu0 %v11909_v10  ;;  %10560 = vmatprep.subr.bf16.mxu1 %v10932_v34 }
 0x588   :  { %3304 = vmatprep.mubr.bf16.mxu0 %v2595_v58  ;;  %3361 = vmatprep.mubr.bf16.mxu1 %v2601_v5  ;;  %v10943_v58 = vld [vmem:[#allocation2 + $0x630] sm:$0xff]  }
 0x589   :  { %9721 = vmatpush3.bf16.msra.mxu0 %v10931_v40  ;;  %3362 = vmatmul.mubr.bf16.gmra.mrb[132].mxu1 %v11816_v45  ;;  %v10941_v45 = vld [vmem:[#allocation2 + $0x6a8] sm:$0xff]  }
 0x58a   :  { %v2571_v18 = vpop.f32.mrb[120].mxu1  ;;  %10561 = vmatpush3.bf16.msra.mxu1 %v10932_v34  ;;  %9722 = vmatprep.subr.bf16.mxu0 %v10933_v42 }
 0x58b   :  { %v2573_v7 = vpop.f32.mrb[121].mxu1  ;;  %10562 = vmatprep.subr.bf16.mxu1 %v10935_v44 }
 0x58c   :  { %v2575_v48 = vpop.f32.mrb[122].mxu1 }
 0x58d   :  { %v2602_v13 = vpack.c.bf16 %v2575_v48, %v2571_v18  ;;  %9723 = vmatpush3.bf16.msra.mxu0 %v10934_v14  ;;  %v2577_v16 = vpop.f32.mrb[123].mxu1 }
 0x58e   :  { %v2603_v36 = vpack.c.bf16 %v2577_v16, %v2573_v7  ;;  %10563 = vmatpush3.bf16.msra.mxu1 %v10935_v44  ;;  %9724 = vmatprep.subr.bf16.mxu0 %v10936_v43  ;;  %v10956_v16 = vld [vmem:[#allocation2 + $0x700] sm:$0xff]  }
 0x58f   :  { %3305 = vmatmul.mubr.bf16.gmra.mrb[136].mxu0 %v2602_v13  ;;  %10564 = vmatprep.subr.bf16.mxu1 %v10938_v47 }
 0x590   :  { %3312 = vmatprep.mubr.bf16.mxu0 %v2597_v2  ;;  %3369 = vmatprep.mubr.bf16.mxu1 %v2603_v36  ;;  %v10958_v36 = vld [vmem:[#allocation2 + $0x708] sm:$0xff]  }
 0x591   :  { %9725 = vmatpush3.bf16.msra.mxu0 %v10937_v50  ;;  %3370 = vmatmul.mubr.bf16.gmra.mrb[136].mxu1 %v11826_v33  ;;  %v10947_v33 = vld [vmem:[#allocation2 + $0x6b8] sm:$0xff]   ;;  %v10957_v50 = vld [vmem:[#allocation2 + $0x6c0] sm:$0xff]  }
 0x592   :  { %v2581_v53 = vpop.f32.mrb[124].mxu1  ;;  %10565 = vmatpush3.bf16.msra.mxu1 %v10938_v47  ;;  %9726 = vmatprep.subr.bf16.mxu0 %v10939_v51 }
 0x593   :  { %v2583_v37 = vpop.f32.mrb[125].mxu1  ;;  %10566 = vmatprep.subr.bf16.mxu1 %v10941_v45 }
 0x594   :  { %v2585_v8 = vpop.f32.mrb[126].mxu1 }
 0x595   :  { %v2604_v21 = vpack.c.bf16 %v2585_v8, %v2581_v53  ;;  %9727 = vmatpush3.bf16.msra.mxu0 %v10940_v52  ;;  %v2587_v57 = vpop.f32.mrb[127].mxu1 }
 0x596   :  { %v2605_v25 = vpack.c.bf16 %v2587_v57, %v2583_v37  ;;  %10567 = vmatpush3.bf16.msra.mxu1 %v10941_v45  ;;  %9728 = vmatprep.subr.bf16.mxu0 %v10942_v55 }
 0x597   :  { %3313 = vmatmul.mubr.bf16.gmra.mrb[140].mxu0 %v2604_v21  ;;  %10568 = vmatprep.subr.bf16.mxu1 %v10944_v49 }
 0x598   :  { %3377 = vmatprep.mubr.bf16.mxu1 %v2605_v25  ;;  %3418 = vmatprep.mubr.bf16.mxu0 %v11799_v28  ;;  %v10959_v25 = vld [vmem:[#allocation2 + $0x6c8] sm:$0xff]  }
 0x599   :  { %9729 = vmatpush3.bf16.msra.mxu0 %v10943_v58  ;;  %3378 = vmatmul.mubr.bf16.gmra.mrb[140].mxu1 %v11834_v9 }
 0x59a   :  { %10569 = vmatpush3.bf16.msra.mxu1 %v10944_v49  ;;  %10572 = vmatprep.mubr.bf16.mxu1 %v11904_v17 }
 0x59b   :  { %9730 = vmatprep.subr.bf16.mxu0 %v10945_v41  ;;  %10570 = vmatprep.subr.bf16.mxu1 %v10947_v33 }
 0x59d   :  { %9731 = vmatpush3.bf16.msra.mxu0 %v10946_v61 }
 0x59e   :  { %10571 = vmatpush3.bf16.msra.mxu1 %v10947_v33  ;;  %9768 = vmatprep.subr.bf16.mxu0 %v10956_v16  ;;  %v10960_v33 = vld [vmem:[#allocation2 + $0x710] sm:$0xff]   ;;  %v10968_v16 = vld [vmem:[#allocation2 + $0x6e8] sm:$0xff]  }
 0x5a0   :  { %3419 = vmatmul.mubr.bf16.vlgmr.msra.gmra.mrb[144].mxu0 %v11880_v3 }
 0x5a1   :  { %3426 = vmatprep.mubr.bf16.mxu0 %v11810_v32  ;;  %10573 = vmatmul.mubr.bf16.vlgmr.msra.gmra.mrb[144].mxu1 %v11909_v10 }
 0x5a2   :  { %10576 = vmatprep.mubr.bf16.mxu1 %v2602_v13  ;;  %9769 = vmatpush3.bf16.msra.mxu0 %v10957_v50 }
 0x5a3   :  { %9770 = vmatprep.subr.bf16.mxu0 %v10958_v36  ;;  %v10970_v36 = vld [vmem:[#allocation2 + $0x730] sm:$0xff]  }
 0x5a6   :  { %9771 = vmatpush3.bf16.msra.mxu0 %v10959_v25 }
 0x5a7   :  { %9772 = vmatprep.subr.bf16.mxu0 %v10960_v33 }
 0x5a8   :  { %3427 = vmatmul.mubr.bf16.gmra.mrb[148].mxu0 %v11884_v38 }
 0x5a9   :  { %3434 = vmatprep.mubr.bf16.mxu0 %v11820_v20  ;;  %10577 = vmatmul.mubr.bf16.gmra.mrb[148].mxu1 %v2604_v21 }
 0x5aa   :  { %3661 = vmatprep.mubr.bf16.mxu1 %v11369_v0 }
 0x5b0   :  { %3435 = vmatmul.mubr.bf16.gmra.mrb[152].mxu0 %v11890_v46 }
 0x5b1   :  { %3442 = vmatprep.mubr.bf16.mxu0 %v11829_v56 }
 0x5b8   :  { %3443 = vmatmul.mubr.bf16.gmra.mrb[156].mxu0 %v11897_v29 }
 0x632   :  { %v9612_v28 = vpop.f32.mrb[112].mxu0 }
 0x633   :  { %v9613_v9 = vpop.f32.mrb[113].mxu0 }
 0x634   :  { %v9614_v3 = vadd.f32 %v9613_v9, %v9612_v28  ;;  %v9615_v32 = vpop.f32.mrb[114].mxu0 }
 0x635   :  { %v9616_v11 = vpop.f32.mrb[115].mxu0 }
 0x636   :  { %v9617_v54 = vadd.f32 %v9616_v11, %v9615_v32  ;;  %v3226_v26 = vadd.f32 %v9614_v3, %v11935_v24  ;;  %v10961_v11 = vld [vmem:[#allocation2 + $0x6d0] sm:$0xff]  }
 0x637   :  { %9773 = vmatpush3.bf16.msra.mxu0 %v10961_v11 }
 0x638   :  { %v3229_v40 = vadd.f32 %v9617_v54, %v11935_v24 }
 0x63a   :  { %v9618_v27 = vpop.f32.mrb[116].mxu0 }
 0x63b   :  { %v9619_v35 = vpop.f32.mrb[117].mxu0 }
 0x63c   :  { %v9620_v38 = vadd.f32 %v9619_v35, %v9618_v27  ;;  %v9621_v1 = vpop.f32.mrb[118].mxu0  ;;  %v10962_v27 = vld [vmem:[#allocation2 + $0x718] sm:$0xff]  }
 0x63d   :  { %v9622_v20 = vpop.f32.mrb[119].mxu0  ;;  %9774 = vmatprep.subr.bf16.mxu0 %v10962_v27 }
 0x63e   :  { %v9623_v2 = vadd.f32 %v9622_v20, %v9621_v1  ;;  %v3234_v51 = vadd.f32 %v9620_v38, %v11935_v24 }
 0x640   :  { %v3237_v8 = vadd.f32 %v9623_v2, %v11935_v24 }
 0x642   :  { %v9624_v39 = vpop.f32.mrb[120].mxu0 }
 0x643   :  { %v9625_v6 = vpop.f32.mrb[121].mxu0 }
 0x644   :  { %v9626_v60 = vadd.f32 %v9625_v6, %v9624_v39  ;;  %v9627_v46 = vpop.f32.mrb[122].mxu0 }
 0x645   :  { %v9628_v12 = vpop.f32.mrb[123].mxu0 }
 0x646   :  { %v11929_v56 = vadd.f32 %v9628_v12, %v9627_v46  ;;  %v3242_v35 = vadd.f32 %v9626_v60, %v11935_v24 }
 0x648   :  { %v3245_v46 = vadd.f32 %v11929_v56, %v11935_v24  ;;  %v10966_v56 = vld [vmem:[#allocation2 + $0x728] sm:$0xff]  }
 0x64a   :  { %v9630_v29 = vpop.f32.mrb[124].mxu0 }
 0x64b   :  { %v9631_v4 = vpop.f32.mrb[125].mxu0 }
 0x64c   :  { %v11931_v17 = vadd.f32 %v9631_v4, %v9630_v29  ;;  %v9633_v62 = vpop.f32.mrb[126].mxu0 }
 0x64d   :  { %v9634_v19 = vpop.f32.mrb[127].mxu0 }
 0x64e   :  { %v11933_v22 = vadd.f32 %v9634_v19, %v9633_v62  ;;  %v10963_v62 = vld [vmem:[#allocation2 + $0x6d8] sm:$0xff]  }
 0x64f   :  { %9775 = vmatpush3.bf16.msra.mxu0 %v10963_v62 }
 0x652   :  { %v9652_v59 = vpop.f32.mrb[128].mxu0 }
 0x653   :  { %v9653_v15 = vpop.f32.mrb[129].mxu0 }
 0x654   :  { %v9654_v31 = vadd.f32 %v9653_v15, %v9652_v59  ;;  %v9655_v30 = vpop.f32.mrb[130].mxu0  ;;  %v9692_v34 = vpop.f32.mrb[128].mxu1  ;;  %v10964_v59 = vld [vmem:[#allocation2 + $0x720] sm:$0xff]  }
 0x655   :  { %v9656_v23 = vpop.f32.mrb[131].mxu0  ;;  %v9693_v10 = vpop.f32.mrb[129].mxu1  ;;  %9776 = vmatprep.subr.bf16.mxu0 %v10964_v59 }
 0x656   :  { %v3291_v63 = vadd.f32 %v9654_v31, %v3226_v26  ;;  %v9657_v5 = vadd.f32 %v9656_v23, %v9655_v30  ;;  %v9694_v42 = vadd.f32 %v9693_v10, %v9692_v34  ;;  %v9695_v44 = vpop.f32.mrb[130].mxu1  ;;  %v10965_v34 = vld [vmem:[#allocation2 + $0x6e0] sm:$0xff]   ;;  %v3250_v10 = vadd.f32 %v11931_v17, %v11935_v24 }
 0x657   :  { %v9696_v14 = vpop.f32.mrb[131].mxu1  ;;  %9777 = vmatpush3.bf16.msra.mxu0 %v10965_v34 }
 0x658   :  { %v3294_v18 = vadd.f32 %v9657_v5, %v3229_v40  ;;  %v11939_v43 = vadd.f32 %v9694_v42, %v3291_v63  ;;  %v9697_v7 = vadd.f32 %v9696_v14, %v9695_v44  ;;  %9778 = vmatprep.subr.bf16.mxu0 %v10966_v56 }
 0x65a   :  { %v11941_v47 = vadd.f32 %v9697_v7, %v3294_v18  ;;  %v9658_v48 = vpop.f32.mrb[132].mxu0  ;;  %v3253_v18 = vadd.f32 %v11933_v22, %v11935_v24 }
 0x65b   :  { %v9659_v13 = vpop.f32.mrb[133].mxu0  ;;  %9779 = vmatpush3.bf16.msra.mxu0 %v10968_v16 }
 0x65c   :  { %v9660_v45 = vadd.f32 %v9659_v13, %v9658_v48  ;;  %v9661_v52 = vpop.f32.mrb[134].mxu0  ;;  %v9698_v53 = vpop.f32.mrb[132].mxu1  ;;  %9780 = vmatprep.subr.bf16.mxu0 %v10970_v36 }
 0x65d   :  { %v9662_v55 = vpop.f32.mrb[135].mxu0  ;;  %v9699_v37 = vpop.f32.mrb[133].mxu1 }
 0x65e   :  { %v3299_v49 = vadd.f32 %v9660_v45, %v3234_v51  ;;  %v9663_v21 = vadd.f32 %v9662_v55, %v9661_v52  ;;  %v9700_v57 = vadd.f32 %v9699_v37, %v9698_v53  ;;  %v9701_v58 = vpop.f32.mrb[134].mxu1  ;;  %v10971_v53 = vld [vmem:[#allocation2 + $0x6f0] sm:$0xff]  }
 0x65f   :  { %v9702_v41 = vpop.f32.mrb[135].mxu1  ;;  %9781 = vmatpush3.bf16.msra.mxu0 %v10971_v53 }
 0x660   :  { %v3302_v61 = vadd.f32 %v9663_v21, %v3237_v8  ;;  %v11945_v28 = vadd.f32 %v9700_v57, %v3299_v49  ;;  %v9703_v9 = vadd.f32 %v9702_v41, %v9701_v58 }
 0x662   :  { %v11947_v3 = vadd.f32 %v9703_v9, %v3302_v61  ;;  %v9664_v32 = vpop.f32.mrb[136].mxu0 }
 0x663   :  { %v9665_v54 = vpop.f32.mrb[137].mxu0 }
 0x664   :  { %v9666_v38 = vadd.f32 %v9665_v54, %v9664_v32  ;;  %v9667_v1 = vpop.f32.mrb[138].mxu0  ;;  %v9704_v20 = vpop.f32.mrb[136].mxu1 }
 0x665   :  { %v9668_v2 = vpop.f32.mrb[139].mxu0  ;;  %v9705_v39 = vpop.f32.mrb[137].mxu1 }
 0x666   :  { %v3307_v6 = vadd.f32 %v9666_v38, %v3242_v35  ;;  %v9669_v12 = vadd.f32 %v9668_v2, %v9667_v1  ;;  %v9706_v29 = vadd.f32 %v9705_v39, %v9704_v20  ;;  %v9707_v4 = vpop.f32.mrb[138].mxu1 }
 0x667   :  { %v9708_v19 = vpop.f32.mrb[139].mxu1 }
 0x668   :  { %v3310_v15 = vadd.f32 %v9669_v12, %v3245_v46  ;;  %v11952_v26 = vadd.f32 %v9706_v29, %v3307_v6  ;;  %v9709_v60 = vadd.f32 %v9708_v19, %v9707_v4 }
 0x66a   :  { %v11954_v31 = vadd.f32 %v9709_v60, %v3310_v15  ;;  %v9670_v30 = vpop.f32.mrb[140].mxu0 }
 0x66b   :  { %v9671_v23 = vpop.f32.mrb[141].mxu0 }
 0x66c   :  { %v9672_v63 = vadd.f32 %v9671_v23, %v9670_v30  ;;  %v9673_v40 = vpop.f32.mrb[142].mxu0  ;;  %v9710_v5 = vpop.f32.mrb[140].mxu1 }
 0x66d   :  { %v9674_v42 = vpop.f32.mrb[143].mxu0  ;;  %v9711_v44 = vpop.f32.mrb[141].mxu1 }
 0x66e   :  { %v3315_v14 = vadd.f32 %v9672_v63, %v3250_v10  ;;  %v9675_v7 = vadd.f32 %v9674_v42, %v9673_v40  ;;  %v9712_v48 = vadd.f32 %v9711_v44, %v9710_v5  ;;  %v9713_v13 = vpop.f32.mrb[142].mxu1 }
 0x66f   :  { %v9714_v50 = vpop.f32.mrb[143].mxu1 }
 0x670   :  { %v3318_v51 = vadd.f32 %v9675_v7, %v3253_v18  ;;  %v11960_v45 = vadd.f32 %v9712_v48, %v3315_v14  ;;  %v9715_v17 = vadd.f32 %v9714_v50, %v9713_v13 }
 0x672   :  { %v11962_v52 = vadd.f32 %v9715_v17, %v3318_v51 }
 0x673   :  { %v9732_v55 = vpop.f32.mrb[144].mxu0 }
 0x674   :  { %v9733_v37 = vpop.f32.mrb[145].mxu0  ;;  %v10574_v22 = vpop.f32.mrb[144].mxu1 }
 0x675   :  { %v9734_v24 = vadd.f32 %v9733_v37, %v9732_v55  ;;  %v9735_v49 = vpop.f32.mrb[146].mxu0  ;;  %v3485_v8 = vpop.f32.mrb[145].mxu1 }
 0x676   :  { %v9736_v21 = vpop.f32.mrb[147].mxu0  ;;  %v10575_v57 = vpop.f32.mrb[146].mxu1 }
 0x677   :  { %v9737_v58 = vadd.f32 %v9736_v21, %v9735_v49  ;;  %v3421_v25 = vadd.f32 %v9734_v24, %v11939_v43  ;;  %v3488_v41 = vpop.f32.mrb[147].mxu1 }
 0x679   :  { %v3486_v33 = vadd.f32 %v3485_v8, %v3421_v25  ;;  %v3424_v61 = vadd.f32 %v9737_v58, %v11941_v47 }
 0x67b   :  { %v3489_v9 = vadd.f32 %v3488_v41, %v3424_v61  ;;  %v9738_v32 = vpop.f32.mrb[148].mxu0  ;;  %v3516_v27 = vmax.f32 %v3486_v33, 0.0 }
 0x67c   :  { %v9739_v11 = vpop.f32.mrb[149].mxu0  ;;  %v10578_v54 = vpop.f32.mrb[148].mxu1 }
 0x67d   :  { %v3517_v35 = vmax.f32 %v3489_v9, 0.0  ;;  %v9740_v38 = vadd.f32 %v9739_v11, %v9738_v32  ;;  %v9741_v1 = vpop.f32.mrb[150].mxu0  ;;  %v3501_v20 = vpop.f32.mrb[149].mxu1 }
 0x67e   :  { %v9742_v2 = vpop.f32.mrb[151].mxu0  ;;  %v10579_v39 = vpop.f32.mrb[150].mxu1 }
 0x67f   :  { %v11966_v6 = vpack.c.bf16 %v3517_v35, %v3516_v27  ;;  %v3429_v46 = vadd.f32 %v9740_v38, %v11945_v28  ;;  %v9743_v43 = vadd.f32 %v9742_v2, %v9741_v1  ;;  %v3504_v12 = vpop.f32.mrb[151].mxu1  ;;  %v10969_v38 = vld [vmem:[#allocation2 + $0x7c0] sm:$0xff]   ;;  %v10949_v1 = vld [vmem:[%s12658_s1 + $0xc8] sm:$0xff]   ;;  %v10951_v2 = vld [vmem:[%s12658_s1 + $0xd8] sm:$0xff]  }
 0x681   :  { %v3529_v29 = vunpack.c.h.bf16 %v11966_v6  ;;  %v3494_v47 = vadd.f32 %v10574_v22, %v3429_v46  ;;  %v3432_v4 = vadd.f32 %v9743_v43, %v11947_v3  ;;  %4375 = vmatprep.mubr.bf16.mxu0 %v11966_v6  ;;  %v3528_v62 = vunpack.c.l.bf16 %v11966_v6  ;;  %v10953_v46 = vld [vmem:[%s12658_s1 + $0xe8] sm:$0xff]   ;;  %v10954_v43 = vld [vmem:[%s12658_s1 + $0xf0] sm:$0xff]  }
 0x683   :  { %v3537_v19 = vsub.f32 %v3517_v35, %v3529_v29  ;;  %v3497_v59 = vadd.f32 %v10575_v57, %v3432_v4  ;;  %v9744_v15 = vpop.f32.mrb[152].mxu0  ;;  %v3536_v60 = vsub.f32 %v3516_v27, %v3528_v62  ;;  %v3518_v34 = vmax.f32 %v3494_v47, 0.0  ;;  %v10967_v27 = vld [vmem:[#allocation2 + $0x800] sm:$0xff]   ;;  %v10972_v29 = vld [vmem:[#allocation2 + $0x738] sm:$0xff]   ;;  %v10973_v4 = vld [vmem:[#allocation2 + $0x808] sm:$0xff]  }
 0x684   :  { %v9745_v30 = vpop.f32.mrb[153].mxu0  ;;  %v10948_v35 = vld [vmem:[%s12658_s1 + $0xc0] sm:$0xff]   ;;  %v10974_v47 = vld [vmem:[#allocation2 + $0x6f8] sm:$0xff]   ;;  %9782 = vmatprep.subr.bf16.mxu0 %v10972_v29  ;;  %v10975_v62 = vld [vmem:[#allocation2 + $0x7c8] sm:$0xff]  }
 0x685   :  { %v3519_v23 = vmax.f32 %v3497_v59, 0.0  ;;  %v9746_v56 = vadd.f32 %v9745_v30, %v9744_v15  ;;  %v9747_v28 = vpop.f32.mrb[154].mxu0  ;;  %v11973_v10 = vpack.c.bf16 %v3537_v19, %v3536_v60  ;;  %9783 = vmatpush3.bf16.msra.mxu0 %v10974_v47  ;;  %v10976_v19 = vld [vmem:[#allocation2 + $0x780] sm:$0xff]   ;;  %v10979_v59 = vld [vmem:[#allocation2 + $0x810] sm:$0xff]   ;;  %v10985_v60 = vld [vmem:[#allocation2 + $0x818] sm:$0xff]  }
 0x686   :  { %v9748_v63 = vpop.f32.mrb[155].mxu0  ;;  %9808 = vmatprep.subr.bf16.mxu0 %v10976_v19  ;;  %v10981_v15 = vld [vmem:[#allocation2 + $0x7d0] sm:$0xff]   ;;  %v10987_v30 = vld [vmem:[#allocation2 + $0x7d8] sm:$0xff]  }
 0x687   :  { %v11975_v40 = vpack.c.bf16 %v3519_v23, %v3518_v34  ;;  %v3437_v3 = vadd.f32 %v9746_v56, %v11952_v26  ;;  %v9749_v5 = vadd.f32 %v9748_v63, %v9747_v28  ;;  %3629 = vmatprep.subr.bf16.mxu1 %v11973_v10  ;;  %v10994_v56 = vld [vmem:[#allocation2 + $0x828] sm:$0xff]   ;;  %v10998_v63 = vld [vmem:[#allocation2 + $0x830] sm:$0xff]   ;;  %v11001_v47 = vld [vmem:[#allocation2 + $0x778] sm:$0xff]  }
 0x688   :  { %3630 = vmatpush1.bf16.msra.mxu1 %v11966_v6  ;;  %v10995_v28 = vld [vmem:[#allocation2 + $0x7e8] sm:$0xff]  }
 0x689   :  { %v3502_v42 = vadd.f32 %v3501_v20, %v3437_v3  ;;  %v3440_v44 = vadd.f32 %v9749_v5, %v11954_v31  ;;  %v3530_v14 = vunpack.c.l.bf16 %v11975_v40  ;;  %v3531_v18 = vunpack.c.h.bf16 %v11975_v40  ;;  %v10950_v20 = vld [vmem:[%s12658_s1 + $0xd0] sm:$0xff]   ;;  %v11002_v5 = vld [vmem:[#allocation2 + $0x838] sm:$0xff]  }
 0x68a   :  { %v10999_v3 = vld [vmem:[#allocation2 + $0x7f0] sm:$0xff]  }
 0x68b   :  { %v3505_v7 = vadd.f32 %v3504_v12, %v3440_v44  ;;  %v9750_v48 = vpop.f32.mrb[156].mxu0  ;;  %v3538_v13 = vsub.f32 %v3518_v34, %v3530_v14  ;;  %v3539_v16 = vsub.f32 %v3519_v23, %v3531_v18  ;;  %v3520_v36 = vmax.f32 %v3502_v42, 0.0  ;;  %v10955_v12 = vld [vmem:[%s12658_s1 + $0xf8] sm:$0xff]   ;;  %v10990_v34 = vld [vmem:[#allocation2 + $0x820] sm:$0xff]  }
 0x68c   :  { %v9751_v50 = vpop.f32.mrb[157].mxu0  ;;  %v10991_v23 = vld [vmem:[#allocation2 + $0x7e0] sm:$0xff]   ;;  %v11003_v42 = vld [vmem:[#allocation2 + $0x7f8] sm:$0xff]  }
 0x68d   :  { %v3521_v51 = vmax.f32 %v3505_v7, 0.0  ;;  %v9752_v26 = vadd.f32 %v9751_v50, %v9750_v48  ;;  %v9753_v17 = vpop.f32.mrb[158].mxu0  ;;  %v11983_v53 = vpack.c.bf16 %v3539_v16, %v3538_v13  ;;  %v12044_v44 = vld [vmem:[#allocation2 + $0x8c0] sm:$0xff]   ;;  %v10978_v50 = vld [vmem:[#allocation2 + $0x788] sm:$0xff]  }
 0x68e   :  { %v9754_v55 = vpop.f32.mrb[159].mxu0  ;;  %v10977_v48 = vld [vmem:[#allocation2 + $0x740] sm:$0xff]  }
 0x68f   :  { %v11985_v37 = vpack.c.bf16 %v3521_v51, %v3520_v36  ;;  %v3445_v31 = vadd.f32 %v9752_v26, %v11960_v45  ;;  %v9755_v22 = vadd.f32 %v9754_v55, %v9753_v17  ;;  %3631 = vmatprep.subr.bf16.mxu1 %v11983_v53  ;;  %v10982_v26 = vld [vmem:[#allocation2 + $0x790] sm:$0xff]  }
 0x690   :  { %3632 = vmatpush1.bf16.msra.mxu1 %v11975_v40 }
 0x691   :  { %v3510_v24 = vadd.f32 %v10578_v54, %v3445_v31  ;;  %v3448_v49 = vadd.f32 %v9755_v22, %v11962_v52  ;;  %v3532_v8 = vunpack.c.l.bf16 %v11985_v37  ;;  %v3533_v21 = vunpack.c.h.bf16 %v11985_v37  ;;  %v10983_v22 = vld [vmem:[#allocation2 + $0x750] sm:$0xff]  }
 0x693   :  { %v3513_v57 = vadd.f32 %v10579_v39, %v3448_v49  ;;  %v3540_v58 = vsub.f32 %v3520_v36, %v3532_v8  ;;  %v3541_v25 = vsub.f32 %v3521_v51, %v3533_v21  ;;  %v3522_v41 = vmax.f32 %v3510_v24, 0.0  ;;  %v10952_v39 = vld [vmem:[%s12658_s1 + $0xe0] sm:$0xff]   ;;  %v10980_v51 = vld [vmem:[#allocation2 + $0x748] sm:$0xff]   ;;  %v10984_v8 = vld [vmem:[#allocation2 + $0x798] sm:$0xff]  }
 0x695   :  { %v3523_v33 = vmax.f32 %v3513_v57, 0.0  ;;  %v11993_v61 = vpack.c.bf16 %v3541_v25, %v3540_v58  ;;  %v10986_v57 = vld [vmem:[#allocation2 + $0x758] sm:$0xff]   ;;  %v10988_v58 = vld [vmem:[#allocation2 + $0x7a0] sm:$0xff]  }
 0x697   :  { %v11995_v45 = vpack.c.bf16 %v3523_v33, %v3522_v41  ;;  %3633 = vmatprep.subr.bf16.mxu1 %v11993_v61 }
 0x698   :  { %3634 = vmatpush1.bf16.msra.mxu1 %v11985_v37 }
 0x699   :  { %v3534_v9 = vunpack.c.l.bf16 %v11995_v45  ;;  %v3535_v52 = vunpack.c.h.bf16 %v11995_v45 }
 0x69b   :  { %v3542_v32 = vsub.f32 %v3522_v41, %v3534_v9  ;;  %v3543_v11 = vsub.f32 %v3523_v33, %v3535_v52  ;;  %v10989_v9 = vld [vmem:[#allocation2 + $0x760] sm:$0xff]  }
 0x69d   :  { %v12001_v54 = vpack.c.bf16 %v3543_v11, %v3542_v32  ;;  %v10992_v11 = vld [vmem:[#allocation2 + $0x7a8] sm:$0xff]  }
 0x69f   :  { %3635 = vmatprep.subr.bf16.mxu1 %v12001_v54 }
 0x6a0   :  { %3636 = vmatpush1.bf16.msra.mxu1 %v11995_v45 }
 0x6a1   :  { %9848 = vmatprep.subr.bf16.mxu1 %v10967_v27 }
 0x6a3   :  { %8831 = vmatmul.mubr.msk.bf16.vlgmr.msra.gmra.mrb[152].mxu1 %vm150_vm0, %v10948_v35  ;;  %v10993_v35 = vld [vmem:[#allocation2 + $0x768] sm:$0xff]  }
 0x6a4   :  { %3671 = vmatprep.mubr.bf16.mxu1 %v11369_v0  ;;  %9849 = vmatpush3.bf16.msra.mxu1 %v10969_v38  ;;  %v10996_v38 = vld [vmem:[#allocation2 + $0x7b0] sm:$0xff]  }
 0x6a5   :  { %9850 = vmatprep.subr.bf16.mxu1 %v10973_v4  ;;  %v11004_v4 = vld [vmem:[#allocation2 + $0x880] sm:$0xff]  }
 0x6a8   :  { %9851 = vmatpush3.bf16.msra.mxu1 %v10975_v62 }
 0x6a9   :  { %9852 = vmatprep.subr.bf16.mxu1 %v10979_v59 }
 0x6ab   :  { %8832 = vmatmul.mubr.msk.bf16.gmra.mrb[156].mxu1 %vm150_vm0, %v10949_v1 }
 0x6ac   :  { %3681 = vmatprep.mubr.bf16.mxu1 %v11369_v0  ;;  %9853 = vmatpush3.bf16.msra.mxu1 %v10981_v15 }
 0x6ad   :  { %9854 = vmatprep.subr.bf16.mxu1 %v10985_v60 }
 0x6b0   :  { %9855 = vmatpush3.bf16.msra.mxu1 %v10987_v30  ;;  %v11005_v30 = vld [vmem:[#allocation2 + $0x840] sm:$0xff]  }
 0x6b1   :  { %9856 = vmatprep.subr.bf16.mxu1 %v10990_v34 }
 0x6b3   :  { %8833 = vmatmul.mubr.msk.bf16.gmra.mrb[160].mxu1 %vm150_vm0, %v10950_v20 }
 0x6b4   :  { %3691 = vmatprep.mubr.bf16.mxu1 %v11369_v0  ;;  %9857 = vmatpush3.bf16.msra.mxu1 %v10991_v23  ;;  %v11007_v23 = vld [vmem:[#allocation2 + $0x888] sm:$0xff]  }
 0x6b5   :  { %9858 = vmatprep.subr.bf16.mxu1 %v10994_v56  ;;  %v11009_v56 = vld [vmem:[#allocation2 + $0x8c8] sm:$0xff]  }
 0x6b8   :  { %9859 = vmatpush3.bf16.msra.mxu1 %v10995_v28  ;;  %v11008_v28 = vld [vmem:[#allocation2 + $0x848] sm:$0xff]  }
 0x6b9   :  { %9860 = vmatprep.subr.bf16.mxu1 %v10998_v63 }
 0x6bb   :  { %8834 = vmatmul.mubr.msk.bf16.gmra.mrb[164].mxu1 %vm150_vm0, %v10951_v2 }
 0x6bc   :  { %3701 = vmatprep.mubr.bf16.mxu1 %v11369_v0  ;;  %9861 = vmatpush3.bf16.msra.mxu1 %v10999_v3  ;;  %v11010_v3 = vld [vmem:[#allocation2 + $0x890] sm:$0xff]  }
 0x6bd   :  { %9862 = vmatprep.subr.bf16.mxu1 %v11002_v5 }
 0x6c0   :  { %9863 = vmatpush3.bf16.msra.mxu1 %v11003_v42  ;;  %v11012_v42 = vld [vmem:[#allocation2 + $0x8d0] sm:$0xff]  }
 0x6c1   :  { %10580 = vmatprep.subr.bf16.mxu1 %v12044_v44 }
 0x6c3   :  { %8835 = vmatmul.mubr.msk.bf16.gmra.mrb[168].mxu1 %vm150_vm0, %v10952_v39  ;;  %v10997_v39 = vld [vmem:[#allocation2 + $0x770] sm:$0xff]  }
 0x6c4   :  { %3711 = vmatprep.mubr.bf16.mxu1 %v11369_v0 }
 0x6cb   :  { %8836 = vmatmul.mubr.msk.bf16.gmra.mrb[172].mxu1 %vm150_vm0, %v10953_v46 }
 0x6cc   :  { %3721 = vmatprep.mubr.bf16.mxu1 %v11369_v0 }
 0x6d3   :  { %8837 = vmatmul.mubr.msk.bf16.gmra.mrb[176].mxu1 %vm150_vm0, %v10954_v43 }
 0x6d4   :  { %3731 = vmatprep.mubr.bf16.mxu1 %v11369_v0 }
 0x6db   :  { %8838 = vmatmul.mubr.msk.bf16.gmra.mrb[180].mxu1 %vm150_vm0, %v10955_v12  ;;  %v11000_v12 = vld [vmem:[#allocation2 + $0x7b8] sm:$0xff]  }
 0x776   :  { %v3663_v14 = vpop.f32.mrb[152].mxu1 }
 0x777   :  { %v3665_v18 = vpop.f32.mrb[153].mxu1 }
 0x778   :  { %v3667_v7 = vpop.f32.mrb[154].mxu1 }
 0x779   :  { %v12047_v13 = vpack.c.bf16 %v3667_v7, %v3663_v14  ;;  %v3669_v16 = vpop.f32.mrb[155].mxu1 }
 0x77a   :  { %v3743_v36 = vpack.c.bf16 %v3669_v16, %v3665_v18 }
 0x77b   :  { %4376 = vmatmul.mubr.bf16.vlgmr.msra.gmra.mrb[160].mxu0 %v12047_v13 }
 0x77c   :  { %4383 = vmatprep.mubr.bf16.mxu0 %v11975_v40  ;;  %9809 = vmatpush3.bf16.msra.mxu0 %v10977_v48  ;;  %v11011_v48 = vld [vmem:[#allocation2 + $0x850] sm:$0xff]  }
 0x77d   :  { %9810 = vmatprep.subr.bf16.mxu0 %v10978_v50  ;;  %v11013_v50 = vld [vmem:[#allocation2 + $0x898] sm:$0xff]  }
 0x77e   :  { %v3673_v17 = vpop.f32.mrb[156].mxu1 }
 0x77f   :  { %v3675_v55 = vpop.f32.mrb[157].mxu1 }
 0x780   :  { %v3677_v31 = vpop.f32.mrb[158].mxu1  ;;  %9811 = vmatpush3.bf16.msra.mxu0 %v10980_v51  ;;  %v11016_v51 = vld [vmem:[#allocation2 + $0x8a0] sm:$0xff]  }
 0x781   :  { %v12051_v24 = vpack.c.bf16 %v3677_v31, %v3673_v17  ;;  %v3679_v49 = vpop.f32.mrb[159].mxu1  ;;  %9812 = vmatprep.subr.bf16.mxu0 %v10982_v26  ;;  %v11018_v17 = vld [vmem:[#allocation2 + $0x8e0] sm:$0xff]  }
 0x782   :  { %v3745_v21 = vpack.c.bf16 %v3679_v49, %v3675_v55  ;;  %v11017_v49 = vld [vmem:[#allocation2 + $0x860] sm:$0xff]  }
 0x783   :  { %4384 = vmatmul.mubr.bf16.gmra.mrb[164].mxu0 %v12051_v24 }
 0x784   :  { %4391 = vmatprep.mubr.bf16.mxu0 %v11985_v37  ;;  %9813 = vmatpush3.bf16.msra.mxu0 %v10983_v22 }
 0x785   :  { %9814 = vmatprep.subr.bf16.mxu0 %v10984_v8 }
 0x786   :  { %v3683_v25 = vpop.f32.mrb[160].mxu1 }
 0x787   :  { %v12055_v41 = vpop.f32.mrb[161].mxu1 }
 0x788   :  { %v3687_v33 = vpop.f32.mrb[162].mxu1  ;;  %9815 = vmatpush3.bf16.msra.mxu0 %v10986_v57  ;;  %v11020_v57 = vld [vmem:[#allocation2 + $0x868] sm:$0xff]  }
 0x789   :  { %v12057_v52 = vpack.c.bf16 %v3687_v33, %v3683_v25  ;;  %v3689_v32 = vpop.f32.mrb[163].mxu1  ;;  %9816 = vmatprep.subr.bf16.mxu0 %v10988_v58  ;;  %v11022_v25 = vld [vmem:[#allocation2 + $0x8b0] sm:$0xff]  }
 0x78a   :  { %v3747_v27 = vpack.c.bf16 %v3689_v32, %v12055_v41  ;;  %v11024_v33 = vld [vmem:[#allocation2 + $0x8f0] sm:$0xff]  }
 0x78b   :  { %4392 = vmatmul.mubr.bf16.gmra.mrb[168].mxu0 %v12057_v52 }
 0x78c   :  { %4399 = vmatprep.mubr.bf16.mxu0 %v11995_v45  ;;  %9817 = vmatpush3.bf16.msra.mxu0 %v10989_v9 }
 0x78d   :  { %9818 = vmatprep.subr.bf16.mxu0 %v10992_v11 }
 0x78e   :  { %v3693_v1 = vpop.f32.mrb[164].mxu1 }
 0x78f   :  { %v12062_v20 = vpop.f32.mrb[165].mxu1 }
 0x790   :  { %v3697_v2 = vpop.f32.mrb[166].mxu1  ;;  %9819 = vmatpush3.bf16.msra.mxu0 %v10993_v35 }
 0x791   :  { %v12064_v46 = vpack.c.bf16 %v3697_v2, %v3693_v1  ;;  %v12066_v43 = vpop.f32.mrb[167].mxu1  ;;  %9820 = vmatprep.subr.bf16.mxu0 %v10996_v38  ;;  %v11025_v38 = vld [vmem:[#allocation2 + $0x8b8] sm:$0xff]  }
 0x792   :  { %v3749_v29 = vpack.c.bf16 %v12066_v43, %v12062_v20  ;;  %v11026_v1 = vld [vmem:[#allocation2 + $0x878] sm:$0xff]  }
 0x793   :  { %4400 = vmatmul.mubr.bf16.gmra.mrb[172].mxu0 %v12064_v46 }
 0x794   :  { %9821 = vmatpush3.bf16.msra.mxu0 %v10997_v39  ;;  %4440 = vmatprep.mubr.bf16.mxu0 %v3743_v36 }
 0x795   :  { %9822 = vmatprep.subr.bf16.mxu0 %v11000_v12 }
 0x796   :  { %v3703_v62 = vpop.f32.mrb[168].mxu1 }
 0x797   :  { %v3705_v19 = vpop.f32.mrb[169].mxu1 }
 0x798   :  { %v3707_v59 = vpop.f32.mrb[170].mxu1  ;;  %9823 = vmatpush3.bf16.msra.mxu0 %v11001_v47 }
 0x799   :  { %v12071_v15 = vpack.c.bf16 %v3707_v59, %v3703_v62  ;;  %v3709_v60 = vpop.f32.mrb[171].mxu1  ;;  %9888 = vmatprep.subr.bf16.mxu0 %v11004_v4 }
 0x79a   :  { %v3751_v34 = vpack.c.bf16 %v3709_v60, %v3705_v19 }
 0x79b   :  { %4441 = vmatmul.mubr.bf16.vlgmr.msra.gmra.mrb[176].mxu0 %v12071_v15 }
 0x79c   :  { %4448 = vmatprep.mubr.bf16.mxu0 %v3745_v21  ;;  %4505 = vmatprep.mubr.bf16.mxu1 %v3751_v34  ;;  %v11019_v21 = vld [vmem:[#allocation2 + $0x8a8] sm:$0xff]  }
 0x79d   :  { %9889 = vmatpush3.bf16.msra.mxu0 %v11005_v30  ;;  %4506 = vmatmul.mubr.bf16.vlgmr.msra.gmra.mrb[184].mxu1 %v11973_v10  ;;  %v11015_v10 = vld [vmem:[#allocation2 + $0x8d8] sm:$0xff]  }
 0x79e   :  { %v3713_v63 = vpop.f32.mrb[172].mxu1  ;;  %10581 = vmatpush3.bf16.msra.mxu1 %v12044_v44  ;;  %9890 = vmatprep.subr.bf16.mxu0 %v11007_v23  ;;  %v11014_v44 = vld [vmem:[#allocation2 + $0x858] sm:$0xff]   ;;  %v12102_v23 = vld [vmem:[#allocation6 + $0x3] ss:$0 sm:$0xff] }
 0x79f   :  { %v3715_v5 = vpop.f32.mrb[173].mxu1  ;;  %10582 = vmatprep.subr.bf16.mxu1 %v11009_v56 }
 0x7a0   :  { %v3717_v14 = vpop.f32.mrb[174].mxu1 }
 0x7a1   :  { %v12076_v18 = vpack.c.bf16 %v3717_v14, %v3713_v63  ;;  %9891 = vmatpush3.bf16.msra.mxu0 %v11008_v28  ;;  %v3719_v7 = vpop.f32.mrb[175].mxu1 }
 0x7a2   :  { %v3753_v16 = vpack.c.bf16 %v3719_v7, %v3715_v5  ;;  %10583 = vmatpush3.bf16.msra.mxu1 %v11009_v56  ;;  %9892 = vmatprep.subr.bf16.mxu0 %v11010_v3 }
 0x7a3   :  { %4449 = vmatmul.mubr.bf16.gmra.mrb[180].mxu0 %v12076_v18  ;;  %10584 = vmatprep.subr.bf16.mxu1 %v11012_v42 }
 0x7a4   :  { %4456 = vmatprep.mubr.bf16.mxu0 %v3747_v27  ;;  %4513 = vmatprep.mubr.bf16.mxu1 %v3753_v16  ;;  %v11023_v27 = vld [vmem:[#allocation2 + $0x870] sm:$0xff]  }
 0x7a5   :  { %9893 = vmatpush3.bf16.msra.mxu0 %v11011_v48  ;;  %4514 = vmatmul.mubr.bf16.gmra.mrb[188].mxu1 %v11983_v53  ;;  %v11021_v53 = vld [vmem:[#allocation2 + $0x8e8] sm:$0xff]  }
 0x7a6   :  { %v3723_v36 = vpop.f32.mrb[176].mxu1  ;;  %10585 = vmatpush3.bf16.msra.mxu1 %v11012_v42  ;;  %9894 = vmatprep.subr.bf16.mxu0 %v11013_v50 }
 0x7a7   :  { %v3725_v26 = vpop.f32.mrb[177].mxu1  ;;  %10586 = vmatprep.subr.bf16.mxu1 %v11015_v10 }
 0x7a8   :  { %v3727_v55 = vpop.f32.mrb[178].mxu1 }
 0x7a9   :  { %v3754_v31 = vpack.c.bf16 %v3727_v55, %v3723_v36  ;;  %9895 = vmatpush3.bf16.msra.mxu0 %v11014_v44  ;;  %v3729_v22 = vpop.f32.mrb[179].mxu1 }
 0x7aa   :  { %v3755_v8 = vpack.c.bf16 %v3729_v22, %v3725_v26  ;;  %10587 = vmatpush3.bf16.msra.mxu1 %v11015_v10  ;;  %9896 = vmatprep.subr.bf16.mxu0 %v11016_v51  ;;  %v11036_v22 = vld [vmem:[#allocation2 + $0x940] sm:$0xff]  }
 0x7ab   :  { %4457 = vmatmul.mubr.bf16.gmra.mrb[184].mxu0 %v3754_v31  ;;  %10588 = vmatprep.subr.bf16.mxu1 %v11018_v17 }
 0x7ac   :  { %4464 = vmatprep.mubr.bf16.mxu0 %v3749_v29  ;;  %4521 = vmatprep.mubr.bf16.mxu1 %v3755_v8  ;;  %v11038_v8 = vld [vmem:[#allocation2 + $0x948] sm:$0xff]  }
 0x7ad   :  { %9897 = vmatpush3.bf16.msra.mxu0 %v11017_v49  ;;  %4522 = vmatmul.mubr.bf16.gmra.mrb[192].mxu1 %v11993_v61  ;;  %v11027_v61 = vld [vmem:[#allocation2 + $0x8f8] sm:$0xff]   ;;  %v11037_v49 = vld [vmem:[#allocation2 + $0x900] sm:$0xff]  }
 0x7ae   :  { %v3733_v58 = vpop.f32.mrb[180].mxu1  ;;  %10589 = vmatpush3.bf16.msra.mxu1 %v11018_v17  ;;  %9898 = vmatprep.subr.bf16.mxu0 %v11019_v21 }
 0x7af   :  { %v3735_v41 = vpop.f32.mrb[181].mxu1  ;;  %10590 = vmatprep.subr.bf16.mxu1 %v11021_v53 }
 0x7b0   :  { %v3737_v9 = vpop.f32.mrb[182].mxu1 }
 0x7b1   :  { %v3756_v32 = vpack.c.bf16 %v3737_v9, %v3733_v58  ;;  %9899 = vmatpush3.bf16.msra.mxu0 %v11020_v57  ;;  %v3739_v11 = vpop.f32.mrb[183].mxu1 }
 0x7b2   :  { %v3757_v35 = vpack.c.bf16 %v3739_v11, %v3735_v41  ;;  %10591 = vmatpush3.bf16.msra.mxu1 %v11021_v53  ;;  %9900 = vmatprep.subr.bf16.mxu0 %v11022_v25 }
 0x7b3   :  { %4465 = vmatmul.mubr.bf16.gmra.mrb[188].mxu0 %v3756_v32  ;;  %10592 = vmatprep.subr.bf16.mxu1 %v11024_v33 }
 0x7b4   :  { %4529 = vmatprep.mubr.bf16.mxu1 %v3757_v35  ;;  %4570 = vmatprep.mubr.bf16.mxu0 %v11966_v6  ;;  %v11039_v35 = vld [vmem:[#allocation2 + $0x908] sm:$0xff]  }
 0x7b5   :  { %9901 = vmatpush3.bf16.msra.mxu0 %v11023_v27  ;;  %4530 = vmatmul.mubr.bf16.gmra.mrb[196].mxu1 %v12001_v54 }
 0x7b6   :  { %10593 = vmatpush3.bf16.msra.mxu1 %v11024_v33  ;;  %10596 = vmatprep.mubr.bf16.mxu1 %v12071_v15 }
 0x7b7   :  { %9902 = vmatprep.subr.bf16.mxu0 %v11025_v38  ;;  %10594 = vmatprep.subr.bf16.mxu1 %v11027_v61 }
 0x7b9   :  { %9903 = vmatpush3.bf16.msra.mxu0 %v11026_v1 }
 0x7ba   :  { %10595 = vmatpush3.bf16.msra.mxu1 %v11027_v61  ;;  %v11040_v61 = vld [vmem:[#allocation2 + $0x950] sm:$0xff]  }
 0x7bb   :  { %9940 = vmatprep.subr.bf16.mxu1 %v11036_v22  ;;  %v11048_v22 = vld [vmem:[#allocation2 + $0x928] sm:$0xff]  }
 0x7bc   :  { %4571 = vmatmul.mubr.bf16.vlgmr.msra.gmra.mrb[192].mxu0 %v12047_v13 }
 0x7bd   :  { %4578 = vmatprep.mubr.bf16.mxu0 %v11975_v40  ;;  %10597 = vmatmul.mubr.bf16.vlgmr.msra.gmra.mrb[200].mxu1 %v12076_v18 }
 0x7be   :  { %10600 = vmatprep.mubr.bf16.mxu1 %v3754_v31  ;;  %9941 = vmatpush3.bf16.msra.mxu1 %v11037_v49 }
 0x7bf   :  { %9942 = vmatprep.subr.bf16.mxu1 %v11038_v8  ;;  %v11050_v8 = vld [vmem:[#allocation2 + $0x970] sm:$0xff]  }
 0x7c2   :  { %9943 = vmatpush3.bf16.msra.mxu1 %v11039_v35 }
 0x7c3   :  { %9944 = vmatprep.subr.bf16.mxu1 %v11040_v61 }
 0x7c4   :  { %4579 = vmatmul.mubr.bf16.gmra.mrb[196].mxu0 %v12051_v24 }
 0x7c5   :  { %4586 = vmatprep.mubr.bf16.mxu0 %v11985_v37  ;;  %10601 = vmatmul.mubr.bf16.gmra.mrb[204].mxu1 %v3756_v32 }
 0x7cc   :  { %4587 = vmatmul.mubr.bf16.gmra.mrb[200].mxu0 %v12057_v52 }
 0x7cd   :  { %4594 = vmatprep.mubr.bf16.mxu0 %v11995_v45 }
 0x7d4   :  { %4595 = vmatmul.mubr.bf16.gmra.mrb[204].mxu0 %v12064_v46 }
 0x7d5   :  { %4813 = vmatprep.mubr.bf16.mxu0 %v11369_v0 }
 0x84e   :  { %v9784_v6 = vpop.f32.mrb[160].mxu0 }
 0x84f   :  { %v9785_v54 = vpop.f32.mrb[161].mxu0 }
 0x850   :  { %v9786_v13 = vadd.f32 %v9785_v54, %v9784_v6  ;;  %v9787_v40 = vpop.f32.mrb[162].mxu0 }
 0x851   :  { %v9788_v20 = vpop.f32.mrb[163].mxu0 }
 0x852   :  { %v9789_v2 = vadd.f32 %v9788_v20, %v9787_v40  ;;  %v4378_v63 = vadd.f32 %v9786_v13, %v12102_v23  ;;  %v11041_v20 = vld [vmem:[#allocation2 + $0x910] sm:$0xff]  }
 0x853   :  { %9945 = vmatpush3.bf16.msra.mxu1 %v11041_v20 }
 0x854   :  { %v4381_v7 = vadd.f32 %v9789_v2, %v12102_v23 }
 0x856   :  { %v9790_v39 = vpop.f32.mrb[164].mxu0 }
 0x857   :  { %v9791_v43 = vpop.f32.mrb[165].mxu0 }
 0x858   :  { %v9792_v24 = vadd.f32 %v9791_v43, %v9790_v39  ;;  %v9793_v12 = vpop.f32.mrb[166].mxu0  ;;  %v11042_v39 = vld [vmem:[#allocation2 + $0x958] sm:$0xff]  }
 0x859   :  { %v9794_v37 = vpop.f32.mrb[167].mxu0  ;;  %9946 = vmatprep.subr.bf16.mxu1 %v11042_v39 }
 0x85a   :  { %v9795_v29 = vadd.f32 %v9794_v37, %v9793_v12  ;;  %v4386_v21 = vadd.f32 %v9792_v24, %v12102_v23 }
 0x85c   :  { %v4389_v33 = vadd.f32 %v9795_v29, %v12102_v23 }
 0x85e   :  { %v9796_v47 = vpop.f32.mrb[168].mxu0 }
 0x85f   :  { %v9797_v52 = vpop.f32.mrb[169].mxu0 }
 0x860   :  { %v9798_v4 = vadd.f32 %v9797_v52, %v9796_v47  ;;  %v9799_v45 = vpop.f32.mrb[170].mxu0 }
 0x861   :  { %v9800_v62 = vpop.f32.mrb[171].mxu0 }
 0x862   :  { %v12096_v46 = vadd.f32 %v9800_v62, %v9799_v45  ;;  %v4394_v43 = vadd.f32 %v9798_v4, %v12102_v23 }
 0x864   :  { %v4397_v52 = vadd.f32 %v12096_v46, %v12102_v23  ;;  %v11046_v46 = vld [vmem:[#allocation2 + $0x968] sm:$0xff]  }
 0x866   :  { %v9802_v19 = vpop.f32.mrb[172].mxu0 }
 0x867   :  { %v9803_v59 = vpop.f32.mrb[173].mxu0 }
 0x868   :  { %v12098_v15 = vadd.f32 %v9803_v59, %v9802_v19  ;;  %v9805_v60 = vpop.f32.mrb[174].mxu0 }
 0x869   :  { %v9806_v30 = vpop.f32.mrb[175].mxu0 }
 0x86a   :  { %v12100_v34 = vadd.f32 %v9806_v30, %v9805_v60  ;;  %v11043_v60 = vld [vmem:[#allocation2 + $0x918] sm:$0xff]  }
 0x86b   :  { %9947 = vmatpush3.bf16.msra.mxu1 %v11043_v60 }
 0x86e   :  { %v9824_v56 = vpop.f32.mrb[176].mxu0 }
 0x86f   :  { %v9825_v28 = vpop.f32.mrb[177].mxu0 }
 0x870   :  { %v9826_v3 = vadd.f32 %v9825_v28, %v9824_v56  ;;  %v9827_v5 = vpop.f32.mrb[178].mxu0  ;;  %v9864_v42 = vpop.f32.mrb[184].mxu1  ;;  %v11044_v56 = vld [vmem:[#allocation2 + $0x960] sm:$0xff]  }
 0x871   :  { %v9828_v14 = vpop.f32.mrb[179].mxu0  ;;  %v9865_v18 = vpop.f32.mrb[185].mxu1  ;;  %9948 = vmatprep.subr.bf16.mxu1 %v11044_v56 }
 0x872   :  { %v4443_v48 = vadd.f32 %v9826_v3, %v4378_v63  ;;  %v9829_v16 = vadd.f32 %v9828_v14, %v9827_v5  ;;  %v9866_v50 = vadd.f32 %v9865_v18, %v9864_v42  ;;  %v9867_v10 = vpop.f32.mrb[186].mxu1  ;;  %v11045_v42 = vld [vmem:[#allocation2 + $0x920] sm:$0xff]   ;;  %v4402_v18 = vadd.f32 %v12098_v15, %v12102_v23 }
 0x873   :  { %v9868_v44 = vpop.f32.mrb[187].mxu1  ;;  %9949 = vmatpush3.bf16.msra.mxu1 %v11045_v42 }
 0x874   :  { %v4446_v36 = vadd.f32 %v9829_v16, %v4381_v7  ;;  %v12106_v51 = vadd.f32 %v9866_v50, %v4443_v48  ;;  %v9869_v26 = vadd.f32 %v9868_v44, %v9867_v10  ;;  %v4405_v44 = vadd.f32 %v12100_v34, %v12102_v23  ;;  %9950 = vmatprep.subr.bf16.mxu1 %v11046_v46 }
 0x876   :  { %v12108_v17 = vadd.f32 %v9869_v26, %v4446_v36  ;;  %v9830_v55 = vpop.f32.mrb[180].mxu0 }
 0x877   :  { %v9831_v31 = vpop.f32.mrb[181].mxu0  ;;  %9951 = vmatpush3.bf16.msra.mxu1 %v11048_v22 }
 0x878   :  { %v9832_v53 = vadd.f32 %v9831_v31, %v9830_v55  ;;  %v9833_v57 = vpop.f32.mrb[182].mxu0  ;;  %v9870_v58 = vpop.f32.mrb[188].mxu1  ;;  %9952 = vmatprep.subr.bf16.mxu1 %v11050_v8 }
 0x879   :  { %v9834_v25 = vpop.f32.mrb[183].mxu0  ;;  %v9871_v41 = vpop.f32.mrb[189].mxu1 }
 0x87a   :  { %v4451_v9 = vadd.f32 %v9832_v53, %v4386_v21  ;;  %v9835_v32 = vadd.f32 %v9834_v25, %v9833_v57  ;;  %v9872_v11 = vadd.f32 %v9871_v41, %v9870_v58  ;;  %v9873_v27 = vpop.f32.mrb[190].mxu1  ;;  %v11051_v58 = vld [vmem:[#allocation2 + $0x930] sm:$0xff]  }
 0x87b   :  { %v9874_v38 = vpop.f32.mrb[191].mxu1  ;;  %9953 = vmatpush3.bf16.msra.mxu1 %v11051_v58 }
 0x87c   :  { %v4454_v1 = vadd.f32 %v9835_v32, %v4389_v33  ;;  %v12112_v6 = vadd.f32 %v9872_v11, %v4451_v9  ;;  %v9875_v54 = vadd.f32 %v9874_v38, %v9873_v27 }
 0x87e   :  { %v12114_v13 = vadd.f32 %v9875_v54, %v4454_v1  ;;  %v9836_v40 = vpop.f32.mrb[184].mxu0 }
 0x87f   :  { %v9837_v2 = vpop.f32.mrb[185].mxu0 }
 0x880   :  { %v9838_v24 = vadd.f32 %v9837_v2, %v9836_v40  ;;  %v9839_v12 = vpop.f32.mrb[186].mxu0  ;;  %v9876_v37 = vpop.f32.mrb[192].mxu1 }
 0x881   :  { %v9840_v29 = vpop.f32.mrb[187].mxu0  ;;  %v9877_v47 = vpop.f32.mrb[193].mxu1 }
 0x882   :  { %v4459_v45 = vadd.f32 %v9838_v24, %v4394_v43  ;;  %v9841_v62 = vadd.f32 %v9840_v29, %v9839_v12  ;;  %v9878_v19 = vadd.f32 %v9877_v47, %v9876_v37  ;;  %v9879_v59 = vpop.f32.mrb[194].mxu1 }
 0x883   :  { %v9880_v30 = vpop.f32.mrb[195].mxu1 }
 0x884   :  { %v4462_v28 = vadd.f32 %v9841_v62, %v4397_v52  ;;  %v12119_v63 = vadd.f32 %v9878_v19, %v4459_v45  ;;  %v9881_v4 = vadd.f32 %v9880_v30, %v9879_v59 }
 0x886   :  { %v12121_v3 = vadd.f32 %v9881_v4, %v4462_v28  ;;  %v9842_v5 = vpop.f32.mrb[188].mxu0 }
 0x887   :  { %v9843_v14 = vpop.f32.mrb[189].mxu0 }
 0x888   :  { %v9844_v7 = vadd.f32 %v9843_v14, %v9842_v5  ;;  %v9845_v48 = vpop.f32.mrb[190].mxu0  ;;  %v9882_v16 = vpop.f32.mrb[196].mxu1 }
 0x889   :  { %v9846_v50 = vpop.f32.mrb[191].mxu0  ;;  %v9883_v10 = vpop.f32.mrb[197].mxu1 }
 0x88a   :  { %v4467_v36 = vadd.f32 %v9844_v7, %v4402_v18  ;;  %v9847_v26 = vadd.f32 %v9846_v50, %v9845_v48  ;;  %v9884_v55 = vadd.f32 %v9883_v10, %v9882_v16  ;;  %v9885_v31 = vpop.f32.mrb[198].mxu1 }
 0x88b   :  { %v9886_v49 = vpop.f32.mrb[199].mxu1 }
 0x88c   :  { %v4470_v21 = vadd.f32 %v9847_v26, %v4405_v44  ;;  %v12127_v53 = vadd.f32 %v9884_v55, %v4467_v36  ;;  %v9887_v15 = vadd.f32 %v9886_v49, %v9885_v31 }
 0x88e   :  { %v12129_v57 = vadd.f32 %v9887_v15, %v4470_v21 }
 0x88f   :  { %v9904_v25 = vpop.f32.mrb[192].mxu0 }
 0x890   :  { %v9905_v34 = vpop.f32.mrb[193].mxu0  ;;  %v10598_v23 = vpop.f32.mrb[200].mxu1 }
 0x891   :  { %v9906_v41 = vadd.f32 %v9905_v34, %v9904_v25  ;;  %v9907_v33 = vpop.f32.mrb[194].mxu0  ;;  %v4637_v9 = vpop.f32.mrb[201].mxu1 }
 0x892   :  { %v9908_v32 = vpop.f32.mrb[195].mxu0  ;;  %v10599_v11 = vpop.f32.mrb[202].mxu1 }
 0x893   :  { %v9909_v27 = vadd.f32 %v9908_v32, %v9907_v33  ;;  %v4573_v35 = vadd.f32 %v9906_v41, %v12106_v51  ;;  %v4640_v38 = vpop.f32.mrb[203].mxu1 }
 0x895   :  { %v4638_v61 = vadd.f32 %v4637_v9, %v4573_v35  ;;  %v4576_v1 = vadd.f32 %v9909_v27, %v12108_v17 }
 0x897   :  { %v4641_v54 = vadd.f32 %v4640_v38, %v4576_v1  ;;  %v9910_v40 = vpop.f32.mrb[196].mxu0  ;;  %v4668_v39 = vmax.f32 %v4638_v61, 0.0 }
 0x898   :  { %v9911_v20 = vpop.f32.mrb[197].mxu0  ;;  %v10602_v2 = vpop.f32.mrb[204].mxu1 }
 0x899   :  { %v4669_v43 = vmax.f32 %v4641_v54, 0.0  ;;  %v9912_v24 = vadd.f32 %v9911_v20, %v9910_v40  ;;  %v9913_v12 = vpop.f32.mrb[198].mxu0  ;;  %v4653_v37 = vpop.f32.mrb[205].mxu1 }
 0x89a   :  { %v9914_v29 = vpop.f32.mrb[199].mxu0  ;;  %v10603_v47 = vpop.f32.mrb[206].mxu1 }
 0x89b   :  { %v12133_v52 = vpack.c.bf16 %v4669_v43, %v4668_v39  ;;  %v4581_v45 = vadd.f32 %v9912_v24, %v12112_v6  ;;  %v9915_v51 = vadd.f32 %v9914_v29, %v9913_v12  ;;  %v4656_v62 = vpop.f32.mrb[207].mxu1  ;;  %v11049_v24 = vld [vmem:[#allocation2 + $0xa00] sm:$0xff]   ;;  %v11029_v12 = vld [vmem:[%s12658_s1 + $0x108] sm:$0xff]   ;;  %v11031_v29 = vld [vmem:[%s12658_s1 + $0x118] sm:$0xff]  }
 0x89d   :  { %v4681_v19 = vunpack.c.h.bf16 %v12133_v52  ;;  %v4646_v17 = vadd.f32 %v10598_v23, %v4581_v45  ;;  %v4584_v59 = vadd.f32 %v9915_v51, %v12114_v13  ;;  %5527 = vmatprep.mubr.bf16.mxu1 %v12133_v52  ;;  %v4680_v60 = vunpack.c.l.bf16 %v12133_v52  ;;  %v11033_v45 = vld [vmem:[%s12658_s1 + $0x128] sm:$0xff]   ;;  %v11034_v51 = vld [vmem:[%s12658_s1 + $0x130] sm:$0xff]  }
 0x89f   :  { %v4689_v30 = vsub.f32 %v4669_v43, %v4681_v19  ;;  %v4649_v56 = vadd.f32 %v10599_v11, %v4584_v59  ;;  %v9916_v28 = vpop.f32.mrb[200].mxu0  ;;  %v4688_v4 = vsub.f32 %v4668_v39, %v4680_v60  ;;  %v4670_v42 = vmax.f32 %v4646_v17, 0.0  ;;  %v11047_v39 = vld [vmem:[#allocation2 + $0xa40] sm:$0xff]   ;;  %v11052_v19 = vld [vmem:[#allocation2 + $0x978] sm:$0xff]   ;;  %v11053_v59 = vld [vmem:[#allocation2 + $0xa48] sm:$0xff]  }
 0x8a0   :  { %v9917_v5 = vpop.f32.mrb[201].mxu0  ;;  %v11028_v43 = vld [vmem:[%s12658_s1 + $0x100] sm:$0xff]   ;;  %v11054_v17 = vld [vmem:[#allocation2 + $0x938] sm:$0xff]   ;;  %9954 = vmatprep.subr.bf16.mxu1 %v11052_v19  ;;  %v11055_v60 = vld [vmem:[#allocation2 + $0xa08] sm:$0xff]  }
 0x8a1   :  { %v4671_v14 = vmax.f32 %v4649_v56, 0.0  ;;  %v9918_v46 = vadd.f32 %v9917_v5, %v9916_v28  ;;  %v9919_v6 = vpop.f32.mrb[202].mxu0  ;;  %v12140_v18 = vpack.c.bf16 %v4689_v30, %v4688_v4  ;;  %9955 = vmatpush3.bf16.msra.mxu1 %v11054_v17  ;;  %v11056_v30 = vld [vmem:[#allocation2 + $0x9c0] sm:$0xff]   ;;  %v11059_v56 = vld [vmem:[#allocation2 + $0xa50] sm:$0xff]   ;;  %v11065_v4 = vld [vmem:[#allocation2 + $0xa58] sm:$0xff]  }
 0x8a2   :  { %v9920_v7 = vpop.f32.mrb[203].mxu0  ;;  %9980 = vmatprep.subr.bf16.mxu1 %v11056_v30  ;;  %v11061_v28 = vld [vmem:[#allocation2 + $0xa10] sm:$0xff]   ;;  %v11067_v5 = vld [vmem:[#allocation2 + $0xa18] sm:$0xff]  }
 0x8a3   :  { %v12142_v48 = vpack.c.bf16 %v4671_v14, %v4670_v42  ;;  %v4589_v13 = vadd.f32 %v9918_v46, %v12119_v63  ;;  %v9921_v16 = vadd.f32 %v9920_v7, %v9919_v6  ;;  %4781 = vmatprep.subr.bf16.mxu0 %v12140_v18  ;;  %v11074_v46 = vld [vmem:[#allocation2 + $0xa68] sm:$0xff]   ;;  %v11078_v7 = vld [vmem:[#allocation2 + $0xa70] sm:$0xff]   ;;  %v11081_v17 = vld [vmem:[#allocation2 + $0x9b8] sm:$0xff]  }
 0x8a4   :  { %4782 = vmatpush1.bf16.msra.mxu0 %v12133_v52  ;;  %v11075_v6 = vld [vmem:[#allocation2 + $0xa28] sm:$0xff]  }
 0x8a5   :  { %v4654_v50 = vadd.f32 %v4653_v37, %v4589_v13  ;;  %v4592_v10 = vadd.f32 %v9921_v16, %v12121_v3  ;;  %v4682_v44 = vunpack.c.l.bf16 %v12142_v48  ;;  %v4683_v36 = vunpack.c.h.bf16 %v12142_v48  ;;  %v11030_v37 = vld [vmem:[%s12658_s1 + $0x110] sm:$0xff]   ;;  %v11082_v16 = vld [vmem:[#allocation2 + $0xa78] sm:$0xff]  }
 0x8a6   :  { %v11079_v13 = vld [vmem:[#allocation2 + $0xa30] sm:$0xff]  }
 0x8a7   :  { %v4657_v26 = vadd.f32 %v4656_v62, %v4592_v10  ;;  %v9922_v55 = vpop.f32.mrb[204].mxu0  ;;  %v4690_v31 = vsub.f32 %v4670_v42, %v4682_v44  ;;  %v4691_v22 = vsub.f32 %v4671_v14, %v4683_v36  ;;  %v4672_v8 = vmax.f32 %v4654_v50, 0.0  ;;  %v11035_v62 = vld [vmem:[%s12658_s1 + $0x138] sm:$0xff]   ;;  %v11070_v42 = vld [vmem:[#allocation2 + $0xa60] sm:$0xff]  }
 0x8a8   :  { %v9923_v49 = vpop.f32.mrb[205].mxu0  ;;  %v11071_v14 = vld [vmem:[#allocation2 + $0xa20] sm:$0xff]   ;;  %v11083_v50 = vld [vmem:[#allocation2 + $0xa38] sm:$0xff]  }
 0x8a9   :  { %v4673_v21 = vmax.f32 %v4657_v26, 0.0  ;;  %v9924_v63 = vadd.f32 %v9923_v49, %v9922_v55  ;;  %v9925_v15 = vpop.f32.mrb[206].mxu0  ;;  %v12150_v58 = vpack.c.bf16 %v4691_v22, %v4690_v31  ;;  %v12211_v10 = vld [vmem:[#allocation2 + $0xb00] sm:$0xff]   ;;  %v11058_v49 = vld [vmem:[#allocation2 + $0x9c8] sm:$0xff]  }
 0x8aa   :  { %v9926_v25 = vpop.f32.mrb[207].mxu0  ;;  %v11057_v55 = vld [vmem:[#allocation2 + $0x980] sm:$0xff]  }
 0x8ab   :  { %v12152_v34 = vpack.c.bf16 %v4673_v21, %v4672_v8  ;;  %v4597_v3 = vadd.f32 %v9924_v63, %v12127_v53  ;;  %v9927_v23 = vadd.f32 %v9926_v25, %v9925_v15  ;;  %4783 = vmatprep.subr.bf16.mxu0 %v12150_v58  ;;  %v11062_v63 = vld [vmem:[#allocation2 + $0x9d0] sm:$0xff]  }
 0x8ac   :  { %4784 = vmatpush1.bf16.msra.mxu0 %v12142_v48 }
 0x8ad   :  { %v4662_v41 = vadd.f32 %v10602_v2, %v4597_v3  ;;  %v4600_v33 = vadd.f32 %v9927_v23, %v12129_v57  ;;  %v4684_v9 = vunpack.c.l.bf16 %v12152_v34  ;;  %v4685_v32 = vunpack.c.h.bf16 %v12152_v34  ;;  %v11063_v23 = vld [vmem:[#allocation2 + $0x990] sm:$0xff]  }
 0x8af   :  { %v4665_v11 = vadd.f32 %v10603_v47, %v4600_v33  ;;  %v4692_v27 = vsub.f32 %v4672_v8, %v4684_v9  ;;  %v4693_v35 = vsub.f32 %v4673_v21, %v4685_v32  ;;  %v4674_v38 = vmax.f32 %v4662_v41, 0.0  ;;  %v11032_v47 = vld [vmem:[%s12658_s1 + $0x120] sm:$0xff]   ;;  %v11060_v21 = vld [vmem:[#allocation2 + $0x988] sm:$0xff]   ;;  %v11064_v9 = vld [vmem:[#allocation2 + $0x9d8] sm:$0xff]  }
 0x8b1   :  { %v4675_v61 = vmax.f32 %v4665_v11, 0.0  ;;  %v12160_v1 = vpack.c.bf16 %v4693_v35, %v4692_v27  ;;  %v11066_v11 = vld [vmem:[#allocation2 + $0x998] sm:$0xff]   ;;  %v11068_v27 = vld [vmem:[#allocation2 + $0x9e0] sm:$0xff]  }
 0x8b3   :  { %v12162_v53 = vpack.c.bf16 %v4675_v61, %v4674_v38  ;;  %4785 = vmatprep.subr.bf16.mxu0 %v12160_v1 }
 0x8b4   :  { %4786 = vmatpush1.bf16.msra.mxu0 %v12152_v34 }
 0x8b5   :  { %v4686_v54 = vunpack.c.l.bf16 %v12162_v53  ;;  %v4687_v57 = vunpack.c.h.bf16 %v12162_v53 }
 0x8b7   :  { %v4694_v40 = vsub.f32 %v4674_v38, %v4686_v54  ;;  %v4695_v20 = vsub.f32 %v4675_v61, %v4687_v57  ;;  %v11069_v54 = vld [vmem:[#allocation2 + $0x9a0] sm:$0xff]  }
 0x8b9   :  { %v12168_v2 = vpack.c.bf16 %v4695_v20, %v4694_v40  ;;  %v11072_v20 = vld [vmem:[#allocation2 + $0x9e8] sm:$0xff]  }
 0x8bb   :  { %4787 = vmatprep.subr.bf16.mxu0 %v12168_v2 }
 0x8bc   :  { %4788 = vmatpush1.bf16.msra.mxu0 %v12162_v53 }
 0x8bd   :  { %10020 = vmatprep.subr.bf16.mxu0 %v11047_v39 }
 0x8bf   :  { %8936 = vmatmul.mubr.msk.bf16.vlgmr.msra.gmra.mrb[208].mxu0 %vm150_vm0, %v11028_v43  ;;  %v11073_v43 = vld [vmem:[#allocation2 + $0x9a8] sm:$0xff]  }
 0x8c0   :  { %4823 = vmatprep.mubr.bf16.mxu0 %v11369_v0  ;;  %10021 = vmatpush3.bf16.msra.mxu0 %v11049_v24  ;;  %v11076_v24 = vld [vmem:[#allocation2 + $0x9f0] sm:$0xff]  }
 0x8c1   :  { %10022 = vmatprep.subr.bf16.mxu0 %v11053_v59  ;;  %v11084_v59 = vld [vmem:[#allocation2 + $0xac0] sm:$0xff]  }
 0x8c4   :  { %10023 = vmatpush3.bf16.msra.mxu0 %v11055_v60 }
 0x8c5   :  { %10024 = vmatprep.subr.bf16.mxu0 %v11059_v56 }
 0x8c7   :  { %8937 = vmatmul.mubr.msk.bf16.gmra.mrb[212].mxu0 %vm150_vm0, %v11029_v12 }
 0x8c8   :  { %4833 = vmatprep.mubr.bf16.mxu0 %v11369_v0  ;;  %10025 = vmatpush3.bf16.msra.mxu0 %v11061_v28 }
 0x8c9   :  { %10026 = vmatprep.subr.bf16.mxu0 %v11065_v4 }
 0x8cc   :  { %10027 = vmatpush3.bf16.msra.mxu0 %v11067_v5  ;;  %v11085_v5 = vld [vmem:[#allocation2 + $0xa80] sm:$0xff]  }
 0x8cd   :  { %10028 = vmatprep.subr.bf16.mxu0 %v11070_v42 }
 0x8cf   :  { %8938 = vmatmul.mubr.msk.bf16.gmra.mrb[216].mxu0 %vm150_vm0, %v11030_v37 }
 0x8d0   :  { %4843 = vmatprep.mubr.bf16.mxu0 %v11369_v0  ;;  %10029 = vmatpush3.bf16.msra.mxu0 %v11071_v14  ;;  %v11087_v14 = vld [vmem:[#allocation2 + $0xac8] sm:$0xff]  }
 0x8d1   :  { %10030 = vmatprep.subr.bf16.mxu0 %v11074_v46  ;;  %v11089_v46 = vld [vmem:[#allocation2 + $0xb08] sm:$0xff]  }
 0x8d4   :  { %10031 = vmatpush3.bf16.msra.mxu0 %v11075_v6  ;;  %v11088_v6 = vld [vmem:[#allocation2 + $0xa88] sm:$0xff]  }
 0x8d5   :  { %10032 = vmatprep.subr.bf16.mxu0 %v11078_v7 }
 0x8d7   :  { %8939 = vmatmul.mubr.msk.bf16.gmra.mrb[220].mxu0 %vm150_vm0, %v11031_v29 }
 0x8d8   :  { %4853 = vmatprep.mubr.bf16.mxu0 %v11369_v0  ;;  %10033 = vmatpush3.bf16.msra.mxu0 %v11079_v13  ;;  %v11090_v13 = vld [vmem:[#allocation2 + $0xad0] sm:$0xff]  }
 0x8d9   :  { %10034 = vmatprep.subr.bf16.mxu0 %v11082_v16 }
 0x8dc   :  { %10035 = vmatpush3.bf16.msra.mxu0 %v11083_v50  ;;  %v11092_v50 = vld [vmem:[#allocation2 + $0xb10] sm:$0xff]  }
 0x8dd   :  { %10604 = vmatprep.subr.bf16.mxu0 %v12211_v10 }
 0x8df   :  { %8940 = vmatmul.mubr.msk.bf16.gmra.mrb[224].mxu0 %vm150_vm0, %v11032_v47  ;;  %v11077_v47 = vld [vmem:[#allocation2 + $0x9b0] sm:$0xff]  }
 0x8e0   :  { %4863 = vmatprep.mubr.bf16.mxu0 %v11369_v0 }
 0x8e7   :  { %8941 = vmatmul.mubr.msk.bf16.gmra.mrb[228].mxu0 %vm150_vm0, %v11033_v45 }
 0x8e8   :  { %4873 = vmatprep.mubr.bf16.mxu0 %v11369_v0 }
 0x8ef   :  { %8942 = vmatmul.mubr.msk.bf16.gmra.mrb[232].mxu0 %vm150_vm0, %v11034_v51 }
 0x8f0   :  { %4883 = vmatprep.mubr.bf16.mxu0 %v11369_v0 }
 0x8f7   :  { %8943 = vmatmul.mubr.msk.bf16.gmra.mrb[236].mxu0 %vm150_vm0, %v11035_v62  ;;  %v11080_v62 = vld [vmem:[#allocation2 + $0x9f8] sm:$0xff]  }
 0x992   :  { %v4815_v44 = vpop.f32.mrb[208].mxu0 }
 0x993   :  { %v4817_v36 = vpop.f32.mrb[209].mxu0 }
 0x994   :  { %v4819_v26 = vpop.f32.mrb[210].mxu0 }
 0x995   :  { %v12214_v31 = vpack.c.bf16 %v4819_v26, %v4815_v44  ;;  %v4821_v22 = vpop.f32.mrb[211].mxu0 }
 0x996   :  { %v4895_v8 = vpack.c.bf16 %v4821_v22, %v4817_v36 }
 0x997   :  { %5528 = vmatmul.mubr.bf16.vlgmr.msra.gmra.mrb[208].mxu1 %v12214_v31 }
 0x998   :  { %5535 = vmatprep.mubr.bf16.mxu1 %v12142_v48  ;;  %9981 = vmatpush3.bf16.msra.mxu1 %v11057_v55  ;;  %v11091_v55 = vld [vmem:[#allocation2 + $0xa90] sm:$0xff]  }
 0x999   :  { %9982 = vmatprep.subr.bf16.mxu1 %v11058_v49  ;;  %v11093_v49 = vld [vmem:[#allocation2 + $0xad8] sm:$0xff]  }
 0x99a   :  { %v4825_v15 = vpop.f32.mrb[212].mxu0 }
 0x99b   :  { %v4827_v25 = vpop.f32.mrb[213].mxu0 }
 0x99c   :  { %v4829_v3 = vpop.f32.mrb[214].mxu0  ;;  %9983 = vmatpush3.bf16.msra.mxu1 %v11060_v21  ;;  %v11096_v21 = vld [vmem:[#allocation2 + $0xae0] sm:$0xff]  }
 0x99d   :  { %v12218_v41 = vpack.c.bf16 %v4829_v3, %v4825_v15  ;;  %v4831_v33 = vpop.f32.mrb[215].mxu0  ;;  %9984 = vmatprep.subr.bf16.mxu1 %v11062_v63  ;;  %v11098_v15 = vld [vmem:[#allocation2 + $0xb20] sm:$0xff]  }
 0x99e   :  { %v4897_v32 = vpack.c.bf16 %v4831_v33, %v4827_v25  ;;  %v11097_v33 = vld [vmem:[#allocation2 + $0xaa0] sm:$0xff]  }
 0x99f   :  { %5536 = vmatmul.mubr.bf16.gmra.mrb[212].mxu1 %v12218_v41 }
 0x9a0   :  { %5543 = vmatprep.mubr.bf16.mxu1 %v12152_v34  ;;  %9985 = vmatpush3.bf16.msra.mxu1 %v11063_v23 }
 0x9a1   :  { %9986 = vmatprep.subr.bf16.mxu1 %v11064_v9 }
 0x9a2   :  { %v4835_v35 = vpop.f32.mrb[216].mxu0 }
 0x9a3   :  { %v12222_v38 = vpop.f32.mrb[217].mxu0 }
 0x9a4   :  { %v4839_v61 = vpop.f32.mrb[218].mxu0  ;;  %9987 = vmatpush3.bf16.msra.mxu1 %v11066_v11  ;;  %v11100_v11 = vld [vmem:[#allocation2 + $0xaa8] sm:$0xff]  }
 0x9a5   :  { %v12224_v57 = vpack.c.bf16 %v4839_v61, %v4835_v35  ;;  %v4841_v40 = vpop.f32.mrb[219].mxu0  ;;  %9988 = vmatprep.subr.bf16.mxu1 %v11068_v27  ;;  %v11102_v35 = vld [vmem:[#allocation2 + $0xaf0] sm:$0xff]  }
 0x9a6   :  { %v4899_v39 = vpack.c.bf16 %v4841_v40, %v12222_v38  ;;  %v11104_v61 = vld [vmem:[#allocation2 + $0xb30] sm:$0xff]  }
 0x9a7   :  { %5544 = vmatmul.mubr.bf16.gmra.mrb[216].mxu1 %v12224_v57 }
 0x9a8   :  { %5551 = vmatprep.mubr.bf16.mxu1 %v12162_v53  ;;  %9989 = vmatpush3.bf16.msra.mxu1 %v11069_v54 }
 0x9a9   :  { %9990 = vmatprep.subr.bf16.mxu1 %v11072_v20 }
 0x9aa   :  { %v4845_v12 = vpop.f32.mrb[220].mxu0 }
 0x9ab   :  { %v12229_v37 = vpop.f32.mrb[221].mxu0 }
 0x9ac   :  { %v4849_v29 = vpop.f32.mrb[222].mxu0  ;;  %9991 = vmatpush3.bf16.msra.mxu1 %v11073_v43 }
 0x9ad   :  { %v12231_v45 = vpack.c.bf16 %v4849_v29, %v4845_v12  ;;  %v12233_v51 = vpop.f32.mrb[223].mxu0  ;;  %9992 = vmatprep.subr.bf16.mxu1 %v11076_v24  ;;  %v11105_v24 = vld [vmem:[#allocation2 + $0xaf8] sm:$0xff]  }
 0x9ae   :  { %v4901_v19 = vpack.c.bf16 %v12233_v51, %v12229_v37  ;;  %v11106_v12 = vld [vmem:[#allocation2 + $0xab8] sm:$0xff]  }
 0x9af   :  { %5552 = vmatmul.mubr.bf16.gmra.mrb[220].mxu1 %v12231_v45 }
 0x9b0   :  { %9993 = vmatpush3.bf16.msra.mxu1 %v11077_v47  ;;  %5592 = vmatprep.mubr.bf16.mxu1 %v4895_v8 }
 0x9b1   :  { %9994 = vmatprep.subr.bf16.mxu1 %v11080_v62 }
 0x9b2   :  { %v4855_v60 = vpop.f32.mrb[224].mxu0 }
 0x9b3   :  { %v4857_v30 = vpop.f32.mrb[225].mxu0 }
 0x9b4   :  { %v4859_v56 = vpop.f32.mrb[226].mxu0  ;;  %9995 = vmatpush3.bf16.msra.mxu1 %v11081_v17 }
 0x9b5   :  { %v12238_v28 = vpack.c.bf16 %v4859_v56, %v4855_v60  ;;  %v4861_v4 = vpop.f32.mrb[227].mxu0  ;;  %10060 = vmatprep.subr.bf16.mxu1 %v11084_v59 }
 0x9b6   :  { %v4903_v42 = vpack.c.bf16 %v4861_v4, %v4857_v30 }
 0x9b7   :  { %5593 = vmatmul.mubr.bf16.vlgmr.msra.gmra.mrb[224].mxu1 %v12238_v28 }
 0x9b8   :  { %5600 = vmatprep.mubr.bf16.mxu1 %v4897_v32  ;;  %5657 = vmatprep.mubr.bf16.mxu0 %v4903_v42  ;;  %v11099_v32 = vld [vmem:[#allocation2 + $0xae8] sm:$0xff]  }
 0x9b9   :  { %10061 = vmatpush3.bf16.msra.mxu1 %v11085_v5  ;;  %5658 = vmatmul.mubr.bf16.vlgmr.msra.gmra.mrb[240].mxu0 %v12140_v18  ;;  %v11095_v18 = vld [vmem:[#allocation2 + $0xb18] sm:$0xff]  }
 0x9ba   :  { %v4865_v7 = vpop.f32.mrb[228].mxu0  ;;  %10605 = vmatpush3.bf16.msra.mxu0 %v12211_v10  ;;  %10062 = vmatprep.subr.bf16.mxu1 %v11087_v14  ;;  %v11094_v10 = vld [vmem:[#allocation2 + $0xa98] sm:$0xff]   ;;  %v12269_v14 = vld [vmem:[#allocation6 + $0x4] ss:$0 sm:$0xff] }
 0x9bb   :  { %v4867_v16 = vpop.f32.mrb[229].mxu0  ;;  %10606 = vmatprep.subr.bf16.mxu0 %v11089_v46 }
 0x9bc   :  { %v4869_v44 = vpop.f32.mrb[230].mxu0 }
 0x9bd   :  { %v12243_v36 = vpack.c.bf16 %v4869_v44, %v4865_v7  ;;  %10063 = vmatpush3.bf16.msra.mxu1 %v11088_v6  ;;  %v4871_v26 = vpop.f32.mrb[231].mxu0 }
 0x9be   :  { %v4905_v22 = vpack.c.bf16 %v4871_v26, %v4867_v16  ;;  %10607 = vmatpush3.bf16.msra.mxu0 %v11089_v46  ;;  %10064 = vmatprep.subr.bf16.mxu1 %v11090_v13 }
 0x9bf   :  { %5601 = vmatmul.mubr.bf16.gmra.mrb[228].mxu1 %v12243_v36  ;;  %10608 = vmatprep.subr.bf16.mxu0 %v11092_v50 }
 0x9c0   :  { %5608 = vmatprep.mubr.bf16.mxu1 %v4899_v39  ;;  %5665 = vmatprep.mubr.bf16.mxu0 %v4905_v22  ;;  %v11103_v39 = vld [vmem:[#allocation2 + $0xab0] sm:$0xff]  }
 0x9c1   :  { %10065 = vmatpush3.bf16.msra.mxu1 %v11091_v55  ;;  %5666 = vmatmul.mubr.bf16.gmra.mrb[244].mxu0 %v12150_v58  ;;  %v11101_v58 = vld [vmem:[#allocation2 + $0xb28] sm:$0xff]  }
 0x9c2   :  { %v4875_v8 = vpop.f32.mrb[232].mxu0  ;;  %10609 = vmatpush3.bf16.msra.mxu0 %v11092_v50  ;;  %10066 = vmatprep.subr.bf16.mxu1 %v11093_v49 }
 0x9c3   :  { %v4877_v63 = vpop.f32.mrb[233].mxu0  ;;  %10610 = vmatprep.subr.bf16.mxu0 %v11095_v18 }
 0x9c4   :  { %v4879_v25 = vpop.f32.mrb[234].mxu0 }
 0x9c5   :  { %v4906_v3 = vpack.c.bf16 %v4879_v25, %v4875_v8  ;;  %10067 = vmatpush3.bf16.msra.mxu1 %v11094_v10  ;;  %v4881_v23 = vpop.f32.mrb[235].mxu0 }
 0x9c6   :  { %v4907_v9 = vpack.c.bf16 %v4881_v23, %v4877_v63  ;;  %10611 = vmatpush3.bf16.msra.mxu0 %v11095_v18  ;;  %10068 = vmatprep.subr.bf16.mxu1 %v11096_v21  ;;  %v11116_v23 = vld [vmem:[#allocation2 + $0xb80] sm:$0xff]  }
 0x9c7   :  { %5609 = vmatmul.mubr.bf16.gmra.mrb[232].mxu1 %v4906_v3  ;;  %10612 = vmatprep.subr.bf16.mxu0 %v11098_v15 }
 0x9c8   :  { %5616 = vmatprep.mubr.bf16.mxu1 %v4901_v19  ;;  %5673 = vmatprep.mubr.bf16.mxu0 %v4907_v9  ;;  %v11118_v9 = vld [vmem:[#allocation2 + $0xb88] sm:$0xff]  }
 0x9c9   :  { %10069 = vmatpush3.bf16.msra.mxu1 %v11097_v33  ;;  %5674 = vmatmul.mubr.bf16.gmra.mrb[248].mxu0 %v12160_v1  ;;  %v11107_v1 = vld [vmem:[#allocation2 + $0xb38] sm:$0xff]   ;;  %v11117_v33 = vld [vmem:[#allocation2 + $0xb40] sm:$0xff]  }
 0x9ca   :  { %v4885_v27 = vpop.f32.mrb[236].mxu0  ;;  %10613 = vmatpush3.bf16.msra.mxu0 %v11098_v15  ;;  %10070 = vmatprep.subr.bf16.mxu1 %v11099_v32 }
 0x9cb   :  { %v4887_v38 = vpop.f32.mrb[237].mxu0  ;;  %10614 = vmatprep.subr.bf16.mxu0 %v11101_v58 }
 0x9cc   :  { %v4889_v54 = vpop.f32.mrb[238].mxu0 }
 0x9cd   :  { %v4908_v40 = vpack.c.bf16 %v4889_v54, %v4885_v27  ;;  %10071 = vmatpush3.bf16.msra.mxu1 %v11100_v11  ;;  %v4891_v20 = vpop.f32.mrb[239].mxu0 }
 0x9ce   :  { %v4909_v43 = vpack.c.bf16 %v4891_v20, %v4887_v38  ;;  %10615 = vmatpush3.bf16.msra.mxu0 %v11101_v58  ;;  %10072 = vmatprep.subr.bf16.mxu1 %v11102_v35 }
 0x9cf   :  { %5617 = vmatmul.mubr.bf16.gmra.mrb[236].mxu1 %v4908_v40  ;;  %10616 = vmatprep.subr.bf16.mxu0 %v11104_v61 }
 0x9d0   :  { %5681 = vmatprep.mubr.bf16.mxu0 %v4909_v43  ;;  %5722 = vmatprep.mubr.bf16.mxu1 %v12133_v52  ;;  %v11119_v43 = vld [vmem:[#allocation2 + $0xb48] sm:$0xff]  }
 0x9d1   :  { %10073 = vmatpush3.bf16.msra.mxu1 %v11103_v39  ;;  %5682 = vmatmul.mubr.bf16.gmra.mrb[252].mxu0 %v12168_v2 }
 0x9d2   :  { %10617 = vmatpush3.bf16.msra.mxu0 %v11104_v61  ;;  %10620 = vmatprep.mubr.bf16.mxu0 %v12238_v28 }
 0x9d3   :  { %10074 = vmatprep.subr.bf16.mxu1 %v11105_v24  ;;  %10618 = vmatprep.subr.bf16.mxu0 %v11107_v1 }
 0x9d5   :  { %10075 = vmatpush3.bf16.msra.mxu1 %v11106_v12 }
 0x9d6   :  { %10619 = vmatpush3.bf16.msra.mxu0 %v11107_v1  ;;  %10112 = vmatprep.subr.bf16.mxu1 %v11116_v23  ;;  %v11120_v1 = vld [vmem:[#allocation2 + $0xb90] sm:$0xff]   ;;  %v11128_v23 = vld [vmem:[#allocation2 + $0xb68] sm:$0xff]  }
 0x9d8   :  { %5723 = vmatmul.mubr.bf16.vlgmr.msra.gmra.mrb[240].mxu1 %v12214_v31 }
 0x9d9   :  { %5730 = vmatprep.mubr.bf16.mxu1 %v12142_v48  ;;  %10621 = vmatmul.mubr.bf16.vlgmr.msra.gmra.mrb[0].mxu0 %v12243_v36 }
 0x9da   :  { %10624 = vmatprep.mubr.bf16.mxu0 %v4906_v3  ;;  %10113 = vmatpush3.bf16.msra.mxu1 %v11117_v33 }
 0x9db   :  { %10114 = vmatprep.subr.bf16.mxu1 %v11118_v9  ;;  %v11130_v9 = vld [vmem:[#allocation2 + $0xbb0] sm:$0xff]  }
 0x9de   :  { %10115 = vmatpush3.bf16.msra.mxu1 %v11119_v43 }
 0x9df   :  { %10116 = vmatprep.subr.bf16.mxu1 %v11120_v1 }
 0x9e0   :  { %5731 = vmatmul.mubr.bf16.gmra.mrb[244].mxu1 %v12218_v41 }
 0x9e1   :  { %5738 = vmatprep.mubr.bf16.mxu1 %v12152_v34  ;;  %10625 = vmatmul.mubr.bf16.gmra.mrb[4].mxu0 %v4908_v40 }
 0x9e2   :  { %5965 = vmatprep.mubr.bf16.mxu0 %v11369_v0 }
 0x9e8   :  { %5739 = vmatmul.mubr.bf16.gmra.mrb[248].mxu1 %v12224_v57 }
 0x9e9   :  { %5746 = vmatprep.mubr.bf16.mxu1 %v12162_v53 }
 0x9f0   :  { %5747 = vmatmul.mubr.bf16.gmra.mrb[252].mxu1 %v12231_v45 }
 0xa6a   :  { %v9956_v52 = vpop.f32.mrb[208].mxu1 }
 0xa6b   :  { %v9957_v2 = vpop.f32.mrb[209].mxu1 }
 0xa6c   :  { %v9958_v31 = vadd.f32 %v9957_v2, %v9956_v52  ;;  %v9959_v48 = vpop.f32.mrb[210].mxu1 }
 0xa6d   :  { %v9960_v37 = vpop.f32.mrb[211].mxu1 }
 0xa6e   :  { %v9961_v29 = vadd.f32 %v9960_v37, %v9959_v48  ;;  %v5530_v7 = vadd.f32 %v9958_v31, %v12269_v14  ;;  %v11121_v37 = vld [vmem:[#allocation2 + $0xb50] sm:$0xff]  }
 0xa6f   :  { %10117 = vmatpush3.bf16.msra.mxu1 %v11121_v37 }
 0xa70   :  { %v5533_v26 = vadd.f32 %v9961_v29, %v12269_v14 }
 0xa72   :  { %v9962_v47 = vpop.f32.mrb[212].mxu1 }
 0xa73   :  { %v9963_v51 = vpop.f32.mrb[213].mxu1 }
 0xa74   :  { %v9964_v41 = vadd.f32 %v9963_v51, %v9962_v47  ;;  %v9965_v62 = vpop.f32.mrb[214].mxu1  ;;  %v11122_v47 = vld [vmem:[#allocation2 + $0xb98] sm:$0xff]  }
 0xa75   :  { %v9966_v34 = vpop.f32.mrb[215].mxu1  ;;  %10118 = vmatprep.subr.bf16.mxu1 %v11122_v47 }
 0xa76   :  { %v9967_v19 = vadd.f32 %v9966_v34, %v9965_v62  ;;  %v5538_v32 = vadd.f32 %v9964_v41, %v12269_v14 }
 0xa78   :  { %v5541_v61 = vadd.f32 %v9967_v19, %v12269_v14 }
 0xa7a   :  { %v9968_v17 = vpop.f32.mrb[216].mxu1 }
 0xa7b   :  { %v9969_v59 = vpop.f32.mrb[217].mxu1 }
 0xa7c   :  { %v9970_v60 = vadd.f32 %v9969_v59, %v9968_v17  ;;  %v9971_v57 = vpop.f32.mrb[218].mxu1 }
 0xa7d   :  { %v9972_v30 = vpop.f32.mrb[219].mxu1 }
 0xa7e   :  { %v12263_v53 = vadd.f32 %v9972_v30, %v9971_v57  ;;  %v5546_v51 = vadd.f32 %v9970_v60, %v12269_v14 }
 0xa80   :  { %v5549_v59 = vadd.f32 %v12263_v53, %v12269_v14  ;;  %v11126_v53 = vld [vmem:[#allocation2 + $0xba8] sm:$0xff]  }
 0xa82   :  { %v9974_v45 = vpop.f32.mrb[220].mxu1 }
 0xa83   :  { %v9975_v56 = vpop.f32.mrb[221].mxu1 }
 0xa84   :  { %v12265_v28 = vadd.f32 %v9975_v56, %v9974_v45  ;;  %v9977_v4 = vpop.f32.mrb[222].mxu1 }
 0xa85   :  { %v9978_v5 = vpop.f32.mrb[223].mxu1 }
 0xa86   :  { %v12267_v42 = vadd.f32 %v9978_v5, %v9977_v4  ;;  %v11123_v4 = vld [vmem:[#allocation2 + $0xb58] sm:$0xff]  }
 0xa87   :  { %10119 = vmatpush3.bf16.msra.mxu1 %v11123_v4 }
 0xa8a   :  { %v9996_v46 = vpop.f32.mrb[224].mxu1 }
 0xa8b   :  { %v9997_v6 = vpop.f32.mrb[225].mxu1 }
 0xa8c   :  { %v9998_v13 = vadd.f32 %v9997_v6, %v9996_v46  ;;  %v9999_v16 = vpop.f32.mrb[226].mxu1  ;;  %v10036_v50 = vpop.f32.mrb[240].mxu0  ;;  %v11124_v46 = vld [vmem:[#allocation2 + $0xba0] sm:$0xff]  }
 0xa8d   :  { %v10000_v44 = vpop.f32.mrb[227].mxu1  ;;  %v10037_v36 = vpop.f32.mrb[241].mxu0  ;;  %10120 = vmatprep.subr.bf16.mxu1 %v11124_v46 }
 0xa8e   :  { %v5595_v55 = vadd.f32 %v9998_v13, %v5530_v7  ;;  %v10001_v22 = vadd.f32 %v10000_v44, %v9999_v16  ;;  %v10038_v49 = vadd.f32 %v10037_v36, %v10036_v50  ;;  %v10039_v18 = vpop.f32.mrb[242].mxu0  ;;  %v11125_v50 = vld [vmem:[#allocation2 + $0xb60] sm:$0xff]   ;;  %v5554_v36 = vadd.f32 %v12265_v28, %v12269_v14 }
 0xa8f   :  { %v10040_v10 = vpop.f32.mrb[243].mxu0  ;;  %10121 = vmatpush3.bf16.msra.mxu1 %v11125_v50 }
 0xa90   :  { %v5598_v8 = vadd.f32 %v10001_v22, %v5533_v26  ;;  %v12273_v21 = vadd.f32 %v10038_v49, %v5595_v55  ;;  %v10041_v63 = vadd.f32 %v10040_v10, %v10039_v18  ;;  %v5557_v10 = vadd.f32 %v12267_v42, %v12269_v14  ;;  %10122 = vmatprep.subr.bf16.mxu1 %v11126_v53 }
 0xa92   :  { %v12275_v15 = vadd.f32 %v10041_v63, %v5598_v8  ;;  %v10002_v25 = vpop.f32.mrb[228].mxu1 }
 0xa93   :  { %v10003_v3 = vpop.f32.mrb[229].mxu1  ;;  %10123 = vmatpush3.bf16.msra.mxu1 %v11128_v23 }
 0xa94   :  { %v10004_v58 = vadd.f32 %v10003_v3, %v10002_v25  ;;  %v10005_v11 = vpop.f32.mrb[230].mxu1  ;;  %v10042_v27 = vpop.f32.mrb[244].mxu0  ;;  %10124 = vmatprep.subr.bf16.mxu1 %v11130_v9 }
 0xa95   :  { %v10006_v35 = vpop.f32.mrb[231].mxu1  ;;  %v10043_v38 = vpop.f32.mrb[245].mxu0 }
 0xa96   :  { %v5603_v54 = vadd.f32 %v10004_v58, %v5538_v32  ;;  %v10007_v40 = vadd.f32 %v10006_v35, %v10005_v11  ;;  %v10044_v20 = vadd.f32 %v10043_v38, %v10042_v27  ;;  %v10045_v39 = vpop.f32.mrb[246].mxu0  ;;  %v11131_v27 = vld [vmem:[#allocation2 + $0xb70] sm:$0xff]  }
 0xa97   :  { %v10046_v24 = vpop.f32.mrb[247].mxu0  ;;  %10125 = vmatpush3.bf16.msra.mxu1 %v11131_v27 }
 0xa98   :  { %v5606_v12 = vadd.f32 %v10007_v40, %v5541_v61  ;;  %v12279_v52 = vadd.f32 %v10044_v20, %v5603_v54  ;;  %v10047_v2 = vadd.f32 %v10046_v24, %v10045_v39 }
 0xa9a   :  { %v12281_v31 = vadd.f32 %v10047_v2, %v5606_v12  ;;  %v10008_v48 = vpop.f32.mrb[232].mxu1 }
 0xa9b   :  { %v10009_v29 = vpop.f32.mrb[233].mxu1 }
 0xa9c   :  { %v10010_v41 = vadd.f32 %v10009_v29, %v10008_v48  ;;  %v10011_v62 = vpop.f32.mrb[234].mxu1  ;;  %v10048_v34 = vpop.f32.mrb[248].mxu0 }
 0xa9d   :  { %v10012_v19 = vpop.f32.mrb[235].mxu1  ;;  %v10049_v17 = vpop.f32.mrb[249].mxu0 }
 0xa9e   :  { %v5611_v57 = vadd.f32 %v10010_v41, %v5546_v51  ;;  %v10013_v30 = vadd.f32 %v10012_v19, %v10011_v62  ;;  %v10050_v45 = vadd.f32 %v10049_v17, %v10048_v34  ;;  %v10051_v56 = vpop.f32.mrb[250].mxu0 }
 0xa9f   :  { %v10052_v5 = vpop.f32.mrb[251].mxu0 }
 0xaa0   :  { %v5614_v6 = vadd.f32 %v10013_v30, %v5549_v59  ;;  %v12286_v7 = vadd.f32 %v10050_v45, %v5611_v57  ;;  %v10053_v60 = vadd.f32 %v10052_v5, %v10051_v56 }
 0xaa2   :  { %v12288_v13 = vadd.f32 %v10053_v60, %v5614_v6  ;;  %v10014_v16 = vpop.f32.mrb[236].mxu1 }
 0xaa3   :  { %v10015_v44 = vpop.f32.mrb[237].mxu1 }
 0xaa4   :  { %v10016_v26 = vadd.f32 %v10015_v44, %v10014_v16  ;;  %v10017_v55 = vpop.f32.mrb[238].mxu1  ;;  %v10054_v22 = vpop.f32.mrb[252].mxu0 }
 0xaa5   :  { %v10018_v49 = vpop.f32.mrb[239].mxu1  ;;  %v10055_v18 = vpop.f32.mrb[253].mxu0 }
 0xaa6   :  { %v5619_v8 = vadd.f32 %v10016_v26, %v5554_v36  ;;  %v10019_v63 = vadd.f32 %v10018_v49, %v10017_v55  ;;  %v10056_v25 = vadd.f32 %v10055_v18, %v10054_v22  ;;  %v10057_v3 = vpop.f32.mrb[254].mxu0 }
 0xaa7   :  { %v10058_v33 = vpop.f32.mrb[255].mxu0 }
 0xaa8   :  { %v5622_v32 = vadd.f32 %v10019_v63, %v5557_v10  ;;  %v12294_v58 = vadd.f32 %v10056_v25, %v5619_v8  ;;  %v10059_v28 = vadd.f32 %v10058_v33, %v10057_v3 }
 0xaaa   :  { %v12296_v11 = vadd.f32 %v10059_v28, %v5622_v32 }
 0xaab   :  { %v10076_v35 = vpop.f32.mrb[240].mxu1 }
 0xaac   :  { %v10077_v42 = vpop.f32.mrb[241].mxu1  ;;  %v10622_v14 = vpop.f32.mrb[0].mxu0 }
 0xaad   :  { %v10078_v38 = vadd.f32 %v10077_v42, %v10076_v35  ;;  %v10079_v61 = vpop.f32.mrb[242].mxu1  ;;  %v5789_v54 = vpop.f32.mrb[1].mxu0 }
 0xaae   :  { %v10080_v40 = vpop.f32.mrb[243].mxu1  ;;  %v10623_v20 = vpop.f32.mrb[2].mxu0 }
 0xaaf   :  { %v10081_v39 = vadd.f32 %v10080_v40, %v10079_v61  ;;  %v5725_v43 = vadd.f32 %v10078_v38, %v12273_v21  ;;  %v5792_v24 = vpop.f32.mrb[3].mxu0 }
 0xab1   :  { %v5790_v1 = vadd.f32 %v5789_v54, %v5725_v43  ;;  %v5728_v12 = vadd.f32 %v10081_v39, %v12275_v15 }
 0xab3   :  { %v5793_v2 = vadd.f32 %v5792_v24, %v5728_v12  ;;  %v10082_v48 = vpop.f32.mrb[244].mxu1  ;;  %v5820_v47 = vmax.f32 %v5790_v1, 0.0 }
 0xab4   :  { %v10083_v37 = vpop.f32.mrb[245].mxu1  ;;  %v10626_v29 = vpop.f32.mrb[4].mxu0 }
 0xab5   :  { %v5821_v51 = vmax.f32 %v5793_v2, 0.0  ;;  %v10084_v41 = vadd.f32 %v10083_v37, %v10082_v48  ;;  %v10085_v62 = vpop.f32.mrb[246].mxu1  ;;  %v5805_v34 = vpop.f32.mrb[5].mxu0 }
 0xab6   :  { %v10086_v19 = vpop.f32.mrb[247].mxu1  ;;  %v10627_v17 = vpop.f32.mrb[6].mxu0 }
 0xab7   :  { %v12300_v59 = vpack.c.bf16 %v5821_v51, %v5820_v47  ;;  %v5733_v57 = vadd.f32 %v10084_v41, %v12279_v52  ;;  %v10087_v21 = vadd.f32 %v10086_v19, %v10085_v62  ;;  %v5808_v30 = vpop.f32.mrb[7].mxu0  ;;  %v11129_v41 = vld [vmem:[#allocation2 + $0xc40] sm:$0xff]   ;;  %v11109_v62 = vld [vmem:[%s12658_s1 + $0x148] sm:$0xff]   ;;  %v11111_v19 = vld [vmem:[%s12658_s1 + $0x158] sm:$0xff]  }
 0xab9   :  { %v5833_v45 = vunpack.c.h.bf16 %v12300_v59  ;;  %v5798_v15 = vadd.f32 %v10622_v14, %v5733_v57  ;;  %v5736_v56 = vadd.f32 %v10087_v21, %v12281_v31  ;;  %6679 = vmatprep.mubr.bf16.mxu1 %v12300_v59  ;;  %v5832_v4 = vunpack.c.l.bf16 %v12300_v59  ;;  %v11113_v57 = vld [vmem:[%s12658_s1 + $0x168] sm:$0xff]   ;;  %v11114_v21 = vld [vmem:[%s12658_s1 + $0x170] sm:$0xff]  }
 0xabb   :  { %v5841_v5 = vsub.f32 %v5821_v51, %v5833_v45  ;;  %v5801_v46 = vadd.f32 %v10623_v20, %v5736_v56  ;;  %v10088_v6 = vpop.f32.mrb[248].mxu1  ;;  %v5840_v60 = vsub.f32 %v5820_v47, %v5832_v4  ;;  %v5822_v50 = vmax.f32 %v5798_v15, 0.0  ;;  %v11127_v47 = vld [vmem:[#allocation2 + $0xc80] sm:$0xff]   ;;  %v11132_v45 = vld [vmem:[#allocation2 + $0xbb8] sm:$0xff]   ;;  %v11133_v56 = vld [vmem:[#allocation2 + $0xc88] sm:$0xff]  }
 0xabc   :  { %v10089_v16 = vpop.f32.mrb[249].mxu1  ;;  %v11108_v51 = vld [vmem:[%s12658_s1 + $0x140] sm:$0xff]   ;;  %v11134_v15 = vld [vmem:[#allocation2 + $0xb78] sm:$0xff]   ;;  %10126 = vmatprep.subr.bf16.mxu1 %v11132_v45  ;;  %v11135_v4 = vld [vmem:[#allocation2 + $0xc48] sm:$0xff]  }
 0xabd   :  { %v5823_v44 = vmax.f32 %v5801_v46, 0.0  ;;  %v10090_v53 = vadd.f32 %v10089_v16, %v10088_v6  ;;  %v10091_v52 = vpop.f32.mrb[250].mxu1  ;;  %v12307_v36 = vpack.c.bf16 %v5841_v5, %v5840_v60  ;;  %10127 = vmatpush3.bf16.msra.mxu1 %v11134_v15  ;;  %v11136_v5 = vld [vmem:[#allocation2 + $0xc00] sm:$0xff]   ;;  %v11139_v46 = vld [vmem:[#allocation2 + $0xc90] sm:$0xff]   ;;  %v11145_v60 = vld [vmem:[#allocation2 + $0xc98] sm:$0xff]  }
 0xabe   :  { %v10092_v26 = vpop.f32.mrb[251].mxu1  ;;  %10152 = vmatprep.subr.bf16.mxu1 %v11136_v5  ;;  %v11141_v6 = vld [vmem:[#allocation2 + $0xc50] sm:$0xff]   ;;  %v11147_v16 = vld [vmem:[#allocation2 + $0xc58] sm:$0xff]  }
 0xabf   :  { %v12309_v55 = vpack.c.bf16 %v5823_v44, %v5822_v50  ;;  %v5741_v31 = vadd.f32 %v10090_v53, %v12286_v7  ;;  %v10093_v22 = vadd.f32 %v10092_v26, %v10091_v52  ;;  %5933 = vmatprep.subr.bf16.mxu0 %v12307_v36  ;;  %v11154_v53 = vld [vmem:[#allocation2 + $0xca8] sm:$0xff]   ;;  %v11158_v26 = vld [vmem:[#allocation2 + $0xcb0] sm:$0xff]   ;;  %v11161_v15 = vld [vmem:[#allocation2 + $0xbf8] sm:$0xff]  }
 0xac0   :  { %5934 = vmatpush1.bf16.msra.mxu0 %v12300_v59  ;;  %v11155_v52 = vld [vmem:[#allocation2 + $0xc68] sm:$0xff]  }
 0xac1   :  { %v5806_v49 = vadd.f32 %v5805_v34, %v5741_v31  ;;  %v5744_v18 = vadd.f32 %v10093_v22, %v12288_v13  ;;  %v5834_v10 = vunpack.c.l.bf16 %v12309_v55  ;;  %v5835_v8 = vunpack.c.h.bf16 %v12309_v55  ;;  %v11110_v34 = vld [vmem:[%s12658_s1 + $0x150] sm:$0xff]   ;;  %v11162_v22 = vld [vmem:[#allocation2 + $0xcb8] sm:$0xff]  }
 0xac2   :  { %v11159_v31 = vld [vmem:[#allocation2 + $0xc70] sm:$0xff]  }
 0xac3   :  { %v5809_v63 = vadd.f32 %v5808_v30, %v5744_v18  ;;  %v10094_v25 = vpop.f32.mrb[252].mxu1  ;;  %v5842_v3 = vsub.f32 %v5822_v50, %v5834_v10  ;;  %v5843_v23 = vsub.f32 %v5823_v44, %v5835_v8  ;;  %v5824_v9 = vmax.f32 %v5806_v49, 0.0  ;;  %v11115_v30 = vld [vmem:[%s12658_s1 + $0x178] sm:$0xff]   ;;  %v11150_v50 = vld [vmem:[#allocation2 + $0xca0] sm:$0xff]  }
 0xac4   :  { %v10095_v33 = vpop.f32.mrb[253].mxu1  ;;  %v11151_v44 = vld [vmem:[#allocation2 + $0xc60] sm:$0xff]   ;;  %v11163_v49 = vld [vmem:[#allocation2 + $0xc78] sm:$0xff]  }
 0xac5   :  { %v5825_v32 = vmax.f32 %v5809_v63, 0.0  ;;  %v10096_v7 = vadd.f32 %v10095_v33, %v10094_v25  ;;  %v10097_v28 = vpop.f32.mrb[254].mxu1  ;;  %v12317_v27 = vpack.c.bf16 %v5843_v23, %v5842_v3  ;;  %v12378_v18 = vld [vmem:[#allocation2 + $0xd40] sm:$0xff]   ;;  %v11138_v33 = vld [vmem:[#allocation2 + $0xc08] sm:$0xff]  }
 0xac6   :  { %v10098_v35 = vpop.f32.mrb[255].mxu1  ;;  %v11137_v25 = vld [vmem:[#allocation2 + $0xbc0] sm:$0xff]  }
 0xac7   :  { %v12319_v42 = vpack.c.bf16 %v5825_v32, %v5824_v9  ;;  %v5749_v13 = vadd.f32 %v10096_v7, %v12294_v58  ;;  %v10099_v14 = vadd.f32 %v10098_v35, %v10097_v28  ;;  %5935 = vmatprep.subr.bf16.mxu0 %v12317_v27  ;;  %v11142_v7 = vld [vmem:[#allocation2 + $0xc10] sm:$0xff]  }
 0xac8   :  { %5936 = vmatpush1.bf16.msra.mxu0 %v12309_v55 }
 0xac9   :  { %v5814_v38 = vadd.f32 %v10626_v29, %v5749_v13  ;;  %v5752_v61 = vadd.f32 %v10099_v14, %v12296_v11  ;;  %v5836_v54 = vunpack.c.l.bf16 %v12319_v42  ;;  %v5837_v40 = vunpack.c.h.bf16 %v12319_v42  ;;  %v11143_v14 = vld [vmem:[#allocation2 + $0xbd0] sm:$0xff]  }
 0xacb   :  { %v5817_v20 = vadd.f32 %v10627_v17, %v5752_v61  ;;  %v5844_v39 = vsub.f32 %v5824_v9, %v5836_v54  ;;  %v5845_v43 = vsub.f32 %v5825_v32, %v5837_v40  ;;  %v5826_v24 = vmax.f32 %v5814_v38, 0.0  ;;  %v11112_v17 = vld [vmem:[%s12658_s1 + $0x160] sm:$0xff]   ;;  %v11140_v32 = vld [vmem:[#allocation2 + $0xbc8] sm:$0xff]   ;;  %v11144_v54 = vld [vmem:[#allocation2 + $0xc18] sm:$0xff]  }
 0xacd   :  { %v5827_v1 = vmax.f32 %v5817_v20, 0.0  ;;  %v12327_v12 = vpack.c.bf16 %v5845_v43, %v5844_v39  ;;  %v11146_v20 = vld [vmem:[#allocation2 + $0xbd8] sm:$0xff]   ;;  %v11148_v39 = vld [vmem:[#allocation2 + $0xc20] sm:$0xff]  }
 0xacf   :  { %v12329_v58 = vpack.c.bf16 %v5827_v1, %v5826_v24  ;;  %5937 = vmatprep.subr.bf16.mxu0 %v12327_v12 }
 0xad0   :  { %5938 = vmatpush1.bf16.msra.mxu0 %v12319_v42 }
 0xad1   :  { %v5838_v2 = vunpack.c.l.bf16 %v12329_v58  ;;  %v5839_v11 = vunpack.c.h.bf16 %v12329_v58 }
 0xad3   :  { %v5846_v48 = vsub.f32 %v5826_v24, %v5838_v2  ;;  %v5847_v37 = vsub.f32 %v5827_v1, %v5839_v11  ;;  %v11149_v2 = vld [vmem:[#allocation2 + $0xbe0] sm:$0xff]  }
 0xad5   :  { %v12335_v29 = vpack.c.bf16 %v5847_v37, %v5846_v48  ;;  %v11152_v37 = vld [vmem:[#allocation2 + $0xc28] sm:$0xff]  }
 0xad7   :  { %5939 = vmatprep.subr.bf16.mxu0 %v12335_v29 }
 0xad8   :  { %5940 = vmatpush1.bf16.msra.mxu0 %v12329_v58 }
 0xad9   :  { %10192 = vmatprep.subr.bf16.mxu0 %v11127_v47 }
 0xadb   :  { %9041 = vmatmul.mubr.msk.bf16.vlgmr.msra.gmra.mrb[8].mxu0 %vm150_vm0, %v11108_v51  ;;  %v11153_v51 = vld [vmem:[#allocation2 + $0xbe8] sm:$0xff]  }
 0xadc   :  { %5975 = vmatprep.mubr.bf16.mxu0 %v11369_v0  ;;  %10193 = vmatpush3.bf16.msra.mxu0 %v11129_v41  ;;  %v11156_v41 = vld [vmem:[#allocation2 + $0xc30] sm:$0xff]  }
 0xadd   :  { %10194 = vmatprep.subr.bf16.mxu0 %v11133_v56  ;;  %v11164_v56 = vld [vmem:[#allocation2 + $0xd00] sm:$0xff]  }
 0xae0   :  { %10195 = vmatpush3.bf16.msra.mxu0 %v11135_v4 }
 0xae1   :  { %10196 = vmatprep.subr.bf16.mxu0 %v11139_v46 }
 0xae3   :  { %9042 = vmatmul.mubr.msk.bf16.gmra.mrb[12].mxu0 %vm150_vm0, %v11109_v62 }
 0xae4   :  { %5985 = vmatprep.mubr.bf16.mxu0 %v11369_v0  ;;  %10197 = vmatpush3.bf16.msra.mxu0 %v11141_v6 }
 0xae5   :  { %10198 = vmatprep.subr.bf16.mxu0 %v11145_v60 }
 0xae8   :  { %10199 = vmatpush3.bf16.msra.mxu0 %v11147_v16  ;;  %v11165_v16 = vld [vmem:[#allocation2 + $0xcc0] sm:$0xff]  }
 0xae9   :  { %10200 = vmatprep.subr.bf16.mxu0 %v11150_v50 }
 0xaeb   :  { %9043 = vmatmul.mubr.msk.bf16.gmra.mrb[16].mxu0 %vm150_vm0, %v11110_v34 }
 0xaec   :  { %5995 = vmatprep.mubr.bf16.mxu0 %v11369_v0  ;;  %10201 = vmatpush3.bf16.msra.mxu0 %v11151_v44  ;;  %v11167_v44 = vld [vmem:[#allocation2 + $0xd08] sm:$0xff]  }
 0xaed   :  { %10202 = vmatprep.subr.bf16.mxu0 %v11154_v53  ;;  %v11169_v53 = vld [vmem:[#allocation2 + $0xd48] sm:$0xff]  }
 0xaf0   :  { %10203 = vmatpush3.bf16.msra.mxu0 %v11155_v52  ;;  %v11168_v52 = vld [vmem:[#allocation2 + $0xcc8] sm:$0xff]  }
 0xaf1   :  { %10204 = vmatprep.subr.bf16.mxu0 %v11158_v26 }
 0xaf3   :  { %9044 = vmatmul.mubr.msk.bf16.gmra.mrb[20].mxu0 %vm150_vm0, %v11111_v19 }
 0xaf4   :  { %6005 = vmatprep.mubr.bf16.mxu0 %v11369_v0  ;;  %10205 = vmatpush3.bf16.msra.mxu0 %v11159_v31  ;;  %v11170_v31 = vld [vmem:[#allocation2 + $0xd10] sm:$0xff]  }
 0xaf5   :  { %10206 = vmatprep.subr.bf16.mxu0 %v11162_v22 }
 0xaf8   :  { %10207 = vmatpush3.bf16.msra.mxu0 %v11163_v49  ;;  %v11172_v49 = vld [vmem:[#allocation2 + $0xd50] sm:$0xff]  }
 0xaf9   :  { %10628 = vmatprep.subr.bf16.mxu0 %v12378_v18 }
 0xafb   :  { %9045 = vmatmul.mubr.msk.bf16.gmra.mrb[24].mxu0 %vm150_vm0, %v11112_v17  ;;  %v11157_v17 = vld [vmem:[#allocation2 + $0xbf0] sm:$0xff]  }
 0xafc   :  { %6015 = vmatprep.mubr.bf16.mxu0 %v11369_v0 }
 0xb03   :  { %9046 = vmatmul.mubr.msk.bf16.gmra.mrb[28].mxu0 %vm150_vm0, %v11113_v57 }
 0xb04   :  { %6025 = vmatprep.mubr.bf16.mxu0 %v11369_v0 }
 0xb0b   :  { %9047 = vmatmul.mubr.msk.bf16.gmra.mrb[32].mxu0 %vm150_vm0, %v11114_v21 }
 0xb0c   :  { %6035 = vmatprep.mubr.bf16.mxu0 %v11369_v0 }
 0xb13   :  { %9048 = vmatmul.mubr.msk.bf16.gmra.mrb[36].mxu0 %vm150_vm0, %v11115_v30  ;;  %v11160_v30 = vld [vmem:[#allocation2 + $0xc38] sm:$0xff]  }
 0xbae   :  { %v5967_v10 = vpop.f32.mrb[8].mxu0 }
 0xbaf   :  { %v5969_v8 = vpop.f32.mrb[9].mxu0 }
 0xbb0   :  { %v5971_v63 = vpop.f32.mrb[10].mxu0 }
 0xbb1   :  { %v12381_v3 = vpack.c.bf16 %v5971_v63, %v5967_v10  ;;  %v5973_v23 = vpop.f32.mrb[11].mxu0 }
 0xbb2   :  { %v6047_v9 = vpack.c.bf16 %v5973_v23, %v5969_v8 }
 0xbb3   :  { %6680 = vmatmul.mubr.bf16.vlgmr.msra.gmra.mrb[0].mxu1 %v12381_v3 }
 0xbb4   :  { %6687 = vmatprep.mubr.bf16.mxu1 %v12309_v55  ;;  %10153 = vmatpush3.bf16.msra.mxu1 %v11137_v25  ;;  %v11171_v25 = vld [vmem:[#allocation2 + $0xcd0] sm:$0xff]  }
 0xbb5   :  { %10154 = vmatprep.subr.bf16.mxu1 %v11138_v33  ;;  %v11173_v33 = vld [vmem:[#allocation2 + $0xd18] sm:$0xff]  }
 0xbb6   :  { %v5977_v28 = vpop.f32.mrb[12].mxu0 }
 0xbb7   :  { %v5979_v35 = vpop.f32.mrb[13].mxu0 }
 0xbb8   :  { %v5981_v13 = vpop.f32.mrb[14].mxu0  ;;  %10155 = vmatpush3.bf16.msra.mxu1 %v11140_v32  ;;  %v11176_v32 = vld [vmem:[#allocation2 + $0xd20] sm:$0xff]  }
 0xbb9   :  { %v12385_v38 = vpack.c.bf16 %v5981_v13, %v5977_v28  ;;  %v5983_v61 = vpop.f32.mrb[15].mxu0  ;;  %10156 = vmatprep.subr.bf16.mxu1 %v11142_v7  ;;  %v11178_v28 = vld [vmem:[#allocation2 + $0xd60] sm:$0xff]  }
 0xbba   :  { %v6049_v40 = vpack.c.bf16 %v5983_v61, %v5979_v35  ;;  %v11177_v61 = vld [vmem:[#allocation2 + $0xce0] sm:$0xff]  }
 0xbbb   :  { %6688 = vmatmul.mubr.bf16.gmra.mrb[4].mxu1 %v12385_v38 }
 0xbbc   :  { %6695 = vmatprep.mubr.bf16.mxu1 %v12319_v42  ;;  %10157 = vmatpush3.bf16.msra.mxu1 %v11143_v14 }
 0xbbd   :  { %10158 = vmatprep.subr.bf16.mxu1 %v11144_v54 }
 0xbbe   :  { %v5987_v43 = vpop.f32.mrb[16].mxu0 }
 0xbbf   :  { %v12389_v24 = vpop.f32.mrb[17].mxu0 }
 0xbc0   :  { %v5991_v1 = vpop.f32.mrb[18].mxu0  ;;  %10159 = vmatpush3.bf16.msra.mxu1 %v11146_v20  ;;  %v11180_v20 = vld [vmem:[#allocation2 + $0xce8] sm:$0xff]  }
 0xbc1   :  { %v12391_v11 = vpack.c.bf16 %v5991_v1, %v5987_v43  ;;  %v5993_v48 = vpop.f32.mrb[19].mxu0  ;;  %10160 = vmatprep.subr.bf16.mxu1 %v11148_v39  ;;  %v11182_v43 = vld [vmem:[#allocation2 + $0xd30] sm:$0xff]  }
 0xbc2   :  { %v6051_v47 = vpack.c.bf16 %v5993_v48, %v12389_v24  ;;  %v11184_v1 = vld [vmem:[#allocation2 + $0xd70] sm:$0xff]  }
 0xbc3   :  { %6696 = vmatmul.mubr.bf16.gmra.mrb[8].mxu1 %v12391_v11 }
 0xbc4   :  { %6703 = vmatprep.mubr.bf16.mxu1 %v12329_v58  ;;  %10161 = vmatpush3.bf16.msra.mxu1 %v11149_v2 }
 0xbc5   :  { %10162 = vmatprep.subr.bf16.mxu1 %v11152_v37 }
 0xbc6   :  { %v5997_v62 = vpop.f32.mrb[20].mxu0 }
 0xbc7   :  { %v12396_v34 = vpop.f32.mrb[21].mxu0 }
 0xbc8   :  { %v6001_v19 = vpop.f32.mrb[22].mxu0  ;;  %10163 = vmatpush3.bf16.msra.mxu1 %v11153_v51 }
 0xbc9   :  { %v12398_v57 = vpack.c.bf16 %v6001_v19, %v5997_v62  ;;  %v12400_v21 = vpop.f32.mrb[23].mxu0  ;;  %10164 = vmatprep.subr.bf16.mxu1 %v11156_v41  ;;  %v11185_v41 = vld [vmem:[#allocation2 + $0xd38] sm:$0xff]  }
 0xbca   :  { %v6053_v45 = vpack.c.bf16 %v12400_v21, %v12396_v34  ;;  %v11186_v62 = vld [vmem:[#allocation2 + $0xcf8] sm:$0xff]  }
 0xbcb   :  { %6704 = vmatmul.mubr.bf16.gmra.mrb[12].mxu1 %v12398_v57 }
 0xbcc   :  { %10165 = vmatpush3.bf16.msra.mxu1 %v11157_v17  ;;  %6744 = vmatprep.mubr.bf16.mxu1 %v6047_v9 }
 0xbcd   :  { %10166 = vmatprep.subr.bf16.mxu1 %v11160_v30 }
 0xbce   :  { %v6007_v4 = vpop.f32.mrb[24].mxu0 }
 0xbcf   :  { %v6009_v5 = vpop.f32.mrb[25].mxu0 }
 0xbd0   :  { %v6011_v46 = vpop.f32.mrb[26].mxu0  ;;  %10167 = vmatpush3.bf16.msra.mxu1 %v11161_v15 }
 0xbd1   :  { %v12405_v6 = vpack.c.bf16 %v6011_v46, %v6007_v4  ;;  %v6013_v60 = vpop.f32.mrb[27].mxu0  ;;  %10232 = vmatprep.subr.bf16.mxu1 %v11164_v56 }
 0xbd2   :  { %v6055_v50 = vpack.c.bf16 %v6013_v60, %v6009_v5 }
 0xbd3   :  { %6745 = vmatmul.mubr.bf16.vlgmr.msra.gmra.mrb[16].mxu1 %v12405_v6 }
 0xbd4   :  { %6752 = vmatprep.mubr.bf16.mxu1 %v6049_v40  ;;  %6809 = vmatprep.mubr.bf16.mxu0 %v6055_v50  ;;  %v11179_v40 = vld [vmem:[#allocation2 + $0xd28] sm:$0xff]  }
 0xbd5   :  { %10233 = vmatpush3.bf16.msra.mxu1 %v11165_v16  ;;  %6810 = vmatmul.mubr.bf16.vlgmr.msra.gmra.mrb[40].mxu0 %v12307_v36  ;;  %v11175_v36 = vld [vmem:[#allocation2 + $0xd58] sm:$0xff]  }
 0xbd6   :  { %v6017_v26 = vpop.f32.mrb[28].mxu0  ;;  %10629 = vmatpush3.bf16.msra.mxu0 %v12378_v18  ;;  %10234 = vmatprep.subr.bf16.mxu1 %v11167_v44  ;;  %v11174_v18 = vld [vmem:[#allocation2 + $0xcd8] sm:$0xff]   ;;  %v12436_v44 = vld [vmem:[#allocation6 + $0x5] ss:$0 sm:$0xff] }
 0xbd7   :  { %v6019_v22 = vpop.f32.mrb[29].mxu0  ;;  %10630 = vmatprep.subr.bf16.mxu0 %v11169_v53 }
 0xbd8   :  { %v6021_v10 = vpop.f32.mrb[30].mxu0 }
 0xbd9   :  { %v12410_v8 = vpack.c.bf16 %v6021_v10, %v6017_v26  ;;  %10235 = vmatpush3.bf16.msra.mxu1 %v11168_v52  ;;  %v6023_v63 = vpop.f32.mrb[31].mxu0 }
 0xbda   :  { %v6057_v23 = vpack.c.bf16 %v6023_v63, %v6019_v22  ;;  %10631 = vmatpush3.bf16.msra.mxu0 %v11169_v53  ;;  %10236 = vmatprep.subr.bf16.mxu1 %v11170_v31 }
 0xbdb   :  { %6753 = vmatmul.mubr.bf16.gmra.mrb[20].mxu1 %v12410_v8  ;;  %10632 = vmatprep.subr.bf16.mxu0 %v11172_v49 }
 0xbdc   :  { %6760 = vmatprep.mubr.bf16.mxu1 %v6051_v47  ;;  %6817 = vmatprep.mubr.bf16.mxu0 %v6057_v23  ;;  %v11183_v47 = vld [vmem:[#allocation2 + $0xcf0] sm:$0xff]  }
 0xbdd   :  { %10237 = vmatpush3.bf16.msra.mxu1 %v11171_v25  ;;  %6818 = vmatmul.mubr.bf16.gmra.mrb[44].mxu0 %v12317_v27  ;;  %v11181_v27 = vld [vmem:[#allocation2 + $0xd68] sm:$0xff]  }
 0xbde   :  { %v6027_v9 = vpop.f32.mrb[32].mxu0  ;;  %10633 = vmatpush3.bf16.msra.mxu0 %v11172_v49  ;;  %10238 = vmatprep.subr.bf16.mxu1 %v11173_v33 }
 0xbdf   :  { %v6029_v7 = vpop.f32.mrb[33].mxu0  ;;  %10634 = vmatprep.subr.bf16.mxu0 %v11175_v36 }
 0xbe0   :  { %v6031_v35 = vpop.f32.mrb[34].mxu0 }
 0xbe1   :  { %v6058_v13 = vpack.c.bf16 %v6031_v35, %v6027_v9  ;;  %10239 = vmatpush3.bf16.msra.mxu1 %v11174_v18  ;;  %v6033_v14 = vpop.f32.mrb[35].mxu0 }
 0xbe2   :  { %v6059_v54 = vpack.c.bf16 %v6033_v14, %v6029_v7  ;;  %10635 = vmatpush3.bf16.msra.mxu0 %v11175_v36  ;;  %10240 = vmatprep.subr.bf16.mxu1 %v11176_v32  ;;  %v11196_v14 = vld [vmem:[#allocation2 + $0xdc0] sm:$0xff]  }
 0xbe3   :  { %6761 = vmatmul.mubr.bf16.gmra.mrb[24].mxu1 %v6058_v13  ;;  %10636 = vmatprep.subr.bf16.mxu0 %v11178_v28 }
 0xbe4   :  { %6768 = vmatprep.mubr.bf16.mxu1 %v6053_v45  ;;  %6825 = vmatprep.mubr.bf16.mxu0 %v6059_v54  ;;  %v11198_v54 = vld [vmem:[#allocation2 + $0xdc8] sm:$0xff]  }
 0xbe5   :  { %10241 = vmatpush3.bf16.msra.mxu1 %v11177_v61  ;;  %6826 = vmatmul.mubr.bf16.gmra.mrb[48].mxu0 %v12327_v12  ;;  %v11187_v12 = vld [vmem:[#allocation2 + $0xd78] sm:$0xff]   ;;  %v11197_v61 = vld [vmem:[#allocation2 + $0xd80] sm:$0xff]  }
 0xbe6   :  { %v6037_v39 = vpop.f32.mrb[36].mxu0  ;;  %10637 = vmatpush3.bf16.msra.mxu0 %v11178_v28  ;;  %10242 = vmatprep.subr.bf16.mxu1 %v11179_v40 }
 0xbe7   :  { %v6039_v24 = vpop.f32.mrb[37].mxu0  ;;  %10638 = vmatprep.subr.bf16.mxu0 %v11181_v27 }
 0xbe8   :  { %v6041_v2 = vpop.f32.mrb[38].mxu0 }
 0xbe9   :  { %v6060_v48 = vpack.c.bf16 %v6041_v2, %v6037_v39  ;;  %10243 = vmatpush3.bf16.msra.mxu1 %v11180_v20  ;;  %v6043_v37 = vpop.f32.mrb[39].mxu0 }
 0xbea   :  { %v6061_v51 = vpack.c.bf16 %v6043_v37, %v6039_v24  ;;  %10639 = vmatpush3.bf16.msra.mxu0 %v11181_v27  ;;  %10244 = vmatprep.subr.bf16.mxu1 %v11182_v43 }
 0xbeb   :  { %6769 = vmatmul.mubr.bf16.gmra.mrb[28].mxu1 %v6060_v48  ;;  %10640 = vmatprep.subr.bf16.mxu0 %v11184_v1 }
 0xbec   :  { %6833 = vmatprep.mubr.bf16.mxu0 %v6061_v51  ;;  %6874 = vmatprep.mubr.bf16.mxu1 %v12300_v59  ;;  %v11199_v51 = vld [vmem:[#allocation2 + $0xd88] sm:$0xff]  }
 0xbed   :  { %10245 = vmatpush3.bf16.msra.mxu1 %v11183_v47  ;;  %6834 = vmatmul.mubr.bf16.gmra.mrb[52].mxu0 %v12335_v29 }
 0xbee   :  { %10641 = vmatpush3.bf16.msra.mxu0 %v11184_v1  ;;  %10644 = vmatprep.mubr.bf16.mxu0 %v12405_v6 }
 0xbef   :  { %10246 = vmatprep.subr.bf16.mxu1 %v11185_v41  ;;  %10642 = vmatprep.subr.bf16.mxu0 %v11187_v12 }
 0xbf1   :  { %10247 = vmatpush3.bf16.msra.mxu1 %v11186_v62 }
 0xbf2   :  { %10643 = vmatpush3.bf16.msra.mxu0 %v11187_v12  ;;  %v11200_v12 = vld [vmem:[#allocation2 + $0xdd0] sm:$0xff]  }
 0xbf3   :  { %10284 = vmatprep.subr.bf16.mxu0 %v11196_v14  ;;  %v11211_v14 = vld [vmem:[#allocation2 + $0xda8] sm:$0xff]  }
 0xbf4   :  { %6875 = vmatmul.mubr.bf16.vlgmr.msra.gmra.mrb[32].mxu1 %v12381_v3 }
 0xbf5   :  { %6882 = vmatprep.mubr.bf16.mxu1 %v12309_v55  ;;  %10645 = vmatmul.mubr.bf16.vlgmr.msra.gmra.mrb[56].mxu0 %v12410_v8 }
 0xbf6   :  { %10648 = vmatprep.mubr.bf16.mxu0 %v6058_v13  ;;  %10285 = vmatpush3.bf16.msra.mxu0 %v11197_v61 }
 0xbf7   :  { %10286 = vmatprep.subr.bf16.mxu0 %v11198_v54  ;;  %v11212_v54 = vld [vmem:[#allocation2 + $0xdf0] sm:$0xff]  }
 0xbfa   :  { %10287 = vmatpush3.bf16.msra.mxu0 %v11199_v51 }
 0xbfb   :  { %10288 = vmatprep.subr.bf16.mxu0 %v11200_v12 }
 0xbfc   :  { %6883 = vmatmul.mubr.bf16.gmra.mrb[36].mxu1 %v12385_v38 }
 0xbfd   :  { %6890 = vmatprep.mubr.bf16.mxu1 %v12319_v42  ;;  %10649 = vmatmul.mubr.bf16.gmra.mrb[60].mxu0 %v6060_v48 }
 0xc04   :  { %6891 = vmatmul.mubr.bf16.gmra.mrb[40].mxu1 %v12391_v11 }
 0xc05   :  { %6898 = vmatprep.mubr.bf16.mxu1 %v12329_v58 }
 0xc0c   :  { %6899 = vmatmul.mubr.bf16.gmra.mrb[44].mxu1 %v12398_v57 }
 0xc0d   :  { %7117 = vmatprep.mubr.bf16.mxu1 %v11369_v0 }
 0xc86   :  { %v10128_v59 = vpop.f32.mrb[0].mxu1 }
 0xc87   :  { %v10129_v29 = vpop.f32.mrb[1].mxu1 }
 0xc88   :  { %v10130_v3 = vadd.f32 %v10129_v29, %v10128_v59  ;;  %v10131_v55 = vpop.f32.mrb[2].mxu1 }
 0xc89   :  { %v10132_v34 = vpop.f32.mrb[3].mxu1 }
 0xc8a   :  { %v10133_v19 = vadd.f32 %v10132_v34, %v10131_v55  ;;  %v6682_v26 = vadd.f32 %v10130_v3, %v12436_v44  ;;  %v11202_v34 = vld [vmem:[#allocation2 + $0xd90] sm:$0xff]  }
 0xc8b   :  { %10289 = vmatpush3.bf16.msra.mxu0 %v11202_v34 }
 0xc8c   :  { %v6685_v63 = vadd.f32 %v10133_v19, %v12436_v44 }
 0xc8e   :  { %v10134_v17 = vpop.f32.mrb[4].mxu1 }
 0xc8f   :  { %v10135_v21 = vpop.f32.mrb[5].mxu1 }
 0xc90   :  { %v10136_v38 = vadd.f32 %v10135_v21, %v10134_v17  ;;  %v10137_v30 = vpop.f32.mrb[6].mxu1  ;;  %v11204_v17 = vld [vmem:[#allocation2 + $0xdd8] sm:$0xff]  }
 0xc91   :  { %v10138_v42 = vpop.f32.mrb[7].mxu1  ;;  %10290 = vmatprep.subr.bf16.mxu0 %v11204_v17 }
 0xc92   :  { %v10139_v45 = vadd.f32 %v10138_v42, %v10137_v30  ;;  %v6690_v40 = vadd.f32 %v10136_v38, %v12436_v44 }
 0xc94   :  { %v6693_v1 = vadd.f32 %v10139_v45, %v12436_v44 }
 0xc96   :  { %v10140_v15 = vpop.f32.mrb[8].mxu1 }
 0xc97   :  { %v10141_v11 = vpop.f32.mrb[9].mxu1 }
 0xc98   :  { %v10142_v56 = vadd.f32 %v10141_v11, %v10140_v15  ;;  %v10143_v58 = vpop.f32.mrb[10].mxu1 }
 0xc99   :  { %v10144_v4 = vpop.f32.mrb[11].mxu1 }
 0xc9a   :  { %v12430_v57 = vadd.f32 %v10144_v4, %v10143_v58  ;;  %v6698_v21 = vadd.f32 %v10142_v56, %v12436_v44 }
 0xc9c   :  { %v6701_v11 = vadd.f32 %v12430_v57, %v12436_v44  ;;  %v11210_v57 = vld [vmem:[#allocation2 + $0xde8] sm:$0xff]  }
 0xc9e   :  { %v10146_v5 = vpop.f32.mrb[12].mxu1 }
 0xc9f   :  { %v10147_v46 = vpop.f32.mrb[13].mxu1 }
 0xca0   :  { %v12432_v6 = vadd.f32 %v10147_v46, %v10146_v5  ;;  %v10149_v60 = vpop.f32.mrb[14].mxu1 }
 0xca1   :  { %v10150_v16 = vpop.f32.mrb[15].mxu1 }
 0xca2   :  { %v12434_v50 = vadd.f32 %v10150_v16, %v10149_v60  ;;  %v11205_v60 = vld [vmem:[#allocation2 + $0xd98] sm:$0xff]  }
 0xca3   :  { %10291 = vmatpush3.bf16.msra.mxu0 %v11205_v60 }
 0xca6   :  { %v10168_v53 = vpop.f32.mrb[16].mxu1 }
 0xca7   :  { %v10169_v52 = vpop.f32.mrb[17].mxu1 }
 0xca8   :  { %v10170_v31 = vadd.f32 %v10169_v52, %v10168_v53  ;;  %v10171_v22 = vpop.f32.mrb[18].mxu1  ;;  %v10208_v49 = vpop.f32.mrb[40].mxu0  ;;  %v11206_v53 = vld [vmem:[#allocation2 + $0xde0] sm:$0xff]  }
 0xca9   :  { %v10172_v10 = vpop.f32.mrb[19].mxu1  ;;  %v10209_v8 = vpop.f32.mrb[41].mxu0  ;;  %10292 = vmatprep.subr.bf16.mxu0 %v11206_v53 }
 0xcaa   :  { %v6747_v25 = vadd.f32 %v10170_v31, %v6682_v26  ;;  %v10173_v23 = vadd.f32 %v10172_v10, %v10171_v22  ;;  %v10210_v33 = vadd.f32 %v10209_v8, %v10208_v49  ;;  %v10211_v36 = vpop.f32.mrb[42].mxu0  ;;  %v11208_v49 = vld [vmem:[#allocation2 + $0xda0] sm:$0xff]   ;;  %v6706_v8 = vadd.f32 %v12432_v6, %v12436_v44 }
 0xcab   :  { %v10212_v18 = vpop.f32.mrb[43].mxu0  ;;  %10293 = vmatpush3.bf16.msra.mxu0 %v11208_v49 }
 0xcac   :  { %v6750_v9 = vadd.f32 %v10173_v23, %v6685_v63  ;;  %v12440_v32 = vadd.f32 %v10210_v33, %v6747_v25  ;;  %v10213_v7 = vadd.f32 %v10212_v18, %v10211_v36  ;;  %v6709_v18 = vadd.f32 %v12434_v50, %v12436_v44  ;;  %10294 = vmatprep.subr.bf16.mxu0 %v11210_v57 }
 0xcae   :  { %v12442_v28 = vadd.f32 %v10213_v7, %v6750_v9  ;;  %v10174_v35 = vpop.f32.mrb[20].mxu1 }
 0xcaf   :  { %v10175_v13 = vpop.f32.mrb[21].mxu1  ;;  %10295 = vmatpush3.bf16.msra.mxu0 %v11211_v14 }
 0xcb0   :  { %v10176_v27 = vadd.f32 %v10175_v13, %v10174_v35  ;;  %v10177_v20 = vpop.f32.mrb[22].mxu1  ;;  %v10214_v39 = vpop.f32.mrb[44].mxu0  ;;  %10296 = vmatprep.subr.bf16.mxu0 %v11212_v54 }
 0xcb1   :  { %v10178_v43 = vpop.f32.mrb[23].mxu1  ;;  %v10215_v24 = vpop.f32.mrb[45].mxu0 }
 0xcb2   :  { %v6755_v2 = vadd.f32 %v10176_v27, %v6690_v40  ;;  %v10179_v48 = vadd.f32 %v10178_v43, %v10177_v20  ;;  %v10216_v37 = vadd.f32 %v10215_v24, %v10214_v39  ;;  %v10217_v47 = vpop.f32.mrb[46].mxu0  ;;  %v11214_v39 = vld [vmem:[#allocation2 + $0xdb0] sm:$0xff]  }
 0xcb3   :  { %v10218_v41 = vpop.f32.mrb[47].mxu0  ;;  %10297 = vmatpush3.bf16.msra.mxu0 %v11214_v39 }
 0xcb4   :  { %v6758_v62 = vadd.f32 %v10179_v48, %v6693_v1  ;;  %v12446_v59 = vadd.f32 %v10216_v37, %v6755_v2  ;;  %v10219_v29 = vadd.f32 %v10218_v41, %v10217_v47 }
 0xcb6   :  { %v12448_v3 = vadd.f32 %v10219_v29, %v6758_v62  ;;  %v10180_v55 = vpop.f32.mrb[24].mxu1 }
 0xcb7   :  { %v10181_v19 = vpop.f32.mrb[25].mxu1 }
 0xcb8   :  { %v10182_v38 = vadd.f32 %v10181_v19, %v10180_v55  ;;  %v10183_v30 = vpop.f32.mrb[26].mxu1  ;;  %v10220_v42 = vpop.f32.mrb[48].mxu0 }
 0xcb9   :  { %v10184_v45 = vpop.f32.mrb[27].mxu1  ;;  %v10221_v15 = vpop.f32.mrb[49].mxu0 }
 0xcba   :  { %v6763_v58 = vadd.f32 %v10182_v38, %v6698_v21  ;;  %v10185_v4 = vadd.f32 %v10184_v45, %v10183_v30  ;;  %v10222_v5 = vadd.f32 %v10221_v15, %v10220_v42  ;;  %v10223_v46 = vpop.f32.mrb[50].mxu0 }
 0xcbb   :  { %v10224_v16 = vpop.f32.mrb[51].mxu0 }
 0xcbc   :  { %v6766_v52 = vadd.f32 %v10185_v4, %v6701_v11  ;;  %v12453_v26 = vadd.f32 %v10222_v5, %v6763_v58  ;;  %v10225_v56 = vadd.f32 %v10224_v16, %v10223_v46 }
 0xcbe   :  { %v12455_v31 = vadd.f32 %v10225_v56, %v6766_v52  ;;  %v10186_v22 = vpop.f32.mrb[28].mxu1 }
 0xcbf   :  { %v10187_v10 = vpop.f32.mrb[29].mxu1 }
 0xcc0   :  { %v10188_v63 = vadd.f32 %v10187_v10, %v10186_v22  ;;  %v10189_v25 = vpop.f32.mrb[30].mxu1  ;;  %v10226_v23 = vpop.f32.mrb[52].mxu0 }
 0xcc1   :  { %v10190_v33 = vpop.f32.mrb[31].mxu1  ;;  %v10227_v36 = vpop.f32.mrb[53].mxu0 }
 0xcc2   :  { %v6771_v9 = vadd.f32 %v10188_v63, %v6706_v8  ;;  %v10191_v7 = vadd.f32 %v10190_v33, %v10189_v25  ;;  %v10228_v35 = vadd.f32 %v10227_v36, %v10226_v23  ;;  %v10229_v13 = vpop.f32.mrb[54].mxu0 }
 0xcc3   :  { %v10230_v61 = vpop.f32.mrb[55].mxu0 }
 0xcc4   :  { %v6774_v40 = vadd.f32 %v10191_v7, %v6709_v18  ;;  %v12461_v27 = vadd.f32 %v10228_v35, %v6771_v9  ;;  %v10231_v6 = vadd.f32 %v10230_v61, %v10229_v13 }
 0xcc6   :  { %v12463_v20 = vadd.f32 %v10231_v6, %v6774_v40 }
 0xcc7   :  { %v10248_v43 = vpop.f32.mrb[32].mxu1 }
 0xcc8   :  { %v10249_v50 = vpop.f32.mrb[33].mxu1  ;;  %v10646_v44 = vpop.f32.mrb[56].mxu0 }
 0xcc9   :  { %v10250_v24 = vadd.f32 %v10249_v50, %v10248_v43  ;;  %v10251_v1 = vpop.f32.mrb[34].mxu1  ;;  %v6941_v2 = vpop.f32.mrb[57].mxu0 }
 0xcca   :  { %v10252_v48 = vpop.f32.mrb[35].mxu1  ;;  %v10647_v37 = vpop.f32.mrb[58].mxu0 }
 0xccb   :  { %v10253_v47 = vadd.f32 %v10252_v48, %v10251_v1  ;;  %v6877_v51 = vadd.f32 %v10250_v24, %v12440_v32  ;;  %v6944_v41 = vpop.f32.mrb[59].mxu0 }
 0xccd   :  { %v6942_v12 = vadd.f32 %v6941_v2, %v6877_v51  ;;  %v6880_v62 = vadd.f32 %v10253_v47, %v12442_v28 }
 0xccf   :  { %v6945_v29 = vadd.f32 %v6944_v41, %v6880_v62  ;;  %v10254_v55 = vpop.f32.mrb[36].mxu1  ;;  %v6972_v17 = vmax.f32 %v6942_v12, 0.0 }
 0xcd0   :  { %v10255_v34 = vpop.f32.mrb[37].mxu1  ;;  %v10650_v19 = vpop.f32.mrb[60].mxu0 }
 0xcd1   :  { %v6973_v21 = vmax.f32 %v6945_v29, 0.0  ;;  %v10256_v38 = vadd.f32 %v10255_v34, %v10254_v55  ;;  %v10257_v30 = vpop.f32.mrb[38].mxu1  ;;  %v6957_v42 = vpop.f32.mrb[61].mxu0 }
 0xcd2   :  { %v10258_v45 = vpop.f32.mrb[39].mxu1  ;;  %v10651_v15 = vpop.f32.mrb[62].mxu0 }
 0xcd3   :  { %v12467_v11 = vpack.c.bf16 %v6973_v21, %v6972_v17  ;;  %v6885_v58 = vadd.f32 %v10256_v38, %v12446_v59  ;;  %v10259_v32 = vadd.f32 %v10258_v45, %v10257_v30  ;;  %v6960_v4 = vpop.f32.mrb[63].mxu0  ;;  %v11203_v38 = vld [vmem:[#allocation2 + $0xe80] sm:$0xff]   ;;  %v11207_v30 = vld [vmem:[#allocation2 + $0xec8] sm:$0xff]   ;;  %v11213_v45 = vld [vmem:[#allocation2 + $0xed0] sm:$0xff]  }
 0xcd5   :  { %v6985_v5 = vunpack.c.h.bf16 %v12467_v11  ;;  %v6950_v28 = vadd.f32 %v10646_v44, %v6885_v58  ;;  %v6888_v46 = vadd.f32 %v10259_v32, %v12448_v3  ;;  %7831 = vmatprep.mubr.bf16.mxu0 %v12467_v11  ;;  %v6984_v60 = vunpack.c.l.bf16 %v12467_v11  ;;  %v11215_v58 = vld [vmem:[#allocation2 + $0xe90] sm:$0xff]  }
 0xcd6   :  { %v11190_v32 = vld [vmem:[%s12658_s1 + $0x190] sm:$0xff]  }
 0xcd7   :  { %v6993_v16 = vsub.f32 %v6973_v21, %v6985_v5  ;;  %v6953_v53 = vadd.f32 %v10647_v37, %v6888_v46  ;;  %v10260_v52 = vpop.f32.mrb[40].mxu1  ;;  %v6992_v56 = vsub.f32 %v6972_v17, %v6984_v60  ;;  %v6974_v49 = vmax.f32 %v6950_v28, 0.0  ;;  %v11201_v17 = vld [vmem:[#allocation2 + $0xec0] sm:$0xff]   ;;  %v11193_v28 = vld [vmem:[%s12658_s1 + $0x1a8] sm:$0xff]   ;;  %v11194_v46 = vld [vmem:[%s12658_s1 + $0x1b0] sm:$0xff]  }
 0xcd8   :  { %v10261_v22 = vpop.f32.mrb[41].mxu1  ;;  %v11188_v21 = vld [vmem:[%s12658_s1 + $0x180] sm:$0xff]   ;;  %v11195_v60 = vld [vmem:[%s12658_s1 + $0x1b8] sm:$0xff]  }
 0xcd9   :  { %v6975_v10 = vmax.f32 %v6953_v53, 0.0  ;;  %v10262_v57 = vadd.f32 %v10261_v22, %v10260_v52  ;;  %v10263_v59 = vpop.f32.mrb[42].mxu1  ;;  %v12474_v8 = vpack.c.bf16 %v6993_v16, %v6992_v56  ;;  %v11192_v5 = vld [vmem:[%s12658_s1 + $0x1a0] sm:$0xff]   ;;  %v11216_v16 = vld [vmem:[#allocation2 + $0xdf8] sm:$0xff]  }
 0xcda   :  { %v10264_v63 = vpop.f32.mrb[43].mxu1  ;;  %v11217_v53 = vld [vmem:[#allocation2 + $0xdb8] sm:$0xff]   ;;  %10298 = vmatprep.subr.bf16.mxu0 %v11216_v16  ;;  %v11218_v52 = vld [vmem:[#allocation2 + $0xe40] sm:$0xff]  }
 0xcdb   :  { %v12476_v25 = vpack.c.bf16 %v6975_v10, %v6974_v49  ;;  %v6893_v3 = vadd.f32 %v10262_v57, %v12453_v26  ;;  %v10265_v23 = vadd.f32 %v10264_v63, %v10263_v59  ;;  %7085 = vmatprep.subr.bf16.mxu1 %v12474_v8  ;;  %10299 = vmatpush3.bf16.msra.mxu0 %v11217_v53  ;;  %v11219_v56 = vld [vmem:[#allocation2 + $0xed8] sm:$0xff]   ;;  %v11233_v57 = vld [vmem:[#allocation2 + $0xea8] sm:$0xff]   ;;  %v11237_v59 = vld [vmem:[#allocation2 + $0xef0] sm:$0xff]  }
 0xcdc   :  { %7086 = vmatpush1.bf16.msra.mxu1 %v12467_v11  ;;  %10324 = vmatprep.subr.bf16.mxu0 %v11218_v52  ;;  %v11221_v22 = vld [vmem:[#allocation2 + $0xe98] sm:$0xff]   ;;  %v11239_v63 = vld [vmem:[#allocation2 + $0xeb0] sm:$0xff]  }
 0xcdd   :  { %v6958_v33 = vadd.f32 %v6957_v42, %v6893_v3  ;;  %v6896_v36 = vadd.f32 %v10265_v23, %v12455_v31  ;;  %v6986_v18 = vunpack.c.l.bf16 %v12476_v25  ;;  %v6987_v9 = vunpack.c.h.bf16 %v12476_v25  ;;  %v11209_v42 = vld [vmem:[#allocation2 + $0xe88] sm:$0xff]   ;;  %v11242_v3 = vld [vmem:[#allocation2 + $0xef8] sm:$0xff]  }
 0xcde   :  { %v11243_v23 = vld [vmem:[#allocation2 + $0xeb8] sm:$0xff]  }
 0xcdf   :  { %v6961_v7 = vadd.f32 %v6960_v4, %v6896_v36  ;;  %v10266_v35 = vpop.f32.mrb[44].mxu1  ;;  %v6994_v13 = vsub.f32 %v6974_v49, %v6986_v18  ;;  %v6995_v14 = vsub.f32 %v6975_v10, %v6987_v9  ;;  %v6976_v54 = vmax.f32 %v6958_v33, 0.0  ;;  %v11191_v4 = vld [vmem:[%s12658_s1 + $0x198] sm:$0xff]   ;;  %v11225_v49 = vld [vmem:[#allocation2 + $0xee0] sm:$0xff]  }
 0xce0   :  { %v10267_v61 = vpop.f32.mrb[45].mxu1  ;;  %v11227_v10 = vld [vmem:[#allocation2 + $0xea0] sm:$0xff]  }
 0xce1   :  { %v6977_v40 = vmax.f32 %v6961_v7, 0.0  ;;  %v10268_v26 = vadd.f32 %v10267_v61, %v10266_v35  ;;  %v10269_v6 = vpop.f32.mrb[46].mxu1  ;;  %v12484_v39 = vpack.c.bf16 %v6995_v14, %v6994_v13  ;;  %v12545_v33 = vld [vmem:[#allocation2 + $0xf80] sm:$0xff]   ;;  %v11222_v14 = vld [vmem:[#allocation2 + $0xe48] sm:$0xff]  }
 0xce2   :  { %v10270_v43 = vpop.f32.mrb[47].mxu1  ;;  %v11220_v7 = vld [vmem:[#allocation2 + $0xe00] sm:$0xff]  }
 0xce3   :  { %v12486_v50 = vpack.c.bf16 %v6977_v40, %v6976_v54  ;;  %v6901_v31 = vadd.f32 %v10268_v26, %v12461_v27  ;;  %v10271_v44 = vadd.f32 %v10270_v43, %v10269_v6  ;;  %7087 = vmatprep.subr.bf16.mxu1 %v12484_v39 }
 0xce4   :  { %7088 = vmatpush1.bf16.msra.mxu1 %v12476_v25 }
 0xce5   :  { %v6966_v24 = vadd.f32 %v10650_v19, %v6901_v31  ;;  %v6904_v1 = vadd.f32 %v10271_v44, %v12463_v20  ;;  %v6988_v2 = vunpack.c.l.bf16 %v12486_v50  ;;  %v6989_v48 = vunpack.c.h.bf16 %v12486_v50  ;;  %v11226_v31 = vld [vmem:[#allocation2 + $0xe10] sm:$0xff]  }
 0xce7   :  { %v6969_v37 = vadd.f32 %v10651_v15, %v6904_v1  ;;  %v6996_v47 = vsub.f32 %v6976_v54, %v6988_v2  ;;  %v6997_v51 = vsub.f32 %v6977_v40, %v6989_v48  ;;  %v6978_v41 = vmax.f32 %v6966_v24, 0.0  ;;  %v11189_v15 = vld [vmem:[%s12658_s1 + $0x188] sm:$0xff]   ;;  %v11224_v40 = vld [vmem:[#allocation2 + $0xe50] sm:$0xff]   ;;  %v11228_v1 = vld [vmem:[#allocation2 + $0xe58] sm:$0xff]  }
 0xce8   :  { %v11223_v54 = vld [vmem:[#allocation2 + $0xe08] sm:$0xff]   ;;  %v11229_v48 = vld [vmem:[#allocation2 + $0xe18] sm:$0xff]  }
 0xce9   :  { %v6979_v12 = vmax.f32 %v6969_v37, 0.0  ;;  %v12494_v62 = vpack.c.bf16 %v6997_v51, %v6996_v47  ;;  %v11230_v37 = vld [vmem:[#allocation2 + $0xe60] sm:$0xff]  }
 0xceb   :  { %v12496_v27 = vpack.c.bf16 %v6979_v12, %v6978_v41  ;;  %7089 = vmatprep.subr.bf16.mxu1 %v12494_v62 }
 0xcec   :  { %7090 = vmatpush1.bf16.msra.mxu1 %v12486_v50 }
 0xced   :  { %v6990_v29 = vunpack.c.l.bf16 %v12496_v27  ;;  %v6991_v20 = vunpack.c.h.bf16 %v12496_v27 }
 0xcef   :  { %v6998_v55 = vsub.f32 %v6978_v41, %v6990_v29  ;;  %v6999_v34 = vsub.f32 %v6979_v12, %v6991_v20  ;;  %v11232_v12 = vld [vmem:[#allocation2 + $0xe20] sm:$0xff]  }
 0xcf1   :  { %v12502_v19 = vpack.c.bf16 %v6999_v34, %v6998_v55  ;;  %v11234_v55 = vld [vmem:[#allocation2 + $0xe68] sm:$0xff]  }
 0xcf3   :  { %7091 = vmatprep.subr.bf16.mxu1 %v12502_v19 }
 0xcf4   :  { %7092 = vmatpush1.bf16.msra.mxu1 %v12496_v27 }
 0xcf5   :  { %10364 = vmatprep.subr.bf16.mxu1 %v11201_v17  ;;  %v11235_v17 = vld [vmem:[#allocation2 + $0xe28] sm:$0xff]  }
 0xcf7   :  { %9146 = vmatmul.mubr.msk.bf16.vlgmr.msra.gmra.mrb[48].mxu1 %vm150_vm0, %v11188_v21  ;;  %v11236_v21 = vld [vmem:[#allocation2 + $0xe70] sm:$0xff]  }
 0xcf8   :  { %7127 = vmatprep.mubr.bf16.mxu1 %v11369_v0  ;;  %10365 = vmatpush3.bf16.msra.mxu1 %v11203_v38 }
 0xcf9   :  { %10366 = vmatprep.subr.bf16.mxu1 %v11207_v30 }
 0xcfc   :  { %10367 = vmatpush3.bf16.msra.mxu1 %v11209_v42 }
 0xcfd   :  { %10368 = vmatprep.subr.bf16.mxu1 %v11213_v45  ;;  %v11238_v45 = vld [vmem:[#allocation2 + $0xe30] sm:$0xff]  }
 0xcff   :  { %9147 = vmatmul.mubr.msk.bf16.gmra.mrb[52].mxu1 %vm150_vm0, %v11189_v15 }
 0xd00   :  { %7137 = vmatprep.mubr.bf16.mxu1 %v11369_v0  ;;  %10369 = vmatpush3.bf16.msra.mxu1 %v11215_v58 }
 0xd01   :  { %10370 = vmatprep.subr.bf16.mxu1 %v11219_v56  ;;  %v11245_v56 = vld [vmem:[#allocation2 + $0xf00] sm:$0xff]  }
 0xd04   :  { %10371 = vmatpush3.bf16.msra.mxu1 %v11221_v22 }
 0xd05   :  { %10372 = vmatprep.subr.bf16.mxu1 %v11225_v49  ;;  %v11247_v49 = vld [vmem:[#allocation2 + $0xf48] sm:$0xff]  }
 0xd07   :  { %9148 = vmatmul.mubr.msk.bf16.gmra.mrb[56].mxu1 %vm150_vm0, %v11190_v32  ;;  %v11240_v32 = vld [vmem:[#allocation2 + $0xe78] sm:$0xff]  }
 0xd08   :  { %7147 = vmatprep.mubr.bf16.mxu1 %v11369_v0  ;;  %10373 = vmatpush3.bf16.msra.mxu1 %v11227_v10  ;;  %v11249_v10 = vld [vmem:[#allocation2 + $0xf88] sm:$0xff]  }
 0xd0f   :  { %9149 = vmatmul.mubr.msk.bf16.gmra.mrb[60].mxu1 %vm150_vm0, %v11191_v4 }
 0xd10   :  { %7157 = vmatprep.mubr.bf16.mxu1 %v11369_v0 }
 0xd17   :  { %9150 = vmatmul.mubr.msk.bf16.gmra.mrb[64].mxu1 %vm150_vm0, %v11192_v5  ;;  %v11241_v5 = vld [vmem:[#allocation2 + $0xe38] sm:$0xff]  }
 0xd18   :  { %7167 = vmatprep.mubr.bf16.mxu1 %v11369_v0 }
 0xd1f   :  { %9151 = vmatmul.mubr.msk.bf16.gmra.mrb[68].mxu1 %vm150_vm0, %v11193_v28  ;;  %v11244_v28 = vld [vmem:[#allocation2 + $0xf40] sm:$0xff]  }
 0xd20   :  { %7177 = vmatprep.mubr.bf16.mxu1 %v11369_v0 }
 0xd27   :  { %9152 = vmatmul.mubr.msk.bf16.gmra.mrb[72].mxu1 %vm150_vm0, %v11194_v46 }
 0xd28   :  { %7187 = vmatprep.mubr.bf16.mxu1 %v11369_v0  ;;  %v11231_v0 = vld [vmem:[#allocation2 + $0xee8] sm:$0xff]  }
 0xd29   :  { %10374 = vmatprep.subr.bf16.mxu1 %v11231_v0  ;;  %v11248_v0 = vld [vmem:[#allocation2 + $0xf08] sm:$0xff]  }
 0xd2a   :  { %10375 = vmatpush3.bf16.msra.mxu1 %v11233_v57 }
 0xd2b   :  { %10376 = vmatprep.subr.bf16.mxu1 %v11237_v59  ;;  %v11250_v59 = vld [vmem:[#allocation2 + $0xf50] sm:$0xff]  }
 0xd2e   :  { %10377 = vmatpush3.bf16.msra.mxu1 %v11239_v63 }
 0xd2f   :  { %9153 = vmatmul.mubr.msk.bf16.gmra.mrb[76].mxu1 %vm150_vm0, %v11195_v60  ;;  %10378 = vmatprep.subr.bf16.mxu1 %v11242_v3  ;;  %v11252_v3 = vld [vmem:[#allocation2 + $0xf90] sm:$0xff]  }
 0xd32   :  { %10379 = vmatpush3.bf16.msra.mxu1 %v11243_v23 }
 0xd33   :  { %10652 = vmatprep.subr.bf16.mxu1 %v12545_v33 }
 0xdca   :  { %v7119_v36 = vpop.f32.mrb[48].mxu1 }
 0xdcb   :  { %v7121_v18 = vpop.f32.mrb[49].mxu1 }
 0xdcc   :  { %v7123_v9 = vpop.f32.mrb[50].mxu1 }
 0xdcd   :  { %v12548_v35 = vpack.c.bf16 %v7123_v9, %v7119_v36  ;;  %v7125_v13 = vpop.f32.mrb[51].mxu1  ;;  %v11251_v9 = vld [vmem:[#allocation2 + $0xf10] sm:$0xff]  }
 0xdce   :  { %v7199_v61 = vpack.c.bf16 %v7125_v13, %v7121_v18  ;;  %v11253_v13 = vld [vmem:[#allocation2 + $0xf58] sm:$0xff]  }
 0xdcf   :  { %7832 = vmatmul.mubr.bf16.vlgmr.msra.gmra.mrb[64].mxu0 %v12548_v35 }
 0xdd0   :  { %7839 = vmatprep.mubr.bf16.mxu0 %v12476_v25  ;;  %10325 = vmatpush3.bf16.msra.mxu0 %v11220_v7 }
 0xdd1   :  { %10326 = vmatprep.subr.bf16.mxu0 %v11222_v14 }
 0xdd2   :  { %v7129_v26 = vpop.f32.mrb[52].mxu1 }
 0xdd3   :  { %v7131_v6 = vpop.f32.mrb[53].mxu1 }
 0xdd4   :  { %v7133_v43 = vpop.f32.mrb[54].mxu1  ;;  %10327 = vmatpush3.bf16.msra.mxu0 %v11223_v54 }
 0xdd5   :  { %v12552_v44 = vpack.c.bf16 %v7133_v43, %v7129_v26  ;;  %v7135_v24 = vpop.f32.mrb[55].mxu1  ;;  %10328 = vmatprep.subr.bf16.mxu0 %v11224_v40  ;;  %v11258_v40 = vld [vmem:[#allocation2 + $0xfa0] sm:$0xff]  }
 0xdd6   :  { %v7201_v2 = vpack.c.bf16 %v7135_v24, %v7131_v6 }
 0xdd7   :  { %7840 = vmatmul.mubr.bf16.gmra.mrb[68].mxu0 %v12552_v44 }
 0xdd8   :  { %7847 = vmatprep.mubr.bf16.mxu0 %v12486_v50  ;;  %10329 = vmatpush3.bf16.msra.mxu0 %v11226_v31  ;;  %v11257_v31 = vld [vmem:[#allocation2 + $0xf20] sm:$0xff]  }
 0xdd9   :  { %10330 = vmatprep.subr.bf16.mxu0 %v11228_v1  ;;  %v11259_v1 = vld [vmem:[#allocation2 + $0xf68] sm:$0xff]  }
 0xdda   :  { %v7139_v47 = vpop.f32.mrb[56].mxu1 }
 0xddb   :  { %v12556_v51 = vpop.f32.mrb[57].mxu1 }
 0xddc   :  { %v7143_v41 = vpop.f32.mrb[58].mxu1  ;;  %10331 = vmatpush3.bf16.msra.mxu0 %v11229_v48 }
 0xddd   :  { %v12558_v29 = vpack.c.bf16 %v7143_v41, %v7139_v47  ;;  %v7145_v20 = vpop.f32.mrb[59].mxu1  ;;  %10332 = vmatprep.subr.bf16.mxu0 %v11230_v37  ;;  %v11262_v37 = vld [vmem:[#allocation2 + $0xf70] sm:$0xff]  }
 0xdde   :  { %v7203_v34 = vpack.c.bf16 %v7145_v20, %v12556_v51  ;;  %v11264_v51 = vld [vmem:[#allocation2 + $0xfb0] sm:$0xff]  }
 0xddf   :  { %7848 = vmatmul.mubr.bf16.gmra.mrb[72].mxu0 %v12558_v29 }
 0xde0   :  { %7855 = vmatprep.mubr.bf16.mxu0 %v12496_v27  ;;  %10333 = vmatpush3.bf16.msra.mxu0 %v11232_v12 }
 0xde1   :  { %10334 = vmatprep.subr.bf16.mxu0 %v11234_v55  ;;  %v11263_v55 = vld [vmem:[#allocation2 + $0xf30] sm:$0xff]  }
 0xde2   :  { %v7149_v38 = vpop.f32.mrb[60].mxu1 }
 0xde3   :  { %v12563_v30 = vpop.f32.mrb[61].mxu1 }
 0xde4   :  { %v7153_v42 = vpop.f32.mrb[62].mxu1  ;;  %10335 = vmatpush3.bf16.msra.mxu0 %v11235_v17  ;;  %v11265_v17 = vld [vmem:[#allocation2 + $0xf78] sm:$0xff]  }
 0xde5   :  { %v12565_v15 = vpack.c.bf16 %v7153_v42, %v7149_v38  ;;  %v12567_v58 = vpop.f32.mrb[63].mxu1  ;;  %10336 = vmatprep.subr.bf16.mxu0 %v11236_v21  ;;  %v11266_v21 = vld [vmem:[#allocation2 + $0xf38] sm:$0xff]   ;;  %v11270_v38 = vld [vmem:[#allocation4 + $0x80] sm:$0xff]  }
 0xde6   :  { %v7205_v4 = vpack.c.bf16 %v12567_v58, %v12563_v30  ;;  %v11273_v30 = vld [vmem:[#allocation4 + $0x88] sm:$0xff]   ;;  %v11278_v42 = vld [vmem:[#allocation4 + $0x18] sm:$0xff]   ;;  %v11281_v58 = vld [vmem:[#allocation4 + $0x20] sm:$0xff]  }
 0xde7   :  { %7856 = vmatmul.mubr.bf16.gmra.mrb[76].mxu0 %v12565_v15 }
 0xde8   :  { %10337 = vmatpush3.bf16.msra.mxu0 %v11238_v45  ;;  %7896 = vmatprep.mubr.bf16.mxu0 %v7199_v61  ;;  %v11256_v61 = vld [vmem:[#allocation2 + $0xf60] sm:$0xff]   ;;  %v11279_v45 = vld [vmem:[#allocation4 + $0x98] sm:$0xff]  }
 0xde9   :  { %10338 = vmatprep.subr.bf16.mxu0 %v11240_v32  ;;  %v11282_v32 = vld [vmem:[#allocation4 + $0xa0] sm:$0xff]  }
 0xdea   :  { %v7159_v46 = vpop.f32.mrb[64].mxu1 }
 0xdeb   :  { %v7161_v60 = vpop.f32.mrb[65].mxu1 }
 0xdec   :  { %v7163_v16 = vpop.f32.mrb[66].mxu1  ;;  %10339 = vmatpush3.bf16.msra.mxu0 %v11241_v5  ;;  %v11284_v5 = vld [vmem:[#allocation4 + $0x28] sm:$0xff]  }
 0xded   :  { %v12572_v53 = vpack.c.bf16 %v7163_v16, %v7159_v46  ;;  %v7165_v52 = vpop.f32.mrb[67].mxu1  ;;  %10404 = vmatprep.subr.bf16.mxu0 %v11244_v28  ;;  %v11285_v28 = vld [vmem:[#allocation4 + $0xa8] sm:$0xff]   ;;  %v11286_v46 = vld [vmem:[#allocation4 + $0x70] sm:$0xff]  }
 0xdee   :  { %v7207_v22 = vpack.c.bf16 %v7165_v52, %v7161_v60  ;;  %v11287_v60 = vld [vmem:[#allocation4 + $0x30] sm:$0xff]   ;;  %v11290_v52 = vld [vmem:[#allocation4 + $0x38] sm:$0xff]  }
 0xdef   :  { %7897 = vmatmul.mubr.bf16.vlgmr.msra.gmra.mrb[80].mxu0 %v12572_v53  ;;  %v11288_v16 = vld [vmem:[#allocation4 + $0xb0] sm:$0xff]  }
 0xdf0   :  { %7904 = vmatprep.mubr.bf16.mxu0 %v7201_v2  ;;  %7961 = vmatprep.mubr.bf16.mxu1 %v7207_v22  ;;  %v11260_v2 = vld [vmem:[#allocation2 + $0xf28] sm:$0xff]  }
 0xdf1   :  { %10405 = vmatpush3.bf16.msra.mxu0 %v11245_v56  ;;  %7962 = vmatmul.mubr.bf16.vlgmr.msra.gmra.mrb[80].mxu1 %v12474_v8  ;;  %v11255_v8 = vld [vmem:[#allocation2 + $0xf98] sm:$0xff]  }
 0xdf2   :  { %v7169_v57 = vpop.f32.mrb[68].mxu1  ;;  %10653 = vmatpush3.bf16.msra.mxu1 %v12545_v33  ;;  %10406 = vmatprep.subr.bf16.mxu0 %v11247_v49  ;;  %v11254_v33 = vld [vmem:[#allocation2 + $0xf18] sm:$0xff]  }
 0xdf3   :  { %v7171_v63 = vpop.f32.mrb[69].mxu1  ;;  %10654 = vmatprep.subr.bf16.mxu1 %v11249_v10  ;;  %v11291_v56 = vld [vmem:[#allocation4 + $0xb8] sm:$0xff]  }
 0xdf4   :  { %v7173_v23 = vpop.f32.mrb[70].mxu1 }
 0xdf5   :  { %v12577_v36 = vpack.c.bf16 %v7173_v23, %v7169_v57  ;;  %10407 = vmatpush3.bf16.msra.mxu0 %v11248_v0  ;;  %v7175_v18 = vpop.f32.mrb[71].mxu1 }
 0xdf6   :  { %v7209_v7 = vpack.c.bf16 %v7175_v18, %v7171_v63  ;;  %10655 = vmatpush3.bf16.msra.mxu1 %v11249_v10  ;;  %10408 = vmatprep.subr.bf16.mxu0 %v11250_v59 }
 0xdf7   :  { %7905 = vmatmul.mubr.bf16.gmra.mrb[84].mxu0 %v12577_v36  ;;  %10656 = vmatprep.subr.bf16.mxu1 %v11252_v3 }
 0xdf8   :  { %7912 = vmatprep.mubr.bf16.mxu0 %v7203_v34  ;;  %7969 = vmatprep.mubr.bf16.mxu1 %v7209_v7 }
 0xdf9   :  { %10409 = vmatpush3.bf16.msra.mxu0 %v11251_v9  ;;  %7970 = vmatmul.mubr.bf16.gmra.mrb[84].mxu1 %v12484_v39  ;;  %v11261_v39 = vld [vmem:[#allocation2 + $0xfa8] sm:$0xff]  }
 0xdfa   :  { %v7179_v14 = vpop.f32.mrb[72].mxu1  ;;  %10657 = vmatpush3.bf16.msra.mxu1 %v11252_v3  ;;  %10410 = vmatprep.subr.bf16.mxu0 %v11253_v13 }
 0xdfb   :  { %v7181_v54 = vpop.f32.mrb[73].mxu1  ;;  %10658 = vmatprep.subr.bf16.mxu1 %v11255_v8 }
 0xdfc   :  { %v7183_v26 = vpop.f32.mrb[74].mxu1 }
 0xdfd   :  { %v7210_v6 = vpack.c.bf16 %v7183_v26, %v7179_v14  ;;  %10411 = vmatpush3.bf16.msra.mxu0 %v11254_v33  ;;  %v7185_v43 = vpop.f32.mrb[75].mxu1 }
 0xdfe   :  { %v7211_v24 = vpack.c.bf16 %v7185_v43, %v7181_v54  ;;  %10659 = vmatpush3.bf16.msra.mxu1 %v11255_v8  ;;  %10412 = vmatprep.subr.bf16.mxu0 %v11256_v61 }
 0xdff   :  { %7913 = vmatmul.mubr.bf16.gmra.mrb[88].mxu0 %v7210_v6  ;;  %10660 = vmatprep.subr.bf16.mxu1 %v11258_v40 }
 0xe00   :  { %7920 = vmatprep.mubr.bf16.mxu0 %v7205_v4  ;;  %7977 = vmatprep.mubr.bf16.mxu1 %v7211_v24  ;;  %v11283_v4 = vld [vmem:[#allocation4 + $0x68] sm:$0xff]   ;;  %v12598_v24 = vld [vmem:[#allocation6 + $0x6] ss:$0 sm:$0xff] }
 0xe01   :  { %10413 = vmatpush3.bf16.msra.mxu0 %v11257_v31  ;;  %7978 = vmatmul.mubr.bf16.gmra.mrb[88].mxu1 %v12494_v62  ;;  %v11267_v62 = vld [vmem:[#allocation2 + $0xfb8] sm:$0xff]  }
 0xe02   :  { %v7189_v48 = vpop.f32.mrb[76].mxu1  ;;  %10661 = vmatpush3.bf16.msra.mxu1 %v11258_v40  ;;  %10414 = vmatprep.subr.bf16.mxu0 %v11259_v1 }
 0xe03   :  { %v7191_v47 = vpop.f32.mrb[77].mxu1  ;;  %10662 = vmatprep.subr.bf16.mxu1 %v11261_v39 }
 0xe04   :  { %v7193_v41 = vpop.f32.mrb[78].mxu1 }
 0xe05   :  { %v7212_v12 = vpack.c.bf16 %v7193_v41, %v7189_v48  ;;  %10415 = vmatpush3.bf16.msra.mxu0 %v11260_v2  ;;  %v7195_v20 = vpop.f32.mrb[79].mxu1 }
 0xe06   :  { %v7213_v34 = vpack.c.bf16 %v7195_v20, %v7191_v47  ;;  %10663 = vmatpush3.bf16.msra.mxu1 %v11261_v39  ;;  %10416 = vmatprep.subr.bf16.mxu0 %v11262_v37 }
 0xe07   :  { %7921 = vmatmul.mubr.bf16.gmra.mrb[92].mxu0 %v7212_v12  ;;  %10664 = vmatprep.subr.bf16.mxu1 %v11264_v51 }
 0xe08   :  { %7985 = vmatprep.mubr.bf16.mxu1 %v7213_v34  ;;  %8026 = vmatprep.mubr.bf16.mxu0 %v12467_v11  ;;  %v11268_v11 = vld [vmem:[#allocation4 + $0x40] sm:$0xff]  }
 0xe09   :  { %10417 = vmatpush3.bf16.msra.mxu0 %v11263_v55  ;;  %7986 = vmatmul.mubr.bf16.gmra.mrb[92].mxu1 %v12502_v19  ;;  %v11269_v19 = vld [vmem:[#allocation4] sm:$0xff]  }
 0xe0a   :  { %10665 = vmatpush3.bf16.msra.mxu1 %v11264_v51  ;;  %10668 = vmatprep.mubr.bf16.mxu1 %v12572_v53  ;;  %v11289_v53 = vld [vmem:[#allocation4 + $0x78] sm:$0xff]  }
 0xe0b   :  { %10418 = vmatprep.subr.bf16.mxu0 %v11265_v17  ;;  %10666 = vmatprep.subr.bf16.mxu1 %v11267_v62 }
 0xe0d   :  { %10419 = vmatpush3.bf16.msra.mxu0 %v11266_v21 }
 0xe0e   :  { %10667 = vmatpush3.bf16.msra.mxu1 %v11267_v62  ;;  %10456 = vmatprep.subr.bf16.mxu0 %v11268_v11 }
 0xe0f   :  { %10676 = vmatprep.subr.bf16.mxu1 %v11270_v38 }
 0xe10   :  { %8027 = vmatmul.mubr.bf16.vlgmr.msra.gmra.mrb[96].mxu0 %v12548_v35  ;;  %v11272_v35 = vld [vmem:[#allocation4 + $0x8] sm:$0xff]  }
 0xe11   :  { %8034 = vmatprep.mubr.bf16.mxu0 %v12476_v25  ;;  %10669 = vmatmul.mubr.bf16.vlgmr.msra.gmra.mrb[96].mxu1 %v12577_v36  ;;  %v11271_v25 = vld [vmem:[#allocation4 + $0x48] sm:$0xff]  }
 0xe12   :  { %10672 = vmatprep.mubr.bf16.mxu1 %v7210_v6  ;;  %10457 = vmatpush3.bf16.msra.mxu0 %v11269_v19 }
 0xe13   :  { %10677 = vmatpush3.bf16.msra.mxu1 %v11270_v38  ;;  %10458 = vmatprep.subr.bf16.mxu0 %v11271_v25 }
 0xe14   :  { %10678 = vmatprep.subr.bf16.mxu1 %v11273_v30 }
 0xe16   :  { %10459 = vmatpush3.bf16.msra.mxu0 %v11272_v35 }
 0xe17   :  { %10679 = vmatpush3.bf16.msra.mxu1 %v11273_v30 }
 0xe18   :  { %8035 = vmatmul.mubr.bf16.gmra.mrb[100].mxu0 %v12552_v44  ;;  %v11275_v44 = vld [vmem:[#allocation4 + $0x10] sm:$0xff]  }
 0xe19   :  { %8042 = vmatprep.mubr.bf16.mxu0 %v12486_v50  ;;  %10673 = vmatmul.mubr.bf16.gmra.mrb[100].mxu1 %v7212_v12  ;;  %v11274_v50 = vld [vmem:[#allocation4 + $0x50] sm:$0xff]  }
 0xe1a   :  { %10460 = vmatprep.subr.bf16.mxu0 %v11274_v50 }
 0xe1b   :  { %10461 = vmatpush3.bf16.msra.mxu0 %v11275_v44 }
 0xe20   :  { %8043 = vmatmul.mubr.bf16.gmra.mrb[104].mxu0 %v12558_v29  ;;  %v11276_v29 = vld [vmem:[#allocation4 + $0x90] sm:$0xff]  }
 0xe21   :  { %8050 = vmatprep.mubr.bf16.mxu0 %v12496_v27  ;;  %10680 = vmatprep.subr.bf16.mxu1 %v11276_v29  ;;  %v11277_v27 = vld [vmem:[#allocation4 + $0x58] sm:$0xff]  }
 0xe22   :  { %10681 = vmatpush3.bf16.msra.mxu1 %v11276_v29  ;;  %10462 = vmatprep.subr.bf16.mxu0 %v11277_v27 }
 0xe23   :  { %10463 = vmatpush3.bf16.msra.mxu0 %v11278_v42  ;;  %10682 = vmatprep.subr.bf16.mxu1 %v11279_v45 }
 0xe26   :  { %10683 = vmatpush3.bf16.msra.mxu1 %v11279_v45 }
 0xe27   :  { %10684 = vmatprep.subr.bf16.mxu1 %v11282_v32 }
 0xe28   :  { %8051 = vmatmul.mubr.bf16.gmra.mrb[108].mxu0 %v12565_v15  ;;  %v11280_v15 = vld [vmem:[#allocation4 + $0x60] sm:$0xff]  }
 0xe29   :  { %10464 = vmatprep.subr.bf16.mxu0 %v11280_v15 }
 0xe2a   :  { %10465 = vmatpush3.bf16.msra.mxu0 %v11281_v58  ;;  %10685 = vmatpush3.bf16.msra.mxu1 %v11282_v32 }
 0xe2b   :  { %10466 = vmatprep.subr.bf16.mxu0 %v11283_v4  ;;  %10686 = vmatprep.subr.bf16.mxu1 %v11285_v28 }
 0xe2e   :  { %10467 = vmatpush3.bf16.msra.mxu0 %v11284_v5  ;;  %10687 = vmatpush3.bf16.msra.mxu1 %v11285_v28 }
 0xe2f   :  { %10468 = vmatprep.subr.bf16.mxu0 %v11286_v46  ;;  %10688 = vmatprep.subr.bf16.mxu1 %v11288_v16 }
 0xe32   :  { %10469 = vmatpush3.bf16.msra.mxu0 %v11287_v60  ;;  %10689 = vmatpush3.bf16.msra.mxu1 %v11288_v16 }
 0xe33   :  { %10470 = vmatprep.subr.bf16.mxu0 %v11289_v53  ;;  %10690 = vmatprep.subr.bf16.mxu1 %v11291_v56 }
 0xe36   :  { %10471 = vmatpush3.bf16.msra.mxu0 %v11290_v52  ;;  %10691 = vmatpush3.bf16.msra.mxu1 %v11291_v56 }
 0xea2   :  { %v10300_v22 = vpop.f32.mrb[64].mxu0 }
 0xea3   :  { %v10301_v49 = vpop.f32.mrb[65].mxu0 }
 0xea4   :  { %v10302_v10 = vadd.f32 %v10301_v49, %v10300_v22  ;;  %v10303_v0 = vpop.f32.mrb[66].mxu0 }
 0xea5   :  { %v10304_v57 = vpop.f32.mrb[67].mxu0 }
 0xea6   :  { %v10305_v59 = vadd.f32 %v10304_v57, %v10303_v0  ;;  %v7834_v2 = vadd.f32 %v10302_v10, %v12598_v24 }
 0xea8   :  { %v7837_v12 = vadd.f32 %v10305_v59, %v12598_v24 }
 0xeaa   :  { %v10306_v63 = vpop.f32.mrb[68].mxu0 }
 0xeab   :  { %v10307_v3 = vpop.f32.mrb[69].mxu0 }
 0xeac   :  { %v10308_v23 = vadd.f32 %v10307_v3, %v10306_v63  ;;  %v10309_v36 = vpop.f32.mrb[70].mxu0 }
 0xead   :  { %v10310_v18 = vpop.f32.mrb[71].mxu0 }
 0xeae   :  { %v10311_v9 = vadd.f32 %v10310_v18, %v10309_v36  ;;  %v7842_v30 = vadd.f32 %v10308_v23, %v12598_v24 }
 0xeb0   :  { %v7845_v45 = vadd.f32 %v10311_v9, %v12598_v24 }
 0xeb2   :  { %v10312_v7 = vpop.f32.mrb[72].mxu0 }
 0xeb3   :  { %v10313_v13 = vpop.f32.mrb[73].mxu0 }
 0xeb4   :  { %v10314_v8 = vadd.f32 %v10313_v13, %v10312_v7  ;;  %v10315_v33 = vpop.f32.mrb[74].mxu0 }
 0xeb5   :  { %v10316_v14 = vpop.f32.mrb[75].mxu0 }
 0xeb6   :  { %v10317_v61 = vadd.f32 %v10316_v14, %v10315_v33  ;;  %v7850_v56 = vadd.f32 %v10314_v8, %v12598_v24 }
 0xeb8   :  { %v7853_v59 = vadd.f32 %v10317_v61, %v12598_v24 }
 0xeba   :  { %v10318_v54 = vpop.f32.mrb[76].mxu0 }
 0xebb   :  { %v10319_v40 = vpop.f32.mrb[77].mxu0 }
 0xebc   :  { %v10320_v26 = vadd.f32 %v10319_v40, %v10318_v54  ;;  %v10321_v6 = vpop.f32.mrb[78].mxu0 }
 0xebd   :  { %v10322_v43 = vpop.f32.mrb[79].mxu0 }
 0xebe   :  { %v12596_v31 = vadd.f32 %v10322_v43, %v10321_v6  ;;  %v7858_v54 = vadd.f32 %v10320_v26, %v12598_v24 }
 0xec2   :  { %v10340_v1 = vpop.f32.mrb[80].mxu0 }
 0xec3   :  { %v10341_v39 = vpop.f32.mrb[81].mxu0 }
 0xec4   :  { %v10342_v48 = vadd.f32 %v10341_v39, %v10340_v1  ;;  %v10343_v37 = vpop.f32.mrb[82].mxu0  ;;  %v10380_v47 = vpop.f32.mrb[80].mxu1  ;;  %v7861_v39 = vadd.f32 %v12596_v31, %v12598_v24 }
 0xec5   :  { %v10344_v51 = vpop.f32.mrb[83].mxu0  ;;  %v10381_v41 = vpop.f32.mrb[81].mxu1 }
 0xec6   :  { %v7899_v20 = vadd.f32 %v10342_v48, %v7834_v2  ;;  %v10345_v55 = vadd.f32 %v10344_v51, %v10343_v37  ;;  %v10382_v34 = vadd.f32 %v10381_v41, %v10380_v47  ;;  %v10383_v17 = vpop.f32.mrb[82].mxu1 }
 0xec7   :  { %v10384_v62 = vpop.f32.mrb[83].mxu1 }
 0xec8   :  { %v7902_v21 = vadd.f32 %v10345_v55, %v7837_v12  ;;  %v12602_v11 = vadd.f32 %v10382_v34, %v7899_v20  ;;  %v10385_v19 = vadd.f32 %v10384_v62, %v10383_v17 }
 0xeca   :  { %v12604_v38 = vadd.f32 %v10385_v19, %v7902_v21  ;;  %v10346_v25 = vpop.f32.mrb[84].mxu0 }
 0xecb   :  { %v10347_v35 = vpop.f32.mrb[85].mxu0 }
 0xecc   :  { %v10348_v50 = vadd.f32 %v10347_v35, %v10346_v25  ;;  %v10349_v44 = vpop.f32.mrb[86].mxu0  ;;  %v10386_v29 = vpop.f32.mrb[84].mxu1 }
 0xecd   :  { %v10350_v27 = vpop.f32.mrb[87].mxu0  ;;  %v10387_v42 = vpop.f32.mrb[85].mxu1 }
 0xece   :  { %v7907_v15 = vadd.f32 %v10348_v50, %v7842_v30  ;;  %v10351_v58 = vadd.f32 %v10350_v27, %v10349_v44  ;;  %v10388_v32 = vadd.f32 %v10387_v42, %v10386_v29  ;;  %v10389_v4 = vpop.f32.mrb[86].mxu1 }
 0xecf   :  { %v10390_v5 = vpop.f32.mrb[87].mxu1 }
 0xed0   :  { %v7910_v28 = vadd.f32 %v10351_v58, %v7845_v45  ;;  %v12608_v46 = vadd.f32 %v10388_v32, %v7907_v15  ;;  %v10391_v60 = vadd.f32 %v10390_v5, %v10389_v4 }
 0xed2   :  { %v12610_v16 = vadd.f32 %v10391_v60, %v7910_v28  ;;  %v10352_v53 = vpop.f32.mrb[88].mxu0 }
 0xed3   :  { %v10353_v52 = vpop.f32.mrb[89].mxu0 }
 0xed4   :  { %v10354_v22 = vadd.f32 %v10353_v52, %v10352_v53  ;;  %v10355_v49 = vpop.f32.mrb[90].mxu0  ;;  %v10392_v10 = vpop.f32.mrb[88].mxu1 }
 0xed5   :  { %v10356_v0 = vpop.f32.mrb[91].mxu0  ;;  %v10393_v57 = vpop.f32.mrb[89].mxu1 }
 0xed6   :  { %v7915_v63 = vadd.f32 %v10354_v22, %v7850_v56  ;;  %v10357_v3 = vadd.f32 %v10356_v0, %v10355_v49  ;;  %v10394_v23 = vadd.f32 %v10393_v57, %v10392_v10  ;;  %v10395_v36 = vpop.f32.mrb[90].mxu1 }
 0xed7   :  { %v10396_v18 = vpop.f32.mrb[91].mxu1 }
 0xed8   :  { %v7918_v9 = vadd.f32 %v10357_v3, %v7853_v59  ;;  %v12614_v7 = vadd.f32 %v10394_v23, %v7915_v63  ;;  %v10397_v13 = vadd.f32 %v10396_v18, %v10395_v36 }
 0xeda   :  { %v12616_v33 = vadd.f32 %v10397_v13, %v7918_v9  ;;  %v10358_v14 = vpop.f32.mrb[92].mxu0 }
 0xedb   :  { %v10359_v8 = vpop.f32.mrb[93].mxu0 }
 0xedc   :  { %v10360_v40 = vadd.f32 %v10359_v8, %v10358_v14  ;;  %v10361_v6 = vpop.f32.mrb[94].mxu0  ;;  %v10398_v43 = vpop.f32.mrb[92].mxu1 }
 0xedd   :  { %v10362_v1 = vpop.f32.mrb[95].mxu0  ;;  %v10399_v61 = vpop.f32.mrb[93].mxu1 }
 0xede   :  { %v7923_v2 = vadd.f32 %v10360_v40, %v7858_v54  ;;  %v10363_v48 = vadd.f32 %v10362_v1, %v10361_v6  ;;  %v10400_v37 = vadd.f32 %v10399_v61, %v10398_v43  ;;  %v10401_v47 = vpop.f32.mrb[94].mxu1 }
 0xedf   :  { %v10402_v51 = vpop.f32.mrb[95].mxu1 }
 0xee0   :  { %v7926_v41 = vadd.f32 %v10363_v48, %v7861_v39  ;;  %v12621_v12 = vadd.f32 %v10400_v37, %v7923_v2  ;;  %v10403_v20 = vadd.f32 %v10402_v51, %v10401_v47 }
 0xee2   :  { %v12623_v55 = vadd.f32 %v10403_v20, %v7926_v41 }
 0xee3   :  { %v10420_v26 = vpop.f32.mrb[96].mxu0 }
 0xee4   :  { %v10421_v34 = vpop.f32.mrb[97].mxu0  ;;  %v10670_v17 = vpop.f32.mrb[96].mxu1 }
 0xee5   :  { %v10422_v62 = vadd.f32 %v10421_v34, %v10420_v26  ;;  %v10423_v21 = vpop.f32.mrb[98].mxu0  ;;  %v8093_v19 = vpop.f32.mrb[97].mxu1 }
 0xee6   :  { %v10424_v25 = vpop.f32.mrb[99].mxu0  ;;  %v10671_v35 = vpop.f32.mrb[98].mxu1 }
 0xee7   :  { %v10425_v31 = vadd.f32 %v10424_v25, %v10423_v21  ;;  %v8029_v24 = vadd.f32 %v10422_v62, %v12602_v11  ;;  %v8096_v30 = vpop.f32.mrb[99].mxu1 }
 0xee9   :  { %v8094_v50 = vadd.f32 %v8093_v19, %v8029_v24  ;;  %v8032_v44 = vadd.f32 %v10425_v31, %v12604_v38 }
 0xeeb   :  { %v8097_v29 = vadd.f32 %v8096_v30, %v8032_v44  ;;  %v10426_v27 = vpop.f32.mrb[100].mxu0  ;;  %v8124_v15 = vmax.f32 %v8094_v50, 0.0 }
 0xeec   :  { %v10427_v42 = vpop.f32.mrb[101].mxu0  ;;  %v10674_v45 = vpop.f32.mrb[100].mxu1 }
 0xeed   :  { %v8125_v58 = vmax.f32 %v8097_v29, 0.0  ;;  %v10428_v32 = vadd.f32 %v10427_v42, %v10426_v27  ;;  %v10429_v4 = vpop.f32.mrb[102].mxu0  ;;  %v8109_v5 = vpop.f32.mrb[101].mxu1 }
 0xeee   :  { %v10430_v28 = vpop.f32.mrb[103].mxu0  ;;  %v10675_v60 = vpop.f32.mrb[102].mxu1 }
 0xeef   :  { %v8132_v53 = vpack.c.bf16 %v8125_v58, %v8124_v15  ;;  %v8037_v52 = vadd.f32 %v10428_v32, %v12608_v46  ;;  %v10431_v56 = vadd.f32 %v10430_v28, %v10429_v4  ;;  %v8112_v11 = vpop.f32.mrb[103].mxu1  ;;  %v9227_v32 = vld [vmem:[#allocation6 + $0x7] ss:$0 sm:$0xff] }
 0xef1   :  { %v8137_v22 = vunpack.c.h.bf16 %v8132_v53  ;;  %v8102_v49 = vadd.f32 %v10670_v17, %v8037_v52  ;;  %v8040_v38 = vadd.f32 %v10431_v56, %v12610_v16  ;;  %10692 = vmatprep.mubr.bf16.mxu1 %v8132_v53  ;;  %v8136_v10 = vunpack.c.l.bf16 %v8132_v53 }
 0xef3   :  { %v8145_v0 = vsub.f32 %v8125_v58, %v8137_v22  ;;  %v8105_v57 = vadd.f32 %v10671_v35, %v8040_v38  ;;  %v10432_v59 = vpop.f32.mrb[104].mxu0  ;;  %v8144_v63 = vsub.f32 %v8124_v15, %v8136_v10  ;;  %v8126_v23 = vmax.f32 %v8102_v49, 0.0 }
 0xef4   :  { %v10433_v3 = vpop.f32.mrb[105].mxu0 }
 0xef5   :  { %v8127_v36 = vmax.f32 %v8105_v57, 0.0  ;;  %v10434_v18 = vadd.f32 %v10433_v3, %v10432_v59  ;;  %v10435_v9 = vpop.f32.mrb[106].mxu0  ;;  %v8152_v13 = vpack.c.bf16 %v8145_v0, %v8144_v63 }
 0xef6   :  { %v10436_v14 = vpop.f32.mrb[107].mxu0 }
 0xef7   :  { %v8133_v46 = vpack.c.bf16 %v8127_v36, %v8126_v23  ;;  %v8045_v8 = vadd.f32 %v10434_v18, %v12614_v7  ;;  %v10437_v54 = vadd.f32 %v10436_v14, %v10435_v9  ;;  %8388 = vmatprep.mubr.bf16.mxu0 %v8152_v13 }
 0xef8   :  { %8389 = vmatmul.mubr.bf16.vlgmr.msra.gmra.mrb[112].mxu0 %v8132_v53 }
 0xef9   :  { %v8110_v16 = vadd.f32 %v8109_v5, %v8045_v8  ;;  %v8048_v40 = vadd.f32 %v10437_v54, %v12616_v33  ;;  %10693 = vmatmul.mubr.bf16.vlgmr.msra.gmra.mrb[104].mxu1 %v8133_v46  ;;  %v8138_v6 = vunpack.c.l.bf16 %v8133_v46  ;;  %v8139_v43 = vunpack.c.h.bf16 %v8133_v46 }
 0xefb   :  { %v8113_v1 = vadd.f32 %v8112_v11, %v8048_v40  ;;  %v10438_v61 = vpop.f32.mrb[108].mxu0  ;;  %v8146_v39 = vsub.f32 %v8126_v23, %v8138_v6  ;;  %v8147_v2 = vsub.f32 %v8127_v36, %v8139_v43  ;;  %v8128_v37 = vmax.f32 %v8110_v16, 0.0 }
 0xefc   :  { %v10439_v48 = vpop.f32.mrb[109].mxu0 }
 0xefd   :  { %v8129_v47 = vmax.f32 %v8113_v1, 0.0  ;;  %v10440_v51 = vadd.f32 %v10439_v48, %v10438_v61  ;;  %v10441_v41 = vpop.f32.mrb[110].mxu0  ;;  %v8153_v20 = vpack.c.bf16 %v8147_v2, %v8146_v39 }
 0xefe   :  { %v10442_v7 = vpop.f32.mrb[111].mxu0 }
 0xeff   :  { %v8134_v26 = vpack.c.bf16 %v8129_v47, %v8128_v37  ;;  %v8053_v34 = vadd.f32 %v10440_v51, %v12621_v12  ;;  %v10443_v17 = vadd.f32 %v10442_v7, %v10441_v41  ;;  %8396 = vmatprep.mubr.bf16.mxu0 %v8153_v20 }
 0xf00   :  { %8397 = vmatmul.mubr.bf16.gmra.mrb[116].mxu0 %v8133_v46 }
 0xf01   :  { %v8118_v33 = vadd.f32 %v10674_v45, %v8053_v34  ;;  %v8056_v62 = vadd.f32 %v10443_v17, %v12623_v55  ;;  %10696 = vmatprep.mubr.bf16.mxu1 %v8134_v26  ;;  %v8140_v21 = vunpack.c.l.bf16 %v8134_v26  ;;  %v8141_v19 = vunpack.c.h.bf16 %v8134_v26 }
 0xf03   :  { %v8121_v25 = vadd.f32 %v10675_v60, %v8056_v62  ;;  %v8148_v35 = vsub.f32 %v8128_v37, %v8140_v21  ;;  %v8149_v31 = vsub.f32 %v8129_v47, %v8141_v19  ;;  %v8130_v24 = vmax.f32 %v8118_v33, 0.0 }
 0xf05   :  { %v8131_v30 = vmax.f32 %v8121_v25, 0.0  ;;  %v8154_v50 = vpack.c.bf16 %v8149_v31, %v8148_v35 }
 0xf07   :  { %v8135_v44 = vpack.c.bf16 %v8131_v30, %v8130_v24  ;;  %8404 = vmatprep.mubr.bf16.mxu0 %v8154_v50 }
 0xf08   :  { %8405 = vmatmul.mubr.bf16.gmra.mrb[120].mxu0 %v8134_v26 }
 0xf09   :  { %10697 = vmatmul.mubr.bf16.gmra.mrb[108].mxu1 %v8135_v44  ;;  %v8142_v12 = vunpack.c.l.bf16 %v8135_v44  ;;  %v8143_v29 = vunpack.c.h.bf16 %v8135_v44 }
 0xf0b   :  { %v8150_v27 = vsub.f32 %v8130_v24, %v8142_v12  ;;  %v8151_v42 = vsub.f32 %v8131_v30, %v8143_v29 }
 0xf0d   :  { %v8155_v45 = vpack.c.bf16 %v8151_v42, %v8150_v27 }
 0xf0f   :  { %8412 = vmatprep.mubr.bf16.mxu0 %v8155_v45 }
 0xf10   :  { %8413 = vmatmul.mubr.bf16.gmra.mrb[124].mxu0 %v8135_v44 }
 0xfcb   :  { %v10472_v55 = vpop.f32.mrb[112].mxu0 }
 0xfcc   :  { %v10473_v15 = vpop.f32.mrb[113].mxu0  ;;  %v10694_v58 = vpop.f32.mrb[104].mxu1 }
 0xfcd   :  { %v10474_v4 = vadd.f32 %v10473_v15, %v10472_v55  ;;  %v10475_v5 = vpop.f32.mrb[114].mxu0  ;;  %v8455_v28 = vpop.f32.mrb[105].mxu1 }
 0xfce   :  { %v10476_v60 = vpop.f32.mrb[115].mxu0  ;;  %v10695_v53 = vpop.f32.mrb[106].mxu1 }
 0xfcf   :  { %v8391_v52 = vadd.f32 %v10474_v4, %v9227_v32  ;;  %v10477_v56 = vadd.f32 %v10476_v60, %v10475_v5  ;;  %v8458_v11 = vpop.f32.mrb[107].mxu1 }
 0xfd1   :  { %v8456_v22 = vadd.f32 %v8455_v28, %v8391_v52  ;;  %v8394_v49 = vadd.f32 %v10477_v56, %v9227_v32 }
 0xfd3   :  { %v8486_v38 = vmax.f32 %v8456_v22, 0.0  ;;  %v8459_v10 = vadd.f32 %v8458_v11, %v8394_v49  ;;  %v10478_v0 = vpop.f32.mrb[116].mxu0 }
 0xfd4   :  { %v10479_v57 = vpop.f32.mrb[117].mxu0 }
 0xfd5   :  { %8494 = vst [vmem:[%s12662_s5] sm:$0xff] %v8486_v38  ;;  %v8487_v59 = vmax.f32 %v8459_v10, 0.0  ;;  %v10480_v63 = vadd.f32 %v10479_v57, %v10478_v0  ;;  %v10481_v3 = vpop.f32.mrb[118].mxu0 }
 0xfd6   :  { %v10482_v23 = vpop.f32.mrb[119].mxu0 }
 0xfd7   :  { %8495 = vst [vmem:[%s12662_s5 + $0x8] sm:$0xff] %v8487_v59  ;;  %v8399_v36 = vadd.f32 %v10480_v63, %v9227_v32  ;;  %v10483_v18 = vadd.f32 %v10482_v23, %v10481_v3 }
 0xfd9   :  { %v8464_v9 = vadd.f32 %v10694_v58, %v8399_v36  ;;  %v8402_v13 = vadd.f32 %v10483_v18, %v9227_v32 }
 0xfdb   :  { %v8488_v14 = vmax.f32 %v8464_v9, 0.0  ;;  %v8467_v46 = vadd.f32 %v10695_v53, %v8402_v13  ;;  %v10484_v8 = vpop.f32.mrb[120].mxu0 }
 0xfdc   :  { %v10485_v54 = vpop.f32.mrb[121].mxu0  ;;  %v10698_v16 = vpop.f32.mrb[108].mxu1 }
 0xfdd   :  { %8496 = vst [vmem:[%s12662_s5 + $0x10] sm:$0xff] %v8488_v14  ;;  %v8489_v40 = vmax.f32 %v8467_v46, 0.0  ;;  %v10486_v6 = vadd.f32 %v10485_v54, %v10484_v8  ;;  %v10487_v43 = vpop.f32.mrb[122].mxu0  ;;  %v8471_v1 = vpop.f32.mrb[109].mxu1 }
 0xfde   :  { %v10488_v61 = vpop.f32.mrb[123].mxu0  ;;  %v10699_v39 = vpop.f32.mrb[110].mxu1 }
 0xfdf   :  { %8497 = vst [vmem:[%s12662_s5 + $0x18] sm:$0xff] %v8489_v40  ;;  %v8407_v2 = vadd.f32 %v10486_v6, %v9227_v32  ;;  %v10489_v48 = vadd.f32 %v10488_v61, %v10487_v43  ;;  %v8474_v37 = vpop.f32.mrb[111].mxu1 }
 0xfe1   :  { %v8472_v47 = vadd.f32 %v8471_v1, %v8407_v2  ;;  %v8410_v51 = vadd.f32 %v10489_v48, %v9227_v32 }
 0xfe3   :  { %v8490_v41 = vmax.f32 %v8472_v47, 0.0  ;;  %v8475_v20 = vadd.f32 %v8474_v37, %v8410_v51  ;;  %v10490_v7 = vpop.f32.mrb[124].mxu0 }
 0xfe4   :  { %v10491_v26 = vpop.f32.mrb[125].mxu0 }
 0xfe5   :  { %8498 = vst [vmem:[%s12662_s5 + $0x20] sm:$0xff] %v8490_v41  ;;  %v8491_v34 = vmax.f32 %v8475_v20, 0.0  ;;  %v10492_v17 = vadd.f32 %v10491_v26, %v10490_v7  ;;  %v10493_v33 = vpop.f32.mrb[126].mxu0 }
 0xfe6   :  { %v10494_v62 = vpop.f32.mrb[127].mxu0 }
 0xfe7   :  { %8499 = vst [vmem:[%s12662_s5 + $0x28] sm:$0xff] %v8491_v34  ;;  %v8415_v21 = vadd.f32 %v10492_v17, %v9227_v32  ;;  %v10495_v19 = vadd.f32 %v10494_v62, %v10493_v33 }
 0xfe9   :  { %v8480_v25 = vadd.f32 %v10698_v16, %v8415_v21  ;;  %v8418_v35 = vadd.f32 %v10495_v19, %v9227_v32 }
 0xfeb   :  { %v8492_v31 = vmax.f32 %v8480_v25, 0.0  ;;  %v8483_v24 = vadd.f32 %v10699_v39, %v8418_v35 }
 0xfed   :  { %8500 = vst [vmem:[%s12662_s5 + $0x30] sm:$0xff] %v8492_v31  ;;  %v8493_v30 = vmax.f32 %v8483_v24, 0.0 }
 0xfef   :  { %8501 = vst [vmem:[%s12662_s5 + $0x38] sm:$0xff] %v8493_v30 }
 0xff0   :  { %8506 = vsyncpa [#allocation3], 1 }
 0xff1   :  { %8507 = vsyncpa [#allocation5], 1 }

</bundles_post_ra>
